<compile_context>
chip_gen: v5e
topology: v5e:2x2
jax: 0.10.0
libtpu: 0.0.40
codegen_flags: <defaults>
</compile_context>

<pallas_src>
import numpy as np
import jax
import jax.numpy as jnp
from jax.experimental import pallas as pl
from jax.experimental.pallas import tpu as pltpu

# ---------------- configuration (small test shapes) ----------------
INPUT_DIM = 8
HIDDEN_DIM = 8            # out_channels per head
OUTPUT_DIM = 3
NUM_LAYERS = 2
HEADS = 4
POS_DIM = 16
DIVERSITY_WEIGHT = 0.1
D_HID = HIDDEN_DIM * HEADS            # 32
INPUT_POS_DIM = INPUT_DIM + POS_DIM   # 24
LEAKY_SLOPE = 0.2
BN_EPS = 1e-5
MASK_SCALE = 1e30
SLAB_LANES = 2 * D_HID                # 64: widest packed weight row
F32 = jnp.float32

# dot_general dimension numbers
_NT = (((1,), (1,)), ((), ()))        # A @ B^T   (contract last dims)
_TN = (((0,), (0,)), ((), ()))        # A^T @ B   (contract first dims)


# ---------------- small helpers ----------------
def _leaky_relu(x, slope):
    return jnp.where(x > 0, x, slope * x)


def _elu(x):
    return jnp.where(x > 0, x, jnp.exp(jnp.minimum(x, 0.0)) - 1.0)


def _sum_all(v):  # full reduction of a 2D array -> [1, 1]
    return jnp.sum(jnp.sum(v, axis=1, keepdims=True), axis=0, keepdims=True)


# ---------------- the single fused kernel ----------------
def make_fused_kernel(layout):
    """Build the kernel as a closure over the static weight-slab layout."""

    def sl(ref, name):
        off, r, c = layout[name]
        return ref[off:off + r, :c]          # static slice of the packed slab

    def kernel(x_ref, adjb_ref, pos_ref, pmat_ref, w_ref,
               task_ref, node_ref, graph_ref, divloss_ref):
        x = x_ref[...]            # [N, INPUT_DIM]
        adj_bias = adjb_ref[...]  # [N, N]  0 on edges (+self loops), -1e30 elsewhere
        pos = pos_ref[...]        # [N, 2]
        W = lambda name: sl(w_ref, name)

        # ---- PositionalEncoding: x_enc = [x, pos @ Wpe + bpe] ----
        penc = jnp.dot(pos, W("wpe"), preferred_element_type=F32) + W("bpe")

        # constants for the diversity Gram reduction (packed in the slab)
        eye_h = W("eye_h")          # [H, H] identity
        blk_diag = W("blk_diag")    # [D_HID, D_HID]: 1 iff k%HID == l%HID
        head_sel = W("head_sel")    # [D_HID, H]: one-hot head membership

        def expressive_layer(hh, prefix):
            """ExpressiveGATConv on pre-projected hh = [N, 2*D_HID]
            (pos-GAT head blocks in columns [:D_HID], div-GAT in [D_HID:]).
            Returns (fused [N, D_HID], diversity_loss [1, 1])."""
            # all 2H per-head attention scores with two matmuls
            s_dst = jax.lax.dot_general(hh, W(prefix + "a_dst"), _NT,
                                        preferred_element_type=F32)     # [N, 2H]
            s_srcT = jax.lax.dot_general(W(prefix + "a_src"), hh, _NT,
                                         preferred_element_type=F32)    # [2H, N]
            # positional logit bias (pos-GAT heads only)
            wpb = W(prefix + "wpb")                                      # [H, 2]
            pb_col = jax.lax.dot_general(pos, wpb, _NT,
                                         preferred_element_type=F32)    # [N, H]
            pb_rowT = jax.lax.dot_general(wpb, pos, _NT,
                                          preferred_element_type=F32)   # [H, N]

            # TODO(synk): per-head softmax loop could be lane-stacked into one
            # [N, 2H*N] slab for full-width vregs at tiny N; kept per-head 2D
            # for robustness (already lane-dense once N >= 128).
            head_outs = []
            for h in range(2 * HEADS):
                sd = s_dst[:, h:h + 1]
                ss = s_srcT[h:h + 1, :]
                if h < HEADS:  # positional heads get the positional bias
                    sd = sd + pb_col[:, h:h + 1]
                    ss = ss + pb_rowT[h:h + 1, :]
                e = _leaky_relu(sd + ss, LEAKY_SLOPE) + adj_bias         # additive mask
                e = e - jnp.max(e, axis=1, keepdims=True)
                p = jnp.exp(e)
                inv = pl.reciprocal(jnp.sum(p, axis=1, keepdims=True), approx=False)
                alpha = p * inv                                          # softmax over sources
                lo = h * HIDDEN_DIM
                head_outs.append(jnp.dot(alpha, hh[:, lo:lo + HIDDEN_DIM],
                                         preferred_element_type=F32))    # [N, HID]

            # fused features: concat stays in registers (no VMEM scratch)
            comb = jnp.concatenate(head_outs, axis=1)                    # [N, 2*D_HID]
            fused = jnp.dot(comb, W(prefix + "wfuse"),
                            preferred_element_type=F32) + W(prefix + "bfuse")

            # diversity loss of the div-GAT heads via a tiny MXU Gram:
            #   g[a,b] = sum_{n,f} div_a[n,f] * div_b[n,f]
            dv = comb[:, D_HID:]                                         # [N, D_HID]
            gram_full = jax.lax.dot_general(dv, dv, _TN,
                                            preferred_element_type=F32)  # [D_HID, D_HID]
            gm = gram_full * blk_diag
            t1 = jnp.dot(gm, head_sel, preferred_element_type=F32)       # [D_HID, H]
            g = jax.lax.dot_general(head_sel, t1, _TN,
                                    preferred_element_type=F32)          # [H, H]
            diag_col = jnp.sum(g * eye_h, axis=1, keepdims=True)         # [H, 1]
            diag_row = jnp.sum(g * eye_h, axis=0, keepdims=True)         # [1, H]
            inv_c = 1.0 / (jnp.sqrt(diag_col) + 1e-8)
            inv_r = 1.0 / (jnp.sqrt(diag_row) + 1e-8)
            d = g * inv_c * inv_r - eye_h
            dloss = DIVERSITY_WEIGHT * _sum_all(d * d) / (HEADS * (HEADS - 1))
            return fused, dloss

        def bn_elu(v, gamma, beta):
            mean = jnp.mean(v, axis=0, keepdims=True)
            cen = v - mean
            var = jnp.mean(cen * cen, axis=0, keepdims=True)
            return _elu(cen * jax.lax.rsqrt(var + BN_EPS) * gamma + beta)

        # ------------------------- layer 0 -------------------------
        x_enc = jnp.concatenate([x, penc], axis=1)                       # [N, 24]
        hh0 = jnp.dot(x_enc, W("l0_wproj"), preferred_element_type=F32)  # [N, 64]
        fused0, dl0 = expressive_layer(hh0, "l0_")
        h0 = bn_elu(fused0, W("l0_gamma"), W("l0_beta"))
        # TODO(synk): F.dropout omitted (stochastic; identity in eval mode).

        # ------------------------- layer 1 -------------------------
        hh1 = jnp.dot(h0, W("l1_wproj"), preferred_element_type=F32)     # [N, 64]
        fused1, dl1 = expressive_layer(hh1, "l1_")
        res = jnp.dot(h0, W("l1_wres"), preferred_element_type=F32) + W("l1_bres")
        h1 = bn_elu(fused1, W("l1_gamma"), W("l1_beta")) + res

        # ---------------------- pooling + head ----------------------
        pooled = jnp.dot(pmat_ref[...], h1, preferred_element_type=F32)  # [G, D_HID]
        node_ref[...] = h1
        graph_ref[...] = pooled
        task_ref[...] = jnp.dot(pooled, W("w_task"),
                                preferred_element_type=F32) + W("b_task")
        divloss_ref[...] = dl0 + dl1

    return kernel


# ---------------- wrapper: one pallas_call for the whole forward ----------------
def enhanced_gnn_forward(packed_params, x, adj_bias, pos, pool_mat):
    slab, layout = packed_params
    n = x.shape[0]
    g = pool_mat.shape[0]

    out_shapes = (
        jax.ShapeDtypeStruct((g, OUTPUT_DIM), jnp.float32),   # task_pred
        jax.ShapeDtypeStruct((n, D_HID), jnp.float32),        # node_embeddings
        jax.ShapeDtypeStruct((g, D_HID), jnp.float32),        # graph_embeddings
        jax.ShapeDtypeStruct((1, 1), jnp.float32),            # diversity_loss
    )
    vmem = pltpu.MemorySpace.VMEM
    inputs = tuple(jnp.asarray(a, jnp.float32)
                   for a in (x, adj_bias, pos, pool_mat, slab))
    # TODO(synk): at realistic graph sizes add a grid over node/graph tiles
    # (online-softmax over source tiles, dimension_semantics=("parallel",...))
    # so v7x uses both TensorCores and the O(N^2) adjacency never has to be
    # VMEM-resident; this gridless form targets the tiny test shapes.
    task, node, graph, divloss = pl.pallas_call(
        make_fused_kernel(layout),
        out_shape=out_shapes,
        in_specs=[pl.BlockSpec(memory_space=vmem) for _ in inputs],
        out_specs=tuple(pl.BlockSpec(memory_space=vmem) for _ in out_shapes),
    )(*inputs)

    return {
        "task_pred": task,
        "time_pred": None,                  # predict_time=False
        "diversity_loss": divloss[0, 0],
        "node_embeddings": node,
        "graph_embeddings": graph,
    }


# ---------------- host-side graph construction ----------------
def normalized_positions(batch_np):
    """Mirror of EnhancedGNN._get_normalized_positions (grid layout per graph)."""
    num_nodes = batch_np.shape[0]
    pos = np.zeros((num_nodes, 2), np.float32)
    unique, counts = np.unique(batch_np, return_counts=True)
    start = 0
    for _, count in zip(unique, counts):
        gs = int(np.ceil(np.sqrt(count)))
        denom = max(gs - 1, 1)
        for i in range(count):
            pos[start + i, 0] = (i // gs) / denom
            pos[start + i, 1] = (i % gs) / denom
        start += int(count)
    return pos


def adjacency_bias(edge_index_np, num_nodes):
    """Additive attention mask: 0 where edge (incl. self loops), -1e30 elsewhere."""
    adj = np.zeros((num_nodes, num_nodes), np.float32)
    src, dst = edge_index_np
    adj[dst, src] = 1.0
    adj[np.arange(num_nodes), np.arange(num_nodes)] = 1.0   # self loops
    return (adj - 1.0) * MASK_SCALE


def mean_pool_matrix(batch_np, num_graphs):
    n = batch_np.shape[0]
    pmat = np.zeros((num_graphs, n), np.float32)
    for g in range(num_graphs):
        idx = np.where(batch_np == g)[0]
        pmat[g, idx] = 1.0 / len(idx)
    return pmat


# ---------------- host-side parameter construction & packing ----------------
def init_params(key):
    def nrm(k, shape, scale=0.1):
        return np.asarray(scale * jax.random.normal(k, shape, dtype=jnp.float32))

    keys = iter(jax.random.split(key, 64))
    raw = {
        "wpe": nrm(next(keys), (2, POS_DIM)),
        "bpe": nrm(next(keys), (1, POS_DIM)),
        "w_task": nrm(next(keys), (D_HID, OUTPUT_DIM)),
        "b_task": nrm(next(keys), (1, OUTPUT_DIM)),
        "layers": [],
    }
    fin = INPUT_POS_DIM
    for layer in range(NUM_LAYERS):
        lp = {
            "w_pos": nrm(next(keys), (fin, D_HID)),
            "a_src_pos": nrm(next(keys), (HEADS, HIDDEN_DIM)),
            "a_dst_pos": nrm(next(keys), (HEADS, HIDDEN_DIM)),
            "w_pbias": nrm(next(keys), (HEADS, 2)),
            "w_div": nrm(next(keys), (fin, D_HID)),
            "a_src_div": nrm(next(keys), (HEADS, HIDDEN_DIM)),
            "a_dst_div": nrm(next(keys), (HEADS, HIDDEN_DIM)),
            "w_fuse": nrm(next(keys), (2 * D_HID, D_HID)),
            "b_fuse": nrm(next(keys), (1, D_HID)),
            "bn_gamma": np.ones((1, D_HID), np.float32),
            "bn_beta": np.zeros((1, D_HID), np.float32),
        }
        if layer > 0:
            lp["w_res"] = nrm(next(keys), (D_HID, D_HID))
            lp["b_res"] = nrm(next(keys), (1, D_HID))
        raw["layers"].append(lp)
        fin = D_HID
    return raw


def _expand_attention(a_pos, a_div):
    """[H, HID] pos / div attention vectors -> block-expanded [2H, 2*D_HID] so
    one dot_general against hh=[N, 2*D_HID] yields all 2H per-head scores."""
    out = np.zeros((2 * HEADS, 2 * D_HID), np.float32)
    for h in range(HEADS):
        out[h, h * HIDDEN_DIM:(h + 1) * HIDDEN_DIM] = a_pos[h]
        out[HEADS + h, D_HID + h * HIDDEN_DIM:D_HID + (h + 1) * HIDDEN_DIM] = a_div[h]
    return out


def pack_params(raw):
    """Pack every weight / bias / constant into one [R, 64] f32 slab
    (8-row-aligned blocks) -> a single input DMA; returns (slab, layout)."""
    entries = []

    def add(name, arr):
        a = np.asarray(arr, np.float32)
        if a.ndim == 1:
            a = a[None, :]
        entries.append((name, a))

    add("wpe", raw["wpe"])
    add("bpe", raw["bpe"])
    add("w_task", raw["w_task"])
    add("b_task", raw["b_task"])
    for i, lp in enumerate(raw["layers"]):
        p = f"l{i}_"
        add(p + "wproj", np.concatenate([lp["w_pos"], lp["w_div"]], axis=1))
        add(p + "a_dst", _expand_attention(lp["a_dst_pos"], lp["a_dst_div"]))
        add(p + "a_src", _expand_attention(lp["a_src_pos"], lp["a_src_div"]))
        add(p + "wpb", lp["w_pbias"])
        add(p + "wfuse", lp["w_fuse"])
        add(p + "bfuse", lp["b_fuse"])
        add(p + "gamma", lp["bn_gamma"])
        add(p + "beta", lp["bn_beta"])
        if i > 0:
            add(p + "wres", lp["w_res"])
            add(p + "bres", lp["b_res"])
    # constants for the in-kernel diversity Gram reduction
    k = np.arange(D_HID)
    add("eye_h", np.eye(HEADS, dtype=np.float32))
    add("blk_diag", (k[:, None] % HIDDEN_DIM == k[None, :] % HIDDEN_DIM).astype(np.float32))
    add("head_sel", (k[:, None] // HIDDEN_DIM == np.arange(HEADS)[None, :]).astype(np.float32))

    layout = {}
    blocks = []
    row = 0
    for name, a in entries:
        r, c = a.shape
        assert c <= SLAB_LANES, name
        rpad = -(-r // 8) * 8                         # 8-aligned row blocks
        block = np.zeros((rpad, SLAB_LANES), np.float32)
        block[:r, :c] = a
        layout[name] = (row, r, c)
        blocks.append(block)
        row += rpad
    slab = jnp.asarray(np.concatenate(blocks, axis=0))
    return slab, layout


if __name__ == "__main__":
    key = jax.random.PRNGKey(0)
    kx, kp = jax.random.split(key)

    # 2 graphs, 8 nodes each; ring edges within each graph (both directions)
    batch_np = np.array([0] * 8 + [1] * 8, dtype=np.int32)
    num_nodes = batch_np.shape[0]
    edges = []
    for gi in range(2):
        off = gi * 8
        for i in range(8):
            a, b = off + i, off + (i + 1) % 8
            edges.append((a, b))
            edges.append((b, a))
    edge_index_np = np.array(edges, dtype=np.int64).T          # [2, 32]

    x = jax.random.normal(kx, (num_nodes, INPUT_DIM), jnp.float32)
    packed = pack_params(init_params(kp))

    pos = jnp.asarray(normalized_positions(batch_np))
    adjb = jnp.asarray(adjacency_bias(edge_index_np, num_nodes))
    pool_mat = jnp.asarray(mean_pool_matrix(batch_np, 2))

    outputs = enhanced_gnn_forward(packed, x, adjb, pos, pool_mat)
    jax.block_until_ready((outputs["task_pred"], outputs["graph_embeddings"],
                           outputs["node_embeddings"], outputs["diversity_loss"]))
    print("KERNEL_OK")
</pallas_src>

<mosaic_0001>
module attributes {stable_mosaic.version = 11 : i64} {
  func.func @kernel(%arg0: memref<16x8xf32, #tpu.memory_space<vmem>>, %arg1: memref<16x16xf32, #tpu.memory_space<vmem>>, %arg2: memref<16x2xf32, #tpu.memory_space<vmem>>, %arg3: memref<2x16xf32, #tpu.memory_space<vmem>>, %arg4: memref<448x64xf32, #tpu.memory_space<vmem>>, %arg5: memref<2x3xf32, #tpu.memory_space<vmem>>, %arg6: memref<16x32xf32, #tpu.memory_space<vmem>>, %arg7: memref<2x32xf32, #tpu.memory_space<vmem>>, %arg8: memref<1x1xf32, #tpu.memory_space<vmem>>) attributes {dimension_semantics = [], scalar_prefetch = 0 : i64, scratch_operands = 0 : i64, tpu.core_type = #tpu.core_type<tc>} {
    %c0 = arith.constant 0 : index
    %c0_0 = arith.constant 0 : index
    %0 = vector.load %arg0[%c0, %c0_0] : memref<16x8xf32, #tpu.memory_space<vmem>>, vector<16x8xf32>
    %c0_1 = arith.constant 0 : index
    %c0_2 = arith.constant 0 : index
    %1 = vector.load %arg1[%c0_1, %c0_2] : memref<16x16xf32, #tpu.memory_space<vmem>>, vector<16x16xf32>
    %c0_3 = arith.constant 0 : index
    %c0_4 = arith.constant 0 : index
    %2 = vector.load %arg2[%c0_3, %c0_4] : memref<16x2xf32, #tpu.memory_space<vmem>>, vector<16x2xf32>
    %c0_5 = arith.constant 0 : index
    %c0_6 = arith.constant 0 : index
    %3 = vector.load %arg4[%c0_5, %c0_6] : memref<448x64xf32, #tpu.memory_space<vmem>>, vector<2x16xf32>
    %cst = arith.constant dense<0.000000e+00> : vector<16x16xf32>
    %4 = tpu.matmul %2, %3, %cst {dimension_numbers = #tpu.dot_dimension_numbers<[1], [0], [0], [1], [0, 0, 1, 1], [], []>} : vector<16x2xf32>, vector<2x16xf32>, vector<16x16xf32> -> vector<16x16xf32>
    %c8 = arith.constant 8 : index
    %c0_7 = arith.constant 0 : index
    %5 = vector.load %arg4[%c8, %c0_7] : memref<448x64xf32, #tpu.memory_space<vmem>>, vector<1x16xf32>
    %6 = vector.broadcast %5 : vector<1x16xf32> to vector<16x16xf32>
    %7 = arith.addf %4, %6 : vector<16x16xf32>
    %c376 = arith.constant 376 : index
    %c0_8 = arith.constant 0 : index
    %8 = vector.load %arg4[%c376, %c0_8] : memref<448x64xf32, #tpu.memory_space<vmem>>, vector<4x4xf32>
    %c384 = arith.constant 384 : index
    %c0_9 = arith.constant 0 : index
    %9 = vector.load %arg4[%c384, %c0_9] : memref<448x64xf32, #tpu.memory_space<vmem>>, vector<32x32xf32>
    %c416 = arith.constant 416 : index
    %c0_10 = arith.constant 0 : index
    %10 = vector.load %arg4[%c416, %c0_10] : memref<448x64xf32, #tpu.memory_space<vmem>>, vector<32x4xf32>
    %11 = tpu.concatenate %0, %7 in 1 : vector<16x8xf32>, vector<16x16xf32> -> vector<16x24xf32>
    %c56 = arith.constant 56 : index
    %c0_11 = arith.constant 0 : index
    %12 = vector.load %arg4[%c56, %c0_11] : memref<448x64xf32, #tpu.memory_space<vmem>>, vector<24x64xf32>
    %cst_12 = arith.constant dense<0.000000e+00> : vector<16x64xf32>
    %13 = tpu.matmul %11, %12, %cst_12 {dimension_numbers = #tpu.dot_dimension_numbers<[1], [0], [0], [1], [0, 0, 1, 1], [], []>} : vector<16x24xf32>, vector<24x64xf32>, vector<16x64xf32> -> vector<16x64xf32>
    %c80 = arith.constant 80 : index
    %c0_13 = arith.constant 0 : index
    %14 = vector.load %arg4[%c80, %c0_13] : memref<448x64xf32, #tpu.memory_space<vmem>>, vector<8x64xf32>
    %cst_14 = arith.constant dense<0.000000e+00> : vector<16x8xf32>
    %15 = tpu.matmul %13, %14, %cst_14 {dimension_numbers = #tpu.dot_dimension_numbers<[1], [1], [0], [0], [0, 0, 1, 0], [], []>} : vector<16x64xf32>, vector<8x64xf32>, vector<16x8xf32> -> vector<16x8xf32>
    %c88 = arith.constant 88 : index
    %c0_15 = arith.constant 0 : index
    %16 = vector.load %arg4[%c88, %c0_15] : memref<448x64xf32, #tpu.memory_space<vmem>>, vector<8x64xf32>
    %cst_16 = arith.constant dense<0.000000e+00> : vector<8x16xf32>
    %17 = tpu.matmul %16, %13, %cst_16 {dimension_numbers = #tpu.dot_dimension_numbers<[1], [1], [0], [0], [0, 0, 1, 0], [], []>} : vector<8x64xf32>, vector<16x64xf32>, vector<8x16xf32> -> vector<8x16xf32>
    %c96 = arith.constant 96 : index
    %c0_17 = arith.constant 0 : index
    %18 = vector.load %arg4[%c96, %c0_17] : memref<448x64xf32, #tpu.memory_space<vmem>>, vector<4x2xf32>
    %cst_18 = arith.constant dense<0.000000e+00> : vector<16x4xf32>
    %19 = tpu.matmul %2, %18, %cst_18 {dimension_numbers = #tpu.dot_dimension_numbers<[1], [1], [0], [0], [0, 0, 1, 0], [], []>} : vector<16x2xf32>, vector<4x2xf32>, vector<16x4xf32> -> vector<16x4xf32>
    %cst_19 = arith.constant dense<0.000000e+00> : vector<4x16xf32>
    %20 = tpu.matmul %18, %2, %cst_19 {dimension_numbers = #tpu.dot_dimension_numbers<[1], [1], [0], [0], [0, 0, 1, 0], [], []>} : vector<4x2xf32>, vector<16x2xf32>, vector<4x16xf32> -> vector<4x16xf32>
    %21 = vector.extract_strided_slice %15 {offsets = [0, 0], sizes = [16, 1], strides = [1, 1]} : vector<16x8xf32> to vector<16x1xf32>
    %22 = vector.extract_strided_slice %17 {offsets = [0, 0], sizes = [1, 16], strides = [1, 1]} : vector<8x16xf32> to vector<1x16xf32>
    %23 = vector.extract_strided_slice %19 {offsets = [0, 0], sizes = [16, 1], strides = [1, 1]} : vector<16x4xf32> to vector<16x1xf32>
    %24 = arith.addf %21, %23 : vector<16x1xf32>
    %25 = vector.extract_strided_slice %20 {offsets = [0, 0], sizes = [1, 16], strides = [1, 1]} : vector<4x16xf32> to vector<1x16xf32>
    %26 = arith.addf %22, %25 : vector<1x16xf32>
    %27 = vector.broadcast %24 : vector<16x1xf32> to vector<16x16xf32>
    %28 = vector.broadcast %26 : vector<1x16xf32> to vector<16x16xf32>
    %29 = arith.addf %27, %28 : vector<16x16xf32>
    %cst_20 = arith.constant 0.000000e+00 : f32
    %30 = vector.broadcast %cst_20 : f32 to vector<16x16xf32>
    %31 = arith.cmpf ogt, %29, %30 : vector<16x16xf32>
    %cst_21 = arith.constant 2.000000e-01 : f32
    %32 = vector.broadcast %cst_21 : f32 to vector<16x16xf32>
    %33 = arith.mulf %32, %29 : vector<16x16xf32>
    %34 = arith.select %31, %29, %33 : vector<16x16xi1>, vector<16x16xf32>
    %35 = arith.addf %34, %1 : vector<16x16xf32>
    %cst_22 = arith.constant dense<0xFF800000> : vector<16xf32>
    %36 = vector.multi_reduction <maximumf>, %35, %cst_22 [1] : vector<16x16xf32> to vector<16xf32>
    %37 = vector.shape_cast %36 : vector<16xf32> to vector<16x1xf32>
    %38 = vector.broadcast %37 : vector<16x1xf32> to vector<16x16xf32>
    %39 = arith.subf %35, %38 : vector<16x16xf32>
    %40 = math.exp %39 : vector<16x16xf32>
    %cst_23 = arith.constant dense<0.000000e+00> : vector<16xf32>
    %41 = vector.multi_reduction <add>, %40, %cst_23 [1] : vector<16x16xf32> to vector<16xf32>
    %42 = vector.shape_cast %41 : vector<16xf32> to vector<16x1xf32>
    %43 = tpu.reciprocal %42 : vector<16x1xf32> -> vector<16x1xf32>
    %44 = vector.broadcast %43 : vector<16x1xf32> to vector<16x16xf32>
    %45 = arith.mulf %40, %44 : vector<16x16xf32>
    %46 = vector.extract_strided_slice %13 {offsets = [0, 0], sizes = [16, 8], strides = [1, 1]} : vector<16x64xf32> to vector<16x8xf32>
    %cst_24 = arith.constant dense<0.000000e+00> : vector<16x8xf32>
    %47 = tpu.matmul %45, %46, %cst_24 {dimension_numbers = #tpu.dot_dimension_numbers<[1], [0], [0], [1], [0, 0, 1, 1], [], []>} : vector<16x16xf32>, vector<16x8xf32>, vector<16x8xf32> -> vector<16x8xf32>
    %48 = vector.extract_strided_slice %15 {offsets = [0, 1], sizes = [16, 1], strides = [1, 1]} : vector<16x8xf32> to vector<16x1xf32>
    %49 = vector.extract_strided_slice %17 {offsets = [1, 0], sizes = [1, 16], strides = [1, 1]} : vector<8x16xf32> to vector<1x16xf32>
    %50 = vector.extract_strided_slice %19 {offsets = [0, 1], sizes = [16, 1], strides = [1, 1]} : vector<16x4xf32> to vector<16x1xf32>
    %51 = arith.addf %48, %50 : vector<16x1xf32>
    %52 = vector.extract_strided_slice %20 {offsets = [1, 0], sizes = [1, 16], strides = [1, 1]} : vector<4x16xf32> to vector<1x16xf32>
    %53 = arith.addf %49, %52 : vector<1x16xf32>
    %54 = vector.broadcast %51 : vector<16x1xf32> to vector<16x16xf32>
    %55 = vector.broadcast %53 : vector<1x16xf32> to vector<16x16xf32>
    %56 = arith.addf %54, %55 : vector<16x16xf32>
    %cst_25 = arith.constant 0.000000e+00 : f32
    %57 = vector.broadcast %cst_25 : f32 to vector<16x16xf32>
    %58 = arith.cmpf ogt, %56, %57 : vector<16x16xf32>
    %cst_26 = arith.constant 2.000000e-01 : f32
    %59 = vector.broadcast %cst_26 : f32 to vector<16x16xf32>
    %60 = arith.mulf %59, %56 : vector<16x16xf32>
    %61 = arith.select %58, %56, %60 : vector<16x16xi1>, vector<16x16xf32>
    %62 = arith.addf %61, %1 : vector<16x16xf32>
    %cst_27 = arith.constant dense<0xFF800000> : vector<16xf32>
    %63 = vector.multi_reduction <maximumf>, %62, %cst_27 [1] : vector<16x16xf32> to vector<16xf32>
    %64 = vector.shape_cast %63 : vector<16xf32> to vector<16x1xf32>
    %65 = vector.broadcast %64 : vector<16x1xf32> to vector<16x16xf32>
    %66 = arith.subf %62, %65 : vector<16x16xf32>
    %67 = math.exp %66 : vector<16x16xf32>
    %cst_28 = arith.constant dense<0.000000e+00> : vector<16xf32>
    %68 = vector.multi_reduction <add>, %67, %cst_28 [1] : vector<16x16xf32> to vector<16xf32>
    %69 = vector.shape_cast %68 : vector<16xf32> to vector<16x1xf32>
    %70 = tpu.reciprocal %69 : vector<16x1xf32> -> vector<16x1xf32>
    %71 = vector.broadcast %70 : vector<16x1xf32> to vector<16x16xf32>
    %72 = arith.mulf %67, %71 : vector<16x16xf32>
    %73 = vector.extract_strided_slice %13 {offsets = [0, 8], sizes = [16, 8], strides = [1, 1]} : vector<16x64xf32> to vector<16x8xf32>
    %cst_29 = arith.constant dense<0.000000e+00> : vector<16x8xf32>
    %74 = tpu.matmul %72, %73, %cst_29 {dimension_numbers = #tpu.dot_dimension_numbers<[1], [0], [0], [1], [0, 0, 1, 1], [], []>} : vector<16x16xf32>, vector<16x8xf32>, vector<16x8xf32> -> vector<16x8xf32>
    %75 = vector.extract_strided_slice %15 {offsets = [0, 2], sizes = [16, 1], strides = [1, 1]} : vector<16x8xf32> to vector<16x1xf32>
    %76 = vector.extract_strided_slice %17 {offsets = [2, 0], sizes = [1, 16], strides = [1, 1]} : vector<8x16xf32> to vector<1x16xf32>
    %77 = vector.extract_strided_slice %19 {offsets = [0, 2], sizes = [16, 1], strides = [1, 1]} : vector<16x4xf32> to vector<16x1xf32>
    %78 = arith.addf %75, %77 : vector<16x1xf32>
    %79 = vector.extract_strided_slice %20 {offsets = [2, 0], sizes = [1, 16], strides = [1, 1]} : vector<4x16xf32> to vector<1x16xf32>
    %80 = arith.addf %76, %79 : vector<1x16xf32>
    %81 = vector.broadcast %78 : vector<16x1xf32> to vector<16x16xf32>
    %82 = vector.broadcast %80 : vector<1x16xf32> to vector<16x16xf32>
    %83 = arith.addf %81, %82 : vector<16x16xf32>
    %cst_30 = arith.constant 0.000000e+00 : f32
    %84 = vector.broadcast %cst_30 : f32 to vector<16x16xf32>
    %85 = arith.cmpf ogt, %83, %84 : vector<16x16xf32>
    %cst_31 = arith.constant 2.000000e-01 : f32
    %86 = vector.broadcast %cst_31 : f32 to vector<16x16xf32>
    %87 = arith.mulf %86, %83 : vector<16x16xf32>
    %88 = arith.select %85, %83, %87 : vector<16x16xi1>, vector<16x16xf32>
    %89 = arith.addf %88, %1 : vector<16x16xf32>
    %cst_32 = arith.constant dense<0xFF800000> : vector<16xf32>
    %90 = vector.multi_reduction <maximumf>, %89, %cst_32 [1] : vector<16x16xf32> to vector<16xf32>
    %91 = vector.shape_cast %90 : vector<16xf32> to vector<16x1xf32>
    %92 = vector.broadcast %91 : vector<16x1xf32> to vector<16x16xf32>
    %93 = arith.subf %89, %92 : vector<16x16xf32>
    %94 = math.exp %93 : vector<16x16xf32>
    %cst_33 = arith.constant dense<0.000000e+00> : vector<16xf32>
    %95 = vector.multi_reduction <add>, %94, %cst_33 [1] : vector<16x16xf32> to vector<16xf32>
    %96 = vector.shape_cast %95 : vector<16xf32> to vector<16x1xf32>
    %97 = tpu.reciprocal %96 : vector<16x1xf32> -> vector<16x1xf32>
    %98 = vector.broadcast %97 : vector<16x1xf32> to vector<16x16xf32>
    %99 = arith.mulf %94, %98 : vector<16x16xf32>
    %100 = vector.extract_strided_slice %13 {offsets = [0, 16], sizes = [16, 8], strides = [1, 1]} : vector<16x64xf32> to vector<16x8xf32>
    %cst_34 = arith.constant dense<0.000000e+00> : vector<16x8xf32>
    %101 = tpu.matmul %99, %100, %cst_34 {dimension_numbers = #tpu.dot_dimension_numbers<[1], [0], [0], [1], [0, 0, 1, 1], [], []>} : vector<16x16xf32>, vector<16x8xf32>, vector<16x8xf32> -> vector<16x8xf32>
    %102 = vector.extract_strided_slice %15 {offsets = [0, 3], sizes = [16, 1], strides = [1, 1]} : vector<16x8xf32> to vector<16x1xf32>
    %103 = vector.extract_strided_slice %17 {offsets = [3, 0], sizes = [1, 16], strides = [1, 1]} : vector<8x16xf32> to vector<1x16xf32>
    %104 = vector.extract_strided_slice %19 {offsets = [0, 3], sizes = [16, 1], strides = [1, 1]} : vector<16x4xf32> to vector<16x1xf32>
    %105 = arith.addf %102, %104 : vector<16x1xf32>
    %106 = vector.extract_strided_slice %20 {offsets = [3, 0], sizes = [1, 16], strides = [1, 1]} : vector<4x16xf32> to vector<1x16xf32>
    %107 = arith.addf %103, %106 : vector<1x16xf32>
    %108 = vector.broadcast %105 : vector<16x1xf32> to vector<16x16xf32>
    %109 = vector.broadcast %107 : vector<1x16xf32> to vector<16x16xf32>
    %110 = arith.addf %108, %109 : vector<16x16xf32>
    %cst_35 = arith.constant 0.000000e+00 : f32
    %111 = vector.broadcast %cst_35 : f32 to vector<16x16xf32>
    %112 = arith.cmpf ogt, %110, %111 : vector<16x16xf32>
    %cst_36 = arith.constant 2.000000e-01 : f32
    %113 = vector.broadcast %cst_36 : f32 to vector<16x16xf32>
    %114 = arith.mulf %113, %110 : vector<16x16xf32>
    %115 = arith.select %112, %110, %114 : vector<16x16xi1>, vector<16x16xf32>
    %116 = arith.addf %115, %1 : vector<16x16xf32>
    %cst_37 = arith.constant dense<0xFF800000> : vector<16xf32>
    %117 = vector.multi_reduction <maximumf>, %116, %cst_37 [1] : vector<16x16xf32> to vector<16xf32>
    %118 = vector.shape_cast %117 : vector<16xf32> to vector<16x1xf32>
    %119 = vector.broadcast %118 : vector<16x1xf32> to vector<16x16xf32>
    %120 = arith.subf %116, %119 : vector<16x16xf32>
    %121 = math.exp %120 : vector<16x16xf32>
    %cst_38 = arith.constant dense<0.000000e+00> : vector<16xf32>
    %122 = vector.multi_reduction <add>, %121, %cst_38 [1] : vector<16x16xf32> to vector<16xf32>
    %123 = vector.shape_cast %122 : vector<16xf32> to vector<16x1xf32>
    %124 = tpu.reciprocal %123 : vector<16x1xf32> -> vector<16x1xf32>
    %125 = vector.broadcast %124 : vector<16x1xf32> to vector<16x16xf32>
    %126 = arith.mulf %121, %125 : vector<16x16xf32>
    %127 = vector.extract_strided_slice %13 {offsets = [0, 24], sizes = [16, 8], strides = [1, 1]} : vector<16x64xf32> to vector<16x8xf32>
    %cst_39 = arith.constant dense<0.000000e+00> : vector<16x8xf32>
    %128 = tpu.matmul %126, %127, %cst_39 {dimension_numbers = #tpu.dot_dimension_numbers<[1], [0], [0], [1], [0, 0, 1, 1], [], []>} : vector<16x16xf32>, vector<16x8xf32>, vector<16x8xf32> -> vector<16x8xf32>
    %129 = vector.extract_strided_slice %15 {offsets = [0, 4], sizes = [16, 1], strides = [1, 1]} : vector<16x8xf32> to vector<16x1xf32>
    %130 = vector.extract_strided_slice %17 {offsets = [4, 0], sizes = [1, 16], strides = [1, 1]} : vector<8x16xf32> to vector<1x16xf32>
    %131 = vector.broadcast %129 : vector<16x1xf32> to vector<16x16xf32>
    %132 = vector.broadcast %130 : vector<1x16xf32> to vector<16x16xf32>
    %133 = arith.addf %131, %132 : vector<16x16xf32>
    %cst_40 = arith.constant 0.000000e+00 : f32
    %134 = vector.broadcast %cst_40 : f32 to vector<16x16xf32>
    %135 = arith.cmpf ogt, %133, %134 : vector<16x16xf32>
    %cst_41 = arith.constant 2.000000e-01 : f32
    %136 = vector.broadcast %cst_41 : f32 to vector<16x16xf32>
    %137 = arith.mulf %136, %133 : vector<16x16xf32>
    %138 = arith.select %135, %133, %137 : vector<16x16xi1>, vector<16x16xf32>
    %139 = arith.addf %138, %1 : vector<16x16xf32>
    %cst_42 = arith.constant dense<0xFF800000> : vector<16xf32>
    %140 = vector.multi_reduction <maximumf>, %139, %cst_42 [1] : vector<16x16xf32> to vector<16xf32>
    %141 = vector.shape_cast %140 : vector<16xf32> to vector<16x1xf32>
    %142 = vector.broadcast %141 : vector<16x1xf32> to vector<16x16xf32>
    %143 = arith.subf %139, %142 : vector<16x16xf32>
    %144 = math.exp %143 : vector<16x16xf32>
    %cst_43 = arith.constant dense<0.000000e+00> : vector<16xf32>
    %145 = vector.multi_reduction <add>, %144, %cst_43 [1] : vector<16x16xf32> to vector<16xf32>
    %146 = vector.shape_cast %145 : vector<16xf32> to vector<16x1xf32>
    %147 = tpu.reciprocal %146 : vector<16x1xf32> -> vector<16x1xf32>
    %148 = vector.broadcast %147 : vector<16x1xf32> to vector<16x16xf32>
    %149 = arith.mulf %144, %148 : vector<16x16xf32>
    %150 = vector.extract_strided_slice %13 {offsets = [0, 32], sizes = [16, 8], strides = [1, 1]} : vector<16x64xf32> to vector<16x8xf32>
    %cst_44 = arith.constant dense<0.000000e+00> : vector<16x8xf32>
    %151 = tpu.matmul %149, %150, %cst_44 {dimension_numbers = #tpu.dot_dimension_numbers<[1], [0], [0], [1], [0, 0, 1, 1], [], []>} : vector<16x16xf32>, vector<16x8xf32>, vector<16x8xf32> -> vector<16x8xf32>
    %152 = vector.extract_strided_slice %15 {offsets = [0, 5], sizes = [16, 1], strides = [1, 1]} : vector<16x8xf32> to vector<16x1xf32>
    %153 = vector.extract_strided_slice %17 {offsets = [5, 0], sizes = [1, 16], strides = [1, 1]} : vector<8x16xf32> to vector<1x16xf32>
    %154 = vector.broadcast %152 : vector<16x1xf32> to vector<16x16xf32>
    %155 = vector.broadcast %153 : vector<1x16xf32> to vector<16x16xf32>
    %156 = arith.addf %154, %155 : vector<16x16xf32>
    %cst_45 = arith.constant 0.000000e+00 : f32
    %157 = vector.broadcast %cst_45 : f32 to vector<16x16xf32>
    %158 = arith.cmpf ogt, %156, %157 : vector<16x16xf32>
    %cst_46 = arith.constant 2.000000e-01 : f32
    %159 = vector.broadcast %cst_46 : f32 to vector<16x16xf32>
    %160 = arith.mulf %159, %156 : vector<16x16xf32>
    %161 = arith.select %158, %156, %160 : vector<16x16xi1>, vector<16x16xf32>
    %162 = arith.addf %161, %1 : vector<16x16xf32>
    %cst_47 = arith.constant dense<0xFF800000> : vector<16xf32>
    %163 = vector.multi_reduction <maximumf>, %162, %cst_47 [1] : vector<16x16xf32> to vector<16xf32>
    %164 = vector.shape_cast %163 : vector<16xf32> to vector<16x1xf32>
    %165 = vector.broadcast %164 : vector<16x1xf32> to vector<16x16xf32>
    %166 = arith.subf %162, %165 : vector<16x16xf32>
    %167 = math.exp %166 : vector<16x16xf32>
    %cst_48 = arith.constant dense<0.000000e+00> : vector<16xf32>
    %168 = vector.multi_reduction <add>, %167, %cst_48 [1] : vector<16x16xf32> to vector<16xf32>
    %169 = vector.shape_cast %168 : vector<16xf32> to vector<16x1xf32>
    %170 = tpu.reciprocal %169 : vector<16x1xf32> -> vector<16x1xf32>
    %171 = vector.broadcast %170 : vector<16x1xf32> to vector<16x16xf32>
    %172 = arith.mulf %167, %171 : vector<16x16xf32>
    %173 = vector.extract_strided_slice %13 {offsets = [0, 40], sizes = [16, 8], strides = [1, 1]} : vector<16x64xf32> to vector<16x8xf32>
    %cst_49 = arith.constant dense<0.000000e+00> : vector<16x8xf32>
    %174 = tpu.matmul %172, %173, %cst_49 {dimension_numbers = #tpu.dot_dimension_numbers<[1], [0], [0], [1], [0, 0, 1, 1], [], []>} : vector<16x16xf32>, vector<16x8xf32>, vector<16x8xf32> -> vector<16x8xf32>
    %175 = vector.extract_strided_slice %15 {offsets = [0, 6], sizes = [16, 1], strides = [1, 1]} : vector<16x8xf32> to vector<16x1xf32>
    %176 = vector.extract_strided_slice %17 {offsets = [6, 0], sizes = [1, 16], strides = [1, 1]} : vector<8x16xf32> to vector<1x16xf32>
    %177 = vector.broadcast %175 : vector<16x1xf32> to vector<16x16xf32>
    %178 = vector.broadcast %176 : vector<1x16xf32> to vector<16x16xf32>
    %179 = arith.addf %177, %178 : vector<16x16xf32>
    %cst_50 = arith.constant 0.000000e+00 : f32
    %180 = vector.broadcast %cst_50 : f32 to vector<16x16xf32>
    %181 = arith.cmpf ogt, %179, %180 : vector<16x16xf32>
    %cst_51 = arith.constant 2.000000e-01 : f32
    %182 = vector.broadcast %cst_51 : f32 to vector<16x16xf32>
    %183 = arith.mulf %182, %179 : vector<16x16xf32>
    %184 = arith.select %181, %179, %183 : vector<16x16xi1>, vector<16x16xf32>
    %185 = arith.addf %184, %1 : vector<16x16xf32>
    %cst_52 = arith.constant dense<0xFF800000> : vector<16xf32>
    %186 = vector.multi_reduction <maximumf>, %185, %cst_52 [1] : vector<16x16xf32> to vector<16xf32>
    %187 = vector.shape_cast %186 : vector<16xf32> to vector<16x1xf32>
    %188 = vector.broadcast %187 : vector<16x1xf32> to vector<16x16xf32>
    %189 = arith.subf %185, %188 : vector<16x16xf32>
    %190 = math.exp %189 : vector<16x16xf32>
    %cst_53 = arith.constant dense<0.000000e+00> : vector<16xf32>
    %191 = vector.multi_reduction <add>, %190, %cst_53 [1] : vector<16x16xf32> to vector<16xf32>
    %192 = vector.shape_cast %191 : vector<16xf32> to vector<16x1xf32>
    %193 = tpu.reciprocal %192 : vector<16x1xf32> -> vector<16x1xf32>
    %194 = vector.broadcast %193 : vector<16x1xf32> to vector<16x16xf32>
    %195 = arith.mulf %190, %194 : vector<16x16xf32>
    %196 = vector.extract_strided_slice %13 {offsets = [0, 48], sizes = [16, 8], strides = [1, 1]} : vector<16x64xf32> to vector<16x8xf32>
    %cst_54 = arith.constant dense<0.000000e+00> : vector<16x8xf32>
    %197 = tpu.matmul %195, %196, %cst_54 {dimension_numbers = #tpu.dot_dimension_numbers<[1], [0], [0], [1], [0, 0, 1, 1], [], []>} : vector<16x16xf32>, vector<16x8xf32>, vector<16x8xf32> -> vector<16x8xf32>
    %198 = vector.extract_strided_slice %15 {offsets = [0, 7], sizes = [16, 1], strides = [1, 1]} : vector<16x8xf32> to vector<16x1xf32>
    %199 = vector.extract_strided_slice %17 {offsets = [7, 0], sizes = [1, 16], strides = [1, 1]} : vector<8x16xf32> to vector<1x16xf32>
    %200 = vector.broadcast %198 : vector<16x1xf32> to vector<16x16xf32>
    %201 = vector.broadcast %199 : vector<1x16xf32> to vector<16x16xf32>
    %202 = arith.addf %200, %201 : vector<16x16xf32>
    %cst_55 = arith.constant 0.000000e+00 : f32
    %203 = vector.broadcast %cst_55 : f32 to vector<16x16xf32>
    %204 = arith.cmpf ogt, %202, %203 : vector<16x16xf32>
    %cst_56 = arith.constant 2.000000e-01 : f32
    %205 = vector.broadcast %cst_56 : f32 to vector<16x16xf32>
    %206 = arith.mulf %205, %202 : vector<16x16xf32>
    %207 = arith.select %204, %202, %206 : vector<16x16xi1>, vector<16x16xf32>
    %208 = arith.addf %207, %1 : vector<16x16xf32>
    %cst_57 = arith.constant dense<0xFF800000> : vector<16xf32>
    %209 = vector.multi_reduction <maximumf>, %208, %cst_57 [1] : vector<16x16xf32> to vector<16xf32>
    %210 = vector.shape_cast %209 : vector<16xf32> to vector<16x1xf32>
    %211 = vector.broadcast %210 : vector<16x1xf32> to vector<16x16xf32>
    %212 = arith.subf %208, %211 : vector<16x16xf32>
    %213 = math.exp %212 : vector<16x16xf32>
    %cst_58 = arith.constant dense<0.000000e+00> : vector<16xf32>
    %214 = vector.multi_reduction <add>, %213, %cst_58 [1] : vector<16x16xf32> to vector<16xf32>
    %215 = vector.shape_cast %214 : vector<16xf32> to vector<16x1xf32>
    %216 = tpu.reciprocal %215 : vector<16x1xf32> -> vector<16x1xf32>
    %217 = vector.broadcast %216 : vector<16x1xf32> to vector<16x16xf32>
    %218 = arith.mulf %213, %217 : vector<16x16xf32>
    %219 = vector.extract_strided_slice %13 {offsets = [0, 56], sizes = [16, 8], strides = [1, 1]} : vector<16x64xf32> to vector<16x8xf32>
    %cst_59 = arith.constant dense<0.000000e+00> : vector<16x8xf32>
    %220 = tpu.matmul %218, %219, %cst_59 {dimension_numbers = #tpu.dot_dimension_numbers<[1], [0], [0], [1], [0, 0, 1, 1], [], []>} : vector<16x16xf32>, vector<16x8xf32>, vector<16x8xf32> -> vector<16x8xf32>
    %221 = tpu.concatenate %47, %74, %101, %128, %151, %174, %197, %220 in 1 : vector<16x8xf32>, vector<16x8xf32>, vector<16x8xf32>, vector<16x8xf32>, vector<16x8xf32>, vector<16x8xf32>, vector<16x8xf32>, vector<16x8xf32> -> vector<16x64xf32>
    %c104 = arith.constant 104 : index
    %c0_60 = arith.constant 0 : index
    %222 = vector.load %arg4[%c104, %c0_60] : memref<448x64xf32, #tpu.memory_space<vmem>>, vector<64x32xf32>
    %cst_61 = arith.constant dense<0.000000e+00> : vector<16x32xf32>
    %223 = tpu.matmul %221, %222, %cst_61 {dimension_numbers = #tpu.dot_dimension_numbers<[1], [0], [0], [1], [0, 0, 1, 1], [], []>} : vector<16x64xf32>, vector<64x32xf32>, vector<16x32xf32> -> vector<16x32xf32>
    %c168 = arith.constant 168 : index
    %c0_62 = arith.constant 0 : index
    %224 = vector.load %arg4[%c168, %c0_62] : memref<448x64xf32, #tpu.memory_space<vmem>>, vector<1x32xf32>
    %225 = vector.broadcast %224 : vector<1x32xf32> to vector<16x32xf32>
    %226 = arith.addf %223, %225 : vector<16x32xf32>
    %227 = vector.extract_strided_slice %221 {offsets = [0, 32], sizes = [16, 32], strides = [1, 1]} : vector<16x64xf32> to vector<16x32xf32>
    %cst_63 = arith.constant dense<0.000000e+00> : vector<32x32xf32>
    %228 = tpu.matmul %227, %227, %cst_63 {dimension_numbers = #tpu.dot_dimension_numbers<[0], [0], [1], [1], [0, 1, 1, 1], [], []>} : vector<16x32xf32>, vector<16x32xf32>, vector<32x32xf32> -> vector<32x32xf32>
    %229 = arith.mulf %228, %9 : vector<32x32xf32>
    %cst_64 = arith.constant dense<0.000000e+00> : vector<32x4xf32>
    %230 = tpu.matmul %229, %10, %cst_64 {dimension_numbers = #tpu.dot_dimension_numbers<[1], [0], [0], [1], [0, 0, 1, 1], [], []>} : vector<32x32xf32>, vector<32x4xf32>, vector<32x4xf32> -> vector<32x4xf32>
    %cst_65 = arith.constant dense<0.000000e+00> : vector<4x4xf32>
    %231 = tpu.matmul %10, %230, %cst_65 {dimension_numbers = #tpu.dot_dimension_numbers<[0], [0], [1], [1], [0, 1, 1, 1], [], []>} : vector<32x4xf32>, vector<32x4xf32>, vector<4x4xf32> -> vector<4x4xf32>
    %232 = arith.mulf %231, %8 : vector<4x4xf32>
    %cst_66 = arith.constant dense<0.000000e+00> : vector<4xf32>
    %233 = vector.multi_reduction <add>, %232, %cst_66 [1] : vector<4x4xf32> to vector<4xf32>
    %234 = vector.shape_cast %233 : vector<4xf32> to vector<4x1xf32>
    %235 = arith.mulf %231, %8 : vector<4x4xf32>
    %cst_67 = arith.constant dense<0.000000e+00> : vector<4xf32>
    %236 = vector.multi_reduction <add>, %235, %cst_67 [0] : vector<4x4xf32> to vector<4xf32>
    %237 = vector.shape_cast %236 : vector<4xf32> to vector<1x4xf32>
    %238 = math.sqrt %234 : vector<4x1xf32>
    %cst_68 = arith.constant 9.99999993E-9 : f32
    %239 = vector.broadcast %cst_68 : f32 to vector<4x1xf32>
    %240 = arith.addf %238, %239 : vector<4x1xf32>
    %cst_69 = arith.constant 1.000000e+00 : f32
    %241 = vector.broadcast %cst_69 : f32 to vector<4x1xf32>
    %242 = arith.divf %241, %240 : vector<4x1xf32>
    %243 = math.sqrt %237 : vector<1x4xf32>
    %cst_70 = arith.constant 9.99999993E-9 : f32
    %244 = vector.broadcast %cst_70 : f32 to vector<1x4xf32>
    %245 = arith.addf %243, %244 : vector<1x4xf32>
    %cst_71 = arith.constant 1.000000e+00 : f32
    %246 = vector.broadcast %cst_71 : f32 to vector<1x4xf32>
    %247 = arith.divf %246, %245 : vector<1x4xf32>
    %248 = vector.broadcast %242 : vector<4x1xf32> to vector<4x4xf32>
    %249 = arith.mulf %231, %248 : vector<4x4xf32>
    %250 = vector.broadcast %247 : vector<1x4xf32> to vector<4x4xf32>
    %251 = arith.mulf %249, %250 : vector<4x4xf32>
    %252 = arith.subf %251, %8 : vector<4x4xf32>
    %253 = arith.mulf %252, %252 : vector<4x4xf32>
    %cst_72 = arith.constant dense<0.000000e+00> : vector<4xf32>
    %254 = vector.multi_reduction <add>, %253, %cst_72 [1] : vector<4x4xf32> to vector<4xf32>
    %255 = vector.shape_cast %254 : vector<4xf32> to vector<4x1xf32>
    %cst_73 = arith.constant dense<0.000000e+00> : vector<1xf32>
    %256 = vector.multi_reduction <add>, %255, %cst_73 [0] : vector<4x1xf32> to vector<1xf32>
    %257 = vector.shape_cast %256 : vector<1xf32> to vector<1x1xf32>
    %cst_74 = arith.constant 1.000000e-01 : f32
    %258 = vector.broadcast %cst_74 : f32 to vector<1x1xf32>
    %259 = arith.mulf %258, %257 : vector<1x1xf32>
    %cst_75 = arith.constant 1.200000e+01 : f32
    %260 = vector.broadcast %cst_75 : f32 to vector<1x1xf32>
    %261 = arith.divf %259, %260 : vector<1x1xf32>
    %c176 = arith.constant 176 : index
    %c0_76 = arith.constant 0 : index
    %262 = vector.load %arg4[%c176, %c0_76] : memref<448x64xf32, #tpu.memory_space<vmem>>, vector<1x32xf32>
    %c184 = arith.constant 184 : index
    %c0_77 = arith.constant 0 : index
    %263 = vector.load %arg4[%c184, %c0_77] : memref<448x64xf32, #tpu.memory_space<vmem>>, vector<1x32xf32>
    %cst_78 = arith.constant dense<0.000000e+00> : vector<32xf32>
    %264 = vector.multi_reduction <add>, %226, %cst_78 [0] : vector<16x32xf32> to vector<32xf32>
    %265 = vector.shape_cast %264 : vector<32xf32> to vector<1x32xf32>
    %cst_79 = arith.constant 1.600000e+01 : f32
    %266 = vector.broadcast %cst_79 : f32 to vector<1x32xf32>
    %267 = arith.divf %265, %266 : vector<1x32xf32>
    %268 = vector.broadcast %267 : vector<1x32xf32> to vector<16x32xf32>
    %269 = arith.subf %226, %268 : vector<16x32xf32>
    %270 = arith.mulf %269, %269 : vector<16x32xf32>
    %cst_80 = arith.constant dense<0.000000e+00> : vector<32xf32>
    %271 = vector.multi_reduction <add>, %270, %cst_80 [0] : vector<16x32xf32> to vector<32xf32>
    %272 = vector.shape_cast %271 : vector<32xf32> to vector<1x32xf32>
    %cst_81 = arith.constant 1.600000e+01 : f32
    %273 = vector.broadcast %cst_81 : f32 to vector<1x32xf32>
    %274 = arith.divf %272, %273 : vector<1x32xf32>
    %cst_82 = arith.constant 9.99999974E-6 : f32
    %275 = vector.broadcast %cst_82 : f32 to vector<1x32xf32>
    %276 = arith.addf %274, %275 : vector<1x32xf32>
    %277 = math.rsqrt %276 : vector<1x32xf32>
    %278 = vector.broadcast %277 : vector<1x32xf32> to vector<16x32xf32>
    %279 = arith.mulf %269, %278 : vector<16x32xf32>
    %280 = vector.broadcast %262 : vector<1x32xf32> to vector<16x32xf32>
    %281 = arith.mulf %279, %280 : vector<16x32xf32>
    %282 = vector.broadcast %263 : vector<1x32xf32> to vector<16x32xf32>
    %283 = arith.addf %281, %282 : vector<16x32xf32>
    %cst_83 = arith.constant 0.000000e+00 : f32
    %284 = vector.broadcast %cst_83 : f32 to vector<16x32xf32>
    %285 = arith.cmpf ogt, %283, %284 : vector<16x32xf32>
    %cst_84 = arith.constant 0.000000e+00 : f32
    %286 = vector.broadcast %cst_84 : f32 to vector<16x32xf32>
    %287 = arith.minimumf %283, %286 : vector<16x32xf32>
    %288 = math.exp %287 : vector<16x32xf32>
    %cst_85 = arith.constant 1.000000e+00 : f32
    %289 = vector.broadcast %cst_85 : f32 to vector<16x32xf32>
    %290 = arith.subf %288, %289 : vector<16x32xf32>
    %291 = arith.select %285, %283, %290 : vector<16x32xi1>, vector<16x32xf32>
    %c192 = arith.constant 192 : index
    %c0_86 = arith.constant 0 : index
    %292 = vector.load %arg4[%c192, %c0_86] : memref<448x64xf32, #tpu.memory_space<vmem>>, vector<32x64xf32>
    %cst_87 = arith.constant dense<0.000000e+00> : vector<16x64xf32>
    %293 = tpu.matmul %291, %292, %cst_87 {dimension_numbers = #tpu.dot_dimension_numbers<[1], [0], [0], [1], [0, 0, 1, 1], [], []>} : vector<16x32xf32>, vector<32x64xf32>, vector<16x64xf32> -> vector<16x64xf32>
    %c224 = arith.constant 224 : index
    %c0_88 = arith.constant 0 : index
    %294 = vector.load %arg4[%c224, %c0_88] : memref<448x64xf32, #tpu.memory_space<vmem>>, vector<8x64xf32>
    %cst_89 = arith.constant dense<0.000000e+00> : vector<16x8xf32>
    %295 = tpu.matmul %293, %294, %cst_89 {dimension_numbers = #tpu.dot_dimension_numbers<[1], [1], [0], [0], [0, 0, 1, 0], [], []>} : vector<16x64xf32>, vector<8x64xf32>, vector<16x8xf32> -> vector<16x8xf32>
    %c232 = arith.constant 232 : index
    %c0_90 = arith.constant 0 : index
    %296 = vector.load %arg4[%c232, %c0_90] : memref<448x64xf32, #tpu.memory_space<vmem>>, vector<8x64xf32>
    %cst_91 = arith.constant dense<0.000000e+00> : vector<8x16xf32>
    %297 = tpu.matmul %296, %293, %cst_91 {dimension_numbers = #tpu.dot_dimension_numbers<[1], [1], [0], [0], [0, 0, 1, 0], [], []>} : vector<8x64xf32>, vector<16x64xf32>, vector<8x16xf32> -> vector<8x16xf32>
    %c240 = arith.constant 240 : index
    %c0_92 = arith.constant 0 : index
    %298 = vector.load %arg4[%c240, %c0_92] : memref<448x64xf32, #tpu.memory_space<vmem>>, vector<4x2xf32>
    %cst_93 = arith.constant dense<0.000000e+00> : vector<16x4xf32>
    %299 = tpu.matmul %2, %298, %cst_93 {dimension_numbers = #tpu.dot_dimension_numbers<[1], [1], [0], [0], [0, 0, 1, 0], [], []>} : vector<16x2xf32>, vector<4x2xf32>, vector<16x4xf32> -> vector<16x4xf32>
    %cst_94 = arith.constant dense<0.000000e+00> : vector<4x16xf32>
    %300 = tpu.matmul %298, %2, %cst_94 {dimension_numbers = #tpu.dot_dimension_numbers<[1], [1], [0], [0], [0, 0, 1, 0], [], []>} : vector<4x2xf32>, vector<16x2xf32>, vector<4x16xf32> -> vector<4x16xf32>
    %301 = vector.extract_strided_slice %295 {offsets = [0, 0], sizes = [16, 1], strides = [1, 1]} : vector<16x8xf32> to vector<16x1xf32>
    %302 = vector.extract_strided_slice %297 {offsets = [0, 0], sizes = [1, 16], strides = [1, 1]} : vector<8x16xf32> to vector<1x16xf32>
    %303 = vector.extract_strided_slice %299 {offsets = [0, 0], sizes = [16, 1], strides = [1, 1]} : vector<16x4xf32> to vector<16x1xf32>
    %304 = arith.addf %301, %303 : vector<16x1xf32>
    %305 = vector.extract_strided_slice %300 {offsets = [0, 0], sizes = [1, 16], strides = [1, 1]} : vector<4x16xf32> to vector<1x16xf32>
    %306 = arith.addf %302, %305 : vector<1x16xf32>
    %307 = vector.broadcast %304 : vector<16x1xf32> to vector<16x16xf32>
    %308 = vector.broadcast %306 : vector<1x16xf32> to vector<16x16xf32>
    %309 = arith.addf %307, %308 : vector<16x16xf32>
    %cst_95 = arith.constant 0.000000e+00 : f32
    %310 = vector.broadcast %cst_95 : f32 to vector<16x16xf32>
    %311 = arith.cmpf ogt, %309, %310 : vector<16x16xf32>
    %cst_96 = arith.constant 2.000000e-01 : f32
    %312 = vector.broadcast %cst_96 : f32 to vector<16x16xf32>
    %313 = arith.mulf %312, %309 : vector<16x16xf32>
    %314 = arith.select %311, %309, %313 : vector<16x16xi1>, vector<16x16xf32>
    %315 = arith.addf %314, %1 : vector<16x16xf32>
    %cst_97 = arith.constant dense<0xFF800000> : vector<16xf32>
    %316 = vector.multi_reduction <maximumf>, %315, %cst_97 [1] : vector<16x16xf32> to vector<16xf32>
    %317 = vector.shape_cast %316 : vector<16xf32> to vector<16x1xf32>
    %318 = vector.broadcast %317 : vector<16x1xf32> to vector<16x16xf32>
    %319 = arith.subf %315, %318 : vector<16x16xf32>
    %320 = math.exp %319 : vector<16x16xf32>
    %cst_98 = arith.constant dense<0.000000e+00> : vector<16xf32>
    %321 = vector.multi_reduction <add>, %320, %cst_98 [1] : vector<16x16xf32> to vector<16xf32>
    %322 = vector.shape_cast %321 : vector<16xf32> to vector<16x1xf32>
    %323 = tpu.reciprocal %322 : vector<16x1xf32> -> vector<16x1xf32>
    %324 = vector.broadcast %323 : vector<16x1xf32> to vector<16x16xf32>
    %325 = arith.mulf %320, %324 : vector<16x16xf32>
    %326 = vector.extract_strided_slice %293 {offsets = [0, 0], sizes = [16, 8], strides = [1, 1]} : vector<16x64xf32> to vector<16x8xf32>
    %cst_99 = arith.constant dense<0.000000e+00> : vector<16x8xf32>
    %327 = tpu.matmul %325, %326, %cst_99 {dimension_numbers = #tpu.dot_dimension_numbers<[1], [0], [0], [1], [0, 0, 1, 1], [], []>} : vector<16x16xf32>, vector<16x8xf32>, vector<16x8xf32> -> vector<16x8xf32>
    %328 = vector.extract_strided_slice %295 {offsets = [0, 1], sizes = [16, 1], strides = [1, 1]} : vector<16x8xf32> to vector<16x1xf32>
    %329 = vector.extract_strided_slice %297 {offsets = [1, 0], sizes = [1, 16], strides = [1, 1]} : vector<8x16xf32> to vector<1x16xf32>
    %330 = vector.extract_strided_slice %299 {offsets = [0, 1], sizes = [16, 1], strides = [1, 1]} : vector<16x4xf32> to vector<16x1xf32>
    %331 = arith.addf %328, %330 : vector<16x1xf32>
    %332 = vector.extract_strided_slice %300 {offsets = [1, 0], sizes = [1, 16], strides = [1, 1]} : vector<4x16xf32> to vector<1x16xf32>
    %333 = arith.addf %329, %332 : vector<1x16xf32>
    %334 = vector.broadcast %331 : vector<16x1xf32> to vector<16x16xf32>
    %335 = vector.broadcast %333 : vector<1x16xf32> to vector<16x16xf32>
    %336 = arith.addf %334, %335 : vector<16x16xf32>
    %cst_100 = arith.constant 0.000000e+00 : f32
    %337 = vector.broadcast %cst_100 : f32 to vector<16x16xf32>
    %338 = arith.cmpf ogt, %336, %337 : vector<16x16xf32>
    %cst_101 = arith.constant 2.000000e-01 : f32
    %339 = vector.broadcast %cst_101 : f32 to vector<16x16xf32>
    %340 = arith.mulf %339, %336 : vector<16x16xf32>
    %341 = arith.select %338, %336, %340 : vector<16x16xi1>, vector<16x16xf32>
    %342 = arith.addf %341, %1 : vector<16x16xf32>
    %cst_102 = arith.constant dense<0xFF800000> : vector<16xf32>
    %343 = vector.multi_reduction <maximumf>, %342, %cst_102 [1] : vector<16x16xf32> to vector<16xf32>
    %344 = vector.shape_cast %343 : vector<16xf32> to vector<16x1xf32>
    %345 = vector.broadcast %344 : vector<16x1xf32> to vector<16x16xf32>
    %346 = arith.subf %342, %345 : vector<16x16xf32>
    %347 = math.exp %346 : vector<16x16xf32>
    %cst_103 = arith.constant dense<0.000000e+00> : vector<16xf32>
    %348 = vector.multi_reduction <add>, %347, %cst_103 [1] : vector<16x16xf32> to vector<16xf32>
    %349 = vector.shape_cast %348 : vector<16xf32> to vector<16x1xf32>
    %350 = tpu.reciprocal %349 : vector<16x1xf32> -> vector<16x1xf32>
    %351 = vector.broadcast %350 : vector<16x1xf32> to vector<16x16xf32>
    %352 = arith.mulf %347, %351 : vector<16x16xf32>
    %353 = vector.extract_strided_slice %293 {offsets = [0, 8], sizes = [16, 8], strides = [1, 1]} : vector<16x64xf32> to vector<16x8xf32>
    %cst_104 = arith.constant dense<0.000000e+00> : vector<16x8xf32>
    %354 = tpu.matmul %352, %353, %cst_104 {dimension_numbers = #tpu.dot_dimension_numbers<[1], [0], [0], [1], [0, 0, 1, 1], [], []>} : vector<16x16xf32>, vector<16x8xf32>, vector<16x8xf32> -> vector<16x8xf32>
    %355 = vector.extract_strided_slice %295 {offsets = [0, 2], sizes = [16, 1], strides = [1, 1]} : vector<16x8xf32> to vector<16x1xf32>
    %356 = vector.extract_strided_slice %297 {offsets = [2, 0], sizes = [1, 16], strides = [1, 1]} : vector<8x16xf32> to vector<1x16xf32>
    %357 = vector.extract_strided_slice %299 {offsets = [0, 2], sizes = [16, 1], strides = [1, 1]} : vector<16x4xf32> to vector<16x1xf32>
    %358 = arith.addf %355, %357 : vector<16x1xf32>
    %359 = vector.extract_strided_slice %300 {offsets = [2, 0], sizes = [1, 16], strides = [1, 1]} : vector<4x16xf32> to vector<1x16xf32>
    %360 = arith.addf %356, %359 : vector<1x16xf32>
    %361 = vector.broadcast %358 : vector<16x1xf32> to vector<16x16xf32>
    %362 = vector.broadcast %360 : vector<1x16xf32> to vector<16x16xf32>
    %363 = arith.addf %361, %362 : vector<16x16xf32>
    %cst_105 = arith.constant 0.000000e+00 : f32
    %364 = vector.broadcast %cst_105 : f32 to vector<16x16xf32>
    %365 = arith.cmpf ogt, %363, %364 : vector<16x16xf32>
    %cst_106 = arith.constant 2.000000e-01 : f32
    %366 = vector.broadcast %cst_106 : f32 to vector<16x16xf32>
    %367 = arith.mulf %366, %363 : vector<16x16xf32>
    %368 = arith.select %365, %363, %367 : vector<16x16xi1>, vector<16x16xf32>
    %369 = arith.addf %368, %1 : vector<16x16xf32>
    %cst_107 = arith.constant dense<0xFF800000> : vector<16xf32>
    %370 = vector.multi_reduction <maximumf>, %369, %cst_107 [1] : vector<16x16xf32> to vector<16xf32>
    %371 = vector.shape_cast %370 : vector<16xf32> to vector<16x1xf32>
    %372 = vector.broadcast %371 : vector<16x1xf32> to vector<16x16xf32>
    %373 = arith.subf %369, %372 : vector<16x16xf32>
    %374 = math.exp %373 : vector<16x16xf32>
    %cst_108 = arith.constant dense<0.000000e+00> : vector<16xf32>
    %375 = vector.multi_reduction <add>, %374, %cst_108 [1] : vector<16x16xf32> to vector<16xf32>
    %376 = vector.shape_cast %375 : vector<16xf32> to vector<16x1xf32>
    %377 = tpu.reciprocal %376 : vector<16x1xf32> -> vector<16x1xf32>
    %378 = vector.broadcast %377 : vector<16x1xf32> to vector<16x16xf32>
    %379 = arith.mulf %374, %378 : vector<16x16xf32>
    %380 = vector.extract_strided_slice %293 {offsets = [0, 16], sizes = [16, 8], strides = [1, 1]} : vector<16x64xf32> to vector<16x8xf32>
    %cst_109 = arith.constant dense<0.000000e+00> : vector<16x8xf32>
    %381 = tpu.matmul %379, %380, %cst_109 {dimension_numbers = #tpu.dot_dimension_numbers<[1], [0], [0], [1], [0, 0, 1, 1], [], []>} : vector<16x16xf32>, vector<16x8xf32>, vector<16x8xf32> -> vector<16x8xf32>
    %382 = vector.extract_strided_slice %295 {offsets = [0, 3], sizes = [16, 1], strides = [1, 1]} : vector<16x8xf32> to vector<16x1xf32>
    %383 = vector.extract_strided_slice %297 {offsets = [3, 0], sizes = [1, 16], strides = [1, 1]} : vector<8x16xf32> to vector<1x16xf32>
    %384 = vector.extract_strided_slice %299 {offsets = [0, 3], sizes = [16, 1], strides = [1, 1]} : vector<16x4xf32> to vector<16x1xf32>
    %385 = arith.addf %382, %384 : vector<16x1xf32>
    %386 = vector.extract_strided_slice %300 {offsets = [3, 0], sizes = [1, 16], strides = [1, 1]} : vector<4x16xf32> to vector<1x16xf32>
    %387 = arith.addf %383, %386 : vector<1x16xf32>
    %388 = vector.broadcast %385 : vector<16x1xf32> to vector<16x16xf32>
    %389 = vector.broadcast %387 : vector<1x16xf32> to vector<16x16xf32>
    %390 = arith.addf %388, %389 : vector<16x16xf32>
    %cst_110 = arith.constant 0.000000e+00 : f32
    %391 = vector.broadcast %cst_110 : f32 to vector<16x16xf32>
    %392 = arith.cmpf ogt, %390, %391 : vector<16x16xf32>
    %cst_111 = arith.constant 2.000000e-01 : f32
    %393 = vector.broadcast %cst_111 : f32 to vector<16x16xf32>
    %394 = arith.mulf %393, %390 : vector<16x16xf32>
    %395 = arith.select %392, %390, %394 : vector<16x16xi1>, vector<16x16xf32>
    %396 = arith.addf %395, %1 : vector<16x16xf32>
    %cst_112 = arith.constant dense<0xFF800000> : vector<16xf32>
    %397 = vector.multi_reduction <maximumf>, %396, %cst_112 [1] : vector<16x16xf32> to vector<16xf32>
    %398 = vector.shape_cast %397 : vector<16xf32> to vector<16x1xf32>
    %399 = vector.broadcast %398 : vector<16x1xf32> to vector<16x16xf32>
    %400 = arith.subf %396, %399 : vector<16x16xf32>
    %401 = math.exp %400 : vector<16x16xf32>
    %cst_113 = arith.constant dense<0.000000e+00> : vector<16xf32>
    %402 = vector.multi_reduction <add>, %401, %cst_113 [1] : vector<16x16xf32> to vector<16xf32>
    %403 = vector.shape_cast %402 : vector<16xf32> to vector<16x1xf32>
    %404 = tpu.reciprocal %403 : vector<16x1xf32> -> vector<16x1xf32>
    %405 = vector.broadcast %404 : vector<16x1xf32> to vector<16x16xf32>
    %406 = arith.mulf %401, %405 : vector<16x16xf32>
    %407 = vector.extract_strided_slice %293 {offsets = [0, 24], sizes = [16, 8], strides = [1, 1]} : vector<16x64xf32> to vector<16x8xf32>
    %cst_114 = arith.constant dense<0.000000e+00> : vector<16x8xf32>
    %408 = tpu.matmul %406, %407, %cst_114 {dimension_numbers = #tpu.dot_dimension_numbers<[1], [0], [0], [1], [0, 0, 1, 1], [], []>} : vector<16x16xf32>, vector<16x8xf32>, vector<16x8xf32> -> vector<16x8xf32>
    %409 = vector.extract_strided_slice %295 {offsets = [0, 4], sizes = [16, 1], strides = [1, 1]} : vector<16x8xf32> to vector<16x1xf32>
    %410 = vector.extract_strided_slice %297 {offsets = [4, 0], sizes = [1, 16], strides = [1, 1]} : vector<8x16xf32> to vector<1x16xf32>
    %411 = vector.broadcast %409 : vector<16x1xf32> to vector<16x16xf32>
    %412 = vector.broadcast %410 : vector<1x16xf32> to vector<16x16xf32>
    %413 = arith.addf %411, %412 : vector<16x16xf32>
    %cst_115 = arith.constant 0.000000e+00 : f32
    %414 = vector.broadcast %cst_115 : f32 to vector<16x16xf32>
    %415 = arith.cmpf ogt, %413, %414 : vector<16x16xf32>
    %cst_116 = arith.constant 2.000000e-01 : f32
    %416 = vector.broadcast %cst_116 : f32 to vector<16x16xf32>
    %417 = arith.mulf %416, %413 : vector<16x16xf32>
    %418 = arith.select %415, %413, %417 : vector<16x16xi1>, vector<16x16xf32>
    %419 = arith.addf %418, %1 : vector<16x16xf32>
    %cst_117 = arith.constant dense<0xFF800000> : vector<16xf32>
    %420 = vector.multi_reduction <maximumf>, %419, %cst_117 [1] : vector<16x16xf32> to vector<16xf32>
    %421 = vector.shape_cast %420 : vector<16xf32> to vector<16x1xf32>
    %422 = vector.broadcast %421 : vector<16x1xf32> to vector<16x16xf32>
    %423 = arith.subf %419, %422 : vector<16x16xf32>
    %424 = math.exp %423 : vector<16x16xf32>
    %cst_118 = arith.constant dense<0.000000e+00> : vector<16xf32>
    %425 = vector.multi_reduction <add>, %424, %cst_118 [1] : vector<16x16xf32> to vector<16xf32>
    %426 = vector.shape_cast %425 : vector<16xf32> to vector<16x1xf32>
    %427 = tpu.reciprocal %426 : vector<16x1xf32> -> vector<16x1xf32>
    %428 = vector.broadcast %427 : vector<16x1xf32> to vector<16x16xf32>
    %429 = arith.mulf %424, %428 : vector<16x16xf32>
    %430 = vector.extract_strided_slice %293 {offsets = [0, 32], sizes = [16, 8], strides = [1, 1]} : vector<16x64xf32> to vector<16x8xf32>
    %cst_119 = arith.constant dense<0.000000e+00> : vector<16x8xf32>
    %431 = tpu.matmul %429, %430, %cst_119 {dimension_numbers = #tpu.dot_dimension_numbers<[1], [0], [0], [1], [0, 0, 1, 1], [], []>} : vector<16x16xf32>, vector<16x8xf32>, vector<16x8xf32> -> vector<16x8xf32>
    %432 = vector.extract_strided_slice %295 {offsets = [0, 5], sizes = [16, 1], strides = [1, 1]} : vector<16x8xf32> to vector<16x1xf32>
    %433 = vector.extract_strided_slice %297 {offsets = [5, 0], sizes = [1, 16], strides = [1, 1]} : vector<8x16xf32> to vector<1x16xf32>
    %434 = vector.broadcast %432 : vector<16x1xf32> to vector<16x16xf32>
    %435 = vector.broadcast %433 : vector<1x16xf32> to vector<16x16xf32>
    %436 = arith.addf %434, %435 : vector<16x16xf32>
    %cst_120 = arith.constant 0.000000e+00 : f32
    %437 = vector.broadcast %cst_120 : f32 to vector<16x16xf32>
    %438 = arith.cmpf ogt, %436, %437 : vector<16x16xf32>
    %cst_121 = arith.constant 2.000000e-01 : f32
    %439 = vector.broadcast %cst_121 : f32 to vector<16x16xf32>
    %440 = arith.mulf %439, %436 : vector<16x16xf32>
    %441 = arith.select %438, %436, %440 : vector<16x16xi1>, vector<16x16xf32>
    %442 = arith.addf %441, %1 : vector<16x16xf32>
    %cst_122 = arith.constant dense<0xFF800000> : vector<16xf32>
    %443 = vector.multi_reduction <maximumf>, %442, %cst_122 [1] : vector<16x16xf32> to vector<16xf32>
    %444 = vector.shape_cast %443 : vector<16xf32> to vector<16x1xf32>
    %445 = vector.broadcast %444 : vector<16x1xf32> to vector<16x16xf32>
    %446 = arith.subf %442, %445 : vector<16x16xf32>
    %447 = math.exp %446 : vector<16x16xf32>
    %cst_123 = arith.constant dense<0.000000e+00> : vector<16xf32>
    %448 = vector.multi_reduction <add>, %447, %cst_123 [1] : vector<16x16xf32> to vector<16xf32>
    %449 = vector.shape_cast %448 : vector<16xf32> to vector<16x1xf32>
    %450 = tpu.reciprocal %449 : vector<16x1xf32> -> vector<16x1xf32>
    %451 = vector.broadcast %450 : vector<16x1xf32> to vector<16x16xf32>
    %452 = arith.mulf %447, %451 : vector<16x16xf32>
    %453 = vector.extract_strided_slice %293 {offsets = [0, 40], sizes = [16, 8], strides = [1, 1]} : vector<16x64xf32> to vector<16x8xf32>
    %cst_124 = arith.constant dense<0.000000e+00> : vector<16x8xf32>
    %454 = tpu.matmul %452, %453, %cst_124 {dimension_numbers = #tpu.dot_dimension_numbers<[1], [0], [0], [1], [0, 0, 1, 1], [], []>} : vector<16x16xf32>, vector<16x8xf32>, vector<16x8xf32> -> vector<16x8xf32>
    %455 = vector.extract_strided_slice %295 {offsets = [0, 6], sizes = [16, 1], strides = [1, 1]} : vector<16x8xf32> to vector<16x1xf32>
    %456 = vector.extract_strided_slice %297 {offsets = [6, 0], sizes = [1, 16], strides = [1, 1]} : vector<8x16xf32> to vector<1x16xf32>
    %457 = vector.broadcast %455 : vector<16x1xf32> to vector<16x16xf32>
    %458 = vector.broadcast %456 : vector<1x16xf32> to vector<16x16xf32>
    %459 = arith.addf %457, %458 : vector<16x16xf32>
    %cst_125 = arith.constant 0.000000e+00 : f32
    %460 = vector.broadcast %cst_125 : f32 to vector<16x16xf32>
    %461 = arith.cmpf ogt, %459, %460 : vector<16x16xf32>
    %cst_126 = arith.constant 2.000000e-01 : f32
    %462 = vector.broadcast %cst_126 : f32 to vector<16x16xf32>
    %463 = arith.mulf %462, %459 : vector<16x16xf32>
    %464 = arith.select %461, %459, %463 : vector<16x16xi1>, vector<16x16xf32>
    %465 = arith.addf %464, %1 : vector<16x16xf32>
    %cst_127 = arith.constant dense<0xFF800000> : vector<16xf32>
    %466 = vector.multi_reduction <maximumf>, %465, %cst_127 [1] : vector<16x16xf32> to vector<16xf32>
    %467 = vector.shape_cast %466 : vector<16xf32> to vector<16x1xf32>
    %468 = vector.broadcast %467 : vector<16x1xf32> to vector<16x16xf32>
    %469 = arith.subf %465, %468 : vector<16x16xf32>
    %470 = math.exp %469 : vector<16x16xf32>
    %cst_128 = arith.constant dense<0.000000e+00> : vector<16xf32>
    %471 = vector.multi_reduction <add>, %470, %cst_128 [1] : vector<16x16xf32> to vector<16xf32>
    %472 = vector.shape_cast %471 : vector<16xf32> to vector<16x1xf32>
    %473 = tpu.reciprocal %472 : vector<16x1xf32> -> vector<16x1xf32>
    %474 = vector.broadcast %473 : vector<16x1xf32> to vector<16x16xf32>
    %475 = arith.mulf %470, %474 : vector<16x16xf32>
    %476 = vector.extract_strided_slice %293 {offsets = [0, 48], sizes = [16, 8], strides = [1, 1]} : vector<16x64xf32> to vector<16x8xf32>
    %cst_129 = arith.constant dense<0.000000e+00> : vector<16x8xf32>
    %477 = tpu.matmul %475, %476, %cst_129 {dimension_numbers = #tpu.dot_dimension_numbers<[1], [0], [0], [1], [0, 0, 1, 1], [], []>} : vector<16x16xf32>, vector<16x8xf32>, vector<16x8xf32> -> vector<16x8xf32>
    %478 = vector.extract_strided_slice %295 {offsets = [0, 7], sizes = [16, 1], strides = [1, 1]} : vector<16x8xf32> to vector<16x1xf32>
    %479 = vector.extract_strided_slice %297 {offsets = [7, 0], sizes = [1, 16], strides = [1, 1]} : vector<8x16xf32> to vector<1x16xf32>
    %480 = vector.broadcast %478 : vector<16x1xf32> to vector<16x16xf32>
    %481 = vector.broadcast %479 : vector<1x16xf32> to vector<16x16xf32>
    %482 = arith.addf %480, %481 : vector<16x16xf32>
    %cst_130 = arith.constant 0.000000e+00 : f32
    %483 = vector.broadcast %cst_130 : f32 to vector<16x16xf32>
    %484 = arith.cmpf ogt, %482, %483 : vector<16x16xf32>
    %cst_131 = arith.constant 2.000000e-01 : f32
    %485 = vector.broadcast %cst_131 : f32 to vector<16x16xf32>
    %486 = arith.mulf %485, %482 : vector<16x16xf32>
    %487 = arith.select %484, %482, %486 : vector<16x16xi1>, vector<16x16xf32>
    %488 = arith.addf %487, %1 : vector<16x16xf32>
    %cst_132 = arith.constant dense<0xFF800000> : vector<16xf32>
    %489 = vector.multi_reduction <maximumf>, %488, %cst_132 [1] : vector<16x16xf32> to vector<16xf32>
    %490 = vector.shape_cast %489 : vector<16xf32> to vector<16x1xf32>
    %491 = vector.broadcast %490 : vector<16x1xf32> to vector<16x16xf32>
    %492 = arith.subf %488, %491 : vector<16x16xf32>
    %493 = math.exp %492 : vector<16x16xf32>
    %cst_133 = arith.constant dense<0.000000e+00> : vector<16xf32>
    %494 = vector.multi_reduction <add>, %493, %cst_133 [1] : vector<16x16xf32> to vector<16xf32>
    %495 = vector.shape_cast %494 : vector<16xf32> to vector<16x1xf32>
    %496 = tpu.reciprocal %495 : vector<16x1xf32> -> vector<16x1xf32>
    %497 = vector.broadcast %496 : vector<16x1xf32> to vector<16x16xf32>
    %498 = arith.mulf %493, %497 : vector<16x16xf32>
    %499 = vector.extract_strided_slice %293 {offsets = [0, 56], sizes = [16, 8], strides = [1, 1]} : vector<16x64xf32> to vector<16x8xf32>
    %cst_134 = arith.constant dense<0.000000e+00> : vector<16x8xf32>
    %500 = tpu.matmul %498, %499, %cst_134 {dimension_numbers = #tpu.dot_dimension_numbers<[1], [0], [0], [1], [0, 0, 1, 1], [], []>} : vector<16x16xf32>, vector<16x8xf32>, vector<16x8xf32> -> vector<16x8xf32>
    %501 = tpu.concatenate %327, %354, %381, %408, %431, %454, %477, %500 in 1 : vector<16x8xf32>, vector<16x8xf32>, vector<16x8xf32>, vector<16x8xf32>, vector<16x8xf32>, vector<16x8xf32>, vector<16x8xf32>, vector<16x8xf32> -> vector<16x64xf32>
    %c248 = arith.constant 248 : index
    %c0_135 = arith.constant 0 : index
    %502 = vector.load %arg4[%c248, %c0_135] : memref<448x64xf32, #tpu.memory_space<vmem>>, vector<64x32xf32>
    %cst_136 = arith.constant dense<0.000000e+00> : vector<16x32xf32>
    %503 = tpu.matmul %501, %502, %cst_136 {dimension_numbers = #tpu.dot_dimension_numbers<[1], [0], [0], [1], [0, 0, 1, 1], [], []>} : vector<16x64xf32>, vector<64x32xf32>, vector<16x32xf32> -> vector<16x32xf32>
    %c312 = arith.constant 312 : index
    %c0_137 = arith.constant 0 : index
    %504 = vector.load %arg4[%c312, %c0_137] : memref<448x64xf32, #tpu.memory_space<vmem>>, vector<1x32xf32>
    %505 = vector.broadcast %504 : vector<1x32xf32> to vector<16x32xf32>
    %506 = arith.addf %503, %505 : vector<16x32xf32>
    %507 = vector.extract_strided_slice %501 {offsets = [0, 32], sizes = [16, 32], strides = [1, 1]} : vector<16x64xf32> to vector<16x32xf32>
    %cst_138 = arith.constant dense<0.000000e+00> : vector<32x32xf32>
    %508 = tpu.matmul %507, %507, %cst_138 {dimension_numbers = #tpu.dot_dimension_numbers<[0], [0], [1], [1], [0, 1, 1, 1], [], []>} : vector<16x32xf32>, vector<16x32xf32>, vector<32x32xf32> -> vector<32x32xf32>
    %509 = arith.mulf %508, %9 : vector<32x32xf32>
    %cst_139 = arith.constant dense<0.000000e+00> : vector<32x4xf32>
    %510 = tpu.matmul %509, %10, %cst_139 {dimension_numbers = #tpu.dot_dimension_numbers<[1], [0], [0], [1], [0, 0, 1, 1], [], []>} : vector<32x32xf32>, vector<32x4xf32>, vector<32x4xf32> -> vector<32x4xf32>
    %cst_140 = arith.constant dense<0.000000e+00> : vector<4x4xf32>
    %511 = tpu.matmul %10, %510, %cst_140 {dimension_numbers = #tpu.dot_dimension_numbers<[0], [0], [1], [1], [0, 1, 1, 1], [], []>} : vector<32x4xf32>, vector<32x4xf32>, vector<4x4xf32> -> vector<4x4xf32>
    %512 = arith.mulf %511, %8 : vector<4x4xf32>
    %cst_141 = arith.constant dense<0.000000e+00> : vector<4xf32>
    %513 = vector.multi_reduction <add>, %512, %cst_141 [1] : vector<4x4xf32> to vector<4xf32>
    %514 = vector.shape_cast %513 : vector<4xf32> to vector<4x1xf32>
    %515 = arith.mulf %511, %8 : vector<4x4xf32>
    %cst_142 = arith.constant dense<0.000000e+00> : vector<4xf32>
    %516 = vector.multi_reduction <add>, %515, %cst_142 [0] : vector<4x4xf32> to vector<4xf32>
    %517 = vector.shape_cast %516 : vector<4xf32> to vector<1x4xf32>
    %518 = math.sqrt %514 : vector<4x1xf32>
    %cst_143 = arith.constant 9.99999993E-9 : f32
    %519 = vector.broadcast %cst_143 : f32 to vector<4x1xf32>
    %520 = arith.addf %518, %519 : vector<4x1xf32>
    %cst_144 = arith.constant 1.000000e+00 : f32
    %521 = vector.broadcast %cst_144 : f32 to vector<4x1xf32>
    %522 = arith.divf %521, %520 : vector<4x1xf32>
    %523 = math.sqrt %517 : vector<1x4xf32>
    %cst_145 = arith.constant 9.99999993E-9 : f32
    %524 = vector.broadcast %cst_145 : f32 to vector<1x4xf32>
    %525 = arith.addf %523, %524 : vector<1x4xf32>
    %cst_146 = arith.constant 1.000000e+00 : f32
    %526 = vector.broadcast %cst_146 : f32 to vector<1x4xf32>
    %527 = arith.divf %526, %525 : vector<1x4xf32>
    %528 = vector.broadcast %522 : vector<4x1xf32> to vector<4x4xf32>
    %529 = arith.mulf %511, %528 : vector<4x4xf32>
    %530 = vector.broadcast %527 : vector<1x4xf32> to vector<4x4xf32>
    %531 = arith.mulf %529, %530 : vector<4x4xf32>
    %532 = arith.subf %531, %8 : vector<4x4xf32>
    %533 = arith.mulf %532, %532 : vector<4x4xf32>
    %cst_147 = arith.constant dense<0.000000e+00> : vector<4xf32>
    %534 = vector.multi_reduction <add>, %533, %cst_147 [1] : vector<4x4xf32> to vector<4xf32>
    %535 = vector.shape_cast %534 : vector<4xf32> to vector<4x1xf32>
    %cst_148 = arith.constant dense<0.000000e+00> : vector<1xf32>
    %536 = vector.multi_reduction <add>, %535, %cst_148 [0] : vector<4x1xf32> to vector<1xf32>
    %537 = vector.shape_cast %536 : vector<1xf32> to vector<1x1xf32>
    %cst_149 = arith.constant 1.000000e-01 : f32
    %538 = vector.broadcast %cst_149 : f32 to vector<1x1xf32>
    %539 = arith.mulf %538, %537 : vector<1x1xf32>
    %cst_150 = arith.constant 1.200000e+01 : f32
    %540 = vector.broadcast %cst_150 : f32 to vector<1x1xf32>
    %541 = arith.divf %539, %540 : vector<1x1xf32>
    %c336 = arith.constant 336 : index
    %c0_151 = arith.constant 0 : index
    %542 = vector.load %arg4[%c336, %c0_151] : memref<448x64xf32, #tpu.memory_space<vmem>>, vector<32x32xf32>
    %cst_152 = arith.constant dense<0.000000e+00> : vector<16x32xf32>
    %543 = tpu.matmul %291, %542, %cst_152 {dimension_numbers = #tpu.dot_dimension_numbers<[1], [0], [0], [1], [0, 0, 1, 1], [], []>} : vector<16x32xf32>, vector<32x32xf32>, vector<16x32xf32> -> vector<16x32xf32>
    %c368 = arith.constant 368 : index
    %c0_153 = arith.constant 0 : index
    %544 = vector.load %arg4[%c368, %c0_153] : memref<448x64xf32, #tpu.memory_space<vmem>>, vector<1x32xf32>
    %545 = vector.broadcast %544 : vector<1x32xf32> to vector<16x32xf32>
    %546 = arith.addf %543, %545 : vector<16x32xf32>
    %c320 = arith.constant 320 : index
    %c0_154 = arith.constant 0 : index
    %547 = vector.load %arg4[%c320, %c0_154] : memref<448x64xf32, #tpu.memory_space<vmem>>, vector<1x32xf32>
    %c328 = arith.constant 328 : index
    %c0_155 = arith.constant 0 : index
    %548 = vector.load %arg4[%c328, %c0_155] : memref<448x64xf32, #tpu.memory_space<vmem>>, vector<1x32xf32>
    %cst_156 = arith.constant dense<0.000000e+00> : vector<32xf32>
    %549 = vector.multi_reduction <add>, %506, %cst_156 [0] : vector<16x32xf32> to vector<32xf32>
    %550 = vector.shape_cast %549 : vector<32xf32> to vector<1x32xf32>
    %cst_157 = arith.constant 1.600000e+01 : f32
    %551 = vector.broadcast %cst_157 : f32 to vector<1x32xf32>
    %552 = arith.divf %550, %551 : vector<1x32xf32>
    %553 = vector.broadcast %552 : vector<1x32xf32> to vector<16x32xf32>
    %554 = arith.subf %506, %553 : vector<16x32xf32>
    %555 = arith.mulf %554, %554 : vector<16x32xf32>
    %cst_158 = arith.constant dense<0.000000e+00> : vector<32xf32>
    %556 = vector.multi_reduction <add>, %555, %cst_158 [0] : vector<16x32xf32> to vector<32xf32>
    %557 = vector.shape_cast %556 : vector<32xf32> to vector<1x32xf32>
    %cst_159 = arith.constant 1.600000e+01 : f32
    %558 = vector.broadcast %cst_159 : f32 to vector<1x32xf32>
    %559 = arith.divf %557, %558 : vector<1x32xf32>
    %cst_160 = arith.constant 9.99999974E-6 : f32
    %560 = vector.broadcast %cst_160 : f32 to vector<1x32xf32>
    %561 = arith.addf %559, %560 : vector<1x32xf32>
    %562 = math.rsqrt %561 : vector<1x32xf32>
    %563 = vector.broadcast %562 : vector<1x32xf32> to vector<16x32xf32>
    %564 = arith.mulf %554, %563 : vector<16x32xf32>
    %565 = vector.broadcast %547 : vector<1x32xf32> to vector<16x32xf32>
    %566 = arith.mulf %564, %565 : vector<16x32xf32>
    %567 = vector.broadcast %548 : vector<1x32xf32> to vector<16x32xf32>
    %568 = arith.addf %566, %567 : vector<16x32xf32>
    %cst_161 = arith.constant 0.000000e+00 : f32
    %569 = vector.broadcast %cst_161 : f32 to vector<16x32xf32>
    %570 = arith.cmpf ogt, %568, %569 : vector<16x32xf32>
    %cst_162 = arith.constant 0.000000e+00 : f32
    %571 = vector.broadcast %cst_162 : f32 to vector<16x32xf32>
    %572 = arith.minimumf %568, %571 : vector<16x32xf32>
    %573 = math.exp %572 : vector<16x32xf32>
    %cst_163 = arith.constant 1.000000e+00 : f32
    %574 = vector.broadcast %cst_163 : f32 to vector<16x32xf32>
    %575 = arith.subf %573, %574 : vector<16x32xf32>
    %576 = arith.select %570, %568, %575 : vector<16x32xi1>, vector<16x32xf32>
    %577 = arith.addf %576, %546 : vector<16x32xf32>
    %c0_164 = arith.constant 0 : index
    %c0_165 = arith.constant 0 : index
    %578 = vector.load %arg3[%c0_164, %c0_165] : memref<2x16xf32, #tpu.memory_space<vmem>>, vector<2x16xf32>
    %cst_166 = arith.constant dense<0.000000e+00> : vector<2x32xf32>
    %579 = tpu.matmul %578, %577, %cst_166 {dimension_numbers = #tpu.dot_dimension_numbers<[1], [0], [0], [1], [0, 0, 1, 1], [], []>} : vector<2x16xf32>, vector<16x32xf32>, vector<2x32xf32> -> vector<2x32xf32>
    %c0_167 = arith.constant 0 : index
    %c0_168 = arith.constant 0 : index
    %580 = vector.load %arg6[%c0_167, %c0_168] : memref<16x32xf32, #tpu.memory_space<vmem>>, vector<16x32xf32>
    tpu.vector_store %arg6[%c0_167, %c0_168], %577 {strides = array<i32>} : memref<16x32xf32, #tpu.memory_space<vmem>>, vector<16x32xf32>,
    %c0_169 = arith.constant 0 : index
    %c0_170 = arith.constant 0 : index
    %581 = vector.load %arg7[%c0_169, %c0_170] : memref<2x32xf32, #tpu.memory_space<vmem>>, vector<2x32xf32>
    tpu.vector_store %arg7[%c0_169, %c0_170], %579 {strides = array<i32>} : memref<2x32xf32, #tpu.memory_space<vmem>>, vector<2x32xf32>,
    %c16 = arith.constant 16 : index
    %c0_171 = arith.constant 0 : index
    %582 = vector.load %arg4[%c16, %c0_171] : memref<448x64xf32, #tpu.memory_space<vmem>>, vector<32x3xf32>
    %cst_172 = arith.constant dense<0.000000e+00> : vector<2x3xf32>
    %583 = tpu.matmul %579, %582, %cst_172 {dimension_numbers = #tpu.dot_dimension_numbers<[1], [0], [0], [1], [0, 0, 1, 1], [], []>} : vector<2x32xf32>, vector<32x3xf32>, vector<2x3xf32> -> vector<2x3xf32>
    %c48 = arith.constant 48 : index
    %c0_173 = arith.constant 0 : index
    %584 = vector.load %arg4[%c48, %c0_173] : memref<448x64xf32, #tpu.memory_space<vmem>>, vector<1x3xf32>
    %585 = vector.broadcast %584 : vector<1x3xf32> to vector<2x3xf32>
    %586 = arith.addf %583, %585 : vector<2x3xf32>
    %c0_174 = arith.constant 0 : index
    %c0_175 = arith.constant 0 : index
    %587 = vector.load %arg5[%c0_174, %c0_175] : memref<2x3xf32, #tpu.memory_space<vmem>>, vector<2x3xf32>
    tpu.vector_store %arg5[%c0_174, %c0_175], %586 {strides = array<i32>} : memref<2x3xf32, #tpu.memory_space<vmem>>, vector<2x3xf32>,
    %588 = arith.addf %261, %541 : vector<1x1xf32>
    %c0_176 = arith.constant 0 : index
    %c0_177 = arith.constant 0 : index
    %589 = vector.load %arg8[%c0_176, %c0_177] : memref<1x1xf32, #tpu.memory_space<vmem>>, vector<1x1xf32>
    tpu.vector_store %arg8[%c0_176, %c0_177], %588 {strides = array<i32>} : memref<1x1xf32, #tpu.memory_space<vmem>>, vector<1x1xf32>,
    return
  }
}

</mosaic_0001>

<bundles_post_ra>
// kernel: tpu_custom_call.1
= control target key start
LH: loop header
LB: loop body
LE: loop exit
PB: predicated region body
PF: predicated region fallthrough
CT: control target
= control target key end

     0   :  { %14 = vsyncpa [#allocation3], 0  ;;  %s4977_s0 = inlined_call_operand.vmem [shape: f32[16,8], index: 0, kind: input, shape index: {}]   ;;  %s4978_s1 = inlined_call_operand.vmem [shape: f32[16,16], index: 1, kind: input, shape index: {}]   ;;  %s4979_s2 = inlined_call_operand.vmem [shape: f32[16,2], index: 2, kind: input, shape index: {}]   ;;  %s4980_s3 = inlined_call_operand.vmem [shape: f32[2,16], index: 3, kind: input, shape index: {}]   ;;  %s4981_s4 = inlined_call_operand.vmem [shape: f32[448,64], index: 4, kind: input, shape index: {}]   ;;  %s4982_s5 = inlined_call_operand.hbm [shape: f32[2,3], index: 5, kind: output, shape index: {0}]   ;;  %s4983_s6 = inlined_call_operand.hbm [shape: f32[16,32], index: 6, kind: output, shape index: {1}]   ;;  %s4984_s7 = inlined_call_operand.hbm [shape: f32[2,32], index: 7, kind: output, shape index: {2}]   ;;  %s4985_s8 = inlined_call_operand.hbm [shape: f32[1,1], index: 8, kind: output, shape index: {3}]  }
   0x1   :  { %15 = vsyncpa [#allocation5], 0  ;;  %v33_v0 = vld [vmem:[%s4981_s4] sm:$0x3]  ;;  %vm43_vm0 = vcmask 1041408   ;;  %vm36_vm1 = vcmask 15360  }
   0x2   :  { %v31_v1 = vld [vmem:[%s4979_s2] sm:$0xff]  ;;  %2997 = vmatpush.msk.msra.mxu0 %vm43_vm0, %v33_v0  ;;  %v32_v2 = vld [vmem:[%s4979_s2 + $0x8] sm:$0xff] }
   0x3   :  { %2998 = vmatmul.msk.f32.vlgmr.msra.gmra.mxu0 %vm36_vm1, %v31_v1 }
   0x4   :  { %3011 = vmatpush.xpose.msk.msrb.mxu0 %vm36_vm1, %v32_v2 }
   0x5   :  { %16 = vsyncpa [#allocation8], 0  ;;  %v92_v3 = vld [vmem:[%s4981_s4 + $0x48] sm:$0xff]  ;;  %v91_v4 = vld [vmem:[%s4981_s4 + $0x40] sm:$0xff]  ;;  %s3503_s17 = smov 8   ;;  %vm4988_vm2 = vcmask 523264  }
   0x6   :  { %113 = vmatpush.msra.mxu1 %v92_v3  ;;  %v3220_v5 = vld [vmem:[%s4981_s4 + $0x8] ss:$0 sm:$0xff]  ;;  %v90_v10 = vld [vmem:[%s4981_s4 + $0x38] sm:$0xff]  ;;  %v123_v11 = vld [vmem:[%s4981_s4 + $0x50] sm:$0xff]  ;;  %vm87_vm3 = vcmask 64512   ;;  %vm93_vm4 = vcmask 195584  }
   0x7   :  { %3002 = vmatpush.xpose.msk.msra.mxu2 %vm4988_vm2, %v123_v11  ;;  %v27_v12 = vld [vmem:[%s4977_s0] sm:$0xff]  ;;  %v28_v15 = vld [vmem:[%s4977_s0 + $0x8] sm:$0xff]  ;;  %s3504_s0 = smov 120   ;;  %s3505_s28 = smov 104   ;;  %v157_v22 = vld [vmem:[%s4981_s4 + $0x58] sm:$0xff]  ;;  %v3506_v23 = vmov 7  }
   0x8   :  { %3012 = vmatpush.xpose.msk.msrb.mxu0 %vm36_vm1, %v31_v1  ;;  %114 = vmatpush.msra.mxu1 %v91_v4  ;;  %v181_v18 = vld [vmem:[%s4981_s4 + $0x60] sm:$0xf]  ;;  %v3507_v24 = vmov 5   ;;  %v3508_v25 = vmov 4   ;;  %v3509_v34 = vmov 6   ;;  %v3510_v36 = vmov 2  }
   0x9   :  { %3131 = vset.pattern.permute.xlu0 %v3506_v23  ;;  %3132 = vset.pattern.permute.xlu1 %v3507_v24  ;;  %v3511_v39 = vmov 1   ;;  %v3512_v40 = vmov 0   ;;  %v3513_v43 = vmov 3   ;;  %v3659_v48 = vld [vmem:[%s4978_s1] sm:$0xff]  ;;  %vm252_vm6 = vcmask 130048   ;;  %v3669_v55 = vld [vmem:[%s4978_s1 + $0x8] sm:$0xff] }
   0xa   :  { %115 = vmatpush.msra.mxu1 %v90_v10  ;;  %3130 = vset.pattern.permute.xlu2 %v3508_v25  ;;  %s3514_s13 = smov 96   ;;  %s3515_s14 = smov 112  }
   0xb   :  { %2999 = vmatmul.msk.f32.gmra.mxu0 %vm36_vm1, %v32_v2  ;;  %s3516_s15 = smov 88   ;;  %s3517_s16 = smov 72  }
   0xc   :  { %s3518_s18 = smov 80   ;;  %s3519_s19 = smov 24  }
   0xd   :  { %s3520_s20 = smov 16   ;;  %s3521_s21 = smov 40  }
   0xe   :  { %s3522_s22 = smov 32   ;;  %s4986_s23 = smov 56  }
   0xf   :  { %s3524_s24 = smov 48   ;;  %s5025_s10 = smov 56  }
  0x10   :  { %s3526_s25 = smov [#allocation4]   ;;  %s3528_s26 = smov [#allocation6]  }
  0x11   :  { %s2963_s27 = sshll.u32 %s4984_s7, 4  ;;  %s2964_s27 = int_to_ptr.hbm [resolvable:$true] %s2963_s27 }
  0x13   :  { %3013 = vmatmul.msk.f32.vlgmr.msrb.gmra.mxu0 %vm36_vm1, %v181_v18 }
  0x80   :  { %v64_v6 = vpop.f32.mrf.mxu0 }
  0x81   :  { %v65_v7 = vadd.f32 %v3220_v5, %v64_v6 }
  0x83   :  { %81 = vrot.lane.b32.xlu0 %v65_v7, %s3503_s17 }
  0x88   :  { %v67_v8 = vpop.f32.mrf.mxu0 }
  0x89   :  { %v68_v9 = vadd.f32 %v3220_v5, %v67_v8 }
  0x8b   :  { %83 = vrot.lane.b32.xlu0 %v68_v9, %s3503_s17 }
  0x90   :  { %v225_v63 = vpop.f32.mrf.mxu0 }
  0xf5   :  { %v82_v13 = vpop.permute.xlu0 %81 }
  0xf6   :  { %v88_v14 = vsel %vm87_vm3, %v27_v12, %v82_v13 }
  0xf7   :  { %3000 = vmatmul.msk.f32.vlgmr.msra.gmra.mxu1 %vm93_vm4, %v88_v14 }
  0xfd   :  { %v84_v16 = vpop.permute.xlu0 %83 }
  0xfe   :  { %v89_v17 = vsel %vm87_vm3, %v28_v15, %v84_v16 }
  0xff   :  { %3001 = vmatmul.msk.f32.gmra.mxu1 %vm93_vm4, %v89_v17 }
 0x174   :  { %v117_v19 = vpop.f32.mrf.mxu1 }
 0x175   :  { %3003 = vmatmul.msk.f32.vlgmr.msra.gmra.mxu2 %vm4988_vm2, %v117_v19 }
 0x17c   :  { %v120_v20 = vpop.f32.mrf.mxu1 }
 0x17d   :  { %3004 = vmatmul.msk.f32.gmra.mxu2 %vm4988_vm2, %v120_v20  ;;  %3005 = vmatpush.xpose.msk.msra.mxu3 %vm4988_vm2, %v120_v20  ;;  %v3625_v21 = vpack.i.bf16 %v117_v19, %v120_v20 }
 0x17e   :  { %321 = vmatpush.msrb.mxu2 %v120_v20 }
 0x17f   :  { %3126 = vrot.lane.b32.xlu0 %v3625_v21, %s3504_s0  ;;  %3121 = vrot.lane.b32.xlu1 %v3625_v21, %s3505_s28 }
 0x180   :  { %322 = vmatpush.msrb.mxu2 %v117_v19 }
 0x181   :  { %3006 = vmatpush.xpose.msk.msra.mxu3 %vm4988_vm2, %v117_v19 }
 0x184   :  { %3007 = vmatmul.msk.f32.vlgmr.msra.gmra.mxu3 %vm4988_vm2, %v157_v22 }
 0x185   :  { %3008 = vmatpush.xpose.msk.msrb.mxu3 %vm36_vm1, %v181_v18 }
 0x18c   :  { %3009 = vmatmul.msk.f32.vlgmr.msrb.gmra.mxu3 %vm36_vm1, %v31_v1 }
 0x194   :  { %3010 = vmatmul.msk.f32.gmra.mxu3 %vm36_vm1, %v32_v2 }
 0x1f1   :  { %v3127_v26 = vpop.permute.xlu0 %3126  ;;  %v3122_v27 = vpop.permute.xlu1 %3121 }
 0x1f2   :  { %v3123_v28 = vunpack.i.l.bf16 %v3122_v27  ;;  %v3128_v29 = vunpack.i.l.bf16 %v3127_v26  ;;  %v3124_v30 = vunpack.i.h.bf16 %v3122_v27  ;;  %v3129_v31 = vunpack.i.h.bf16 %v3127_v26 }
 0x1f4   :  { %423 = vmatpush.msrb.mxu1 %v3128_v29  ;;  %627 = vmatpush.msra.mxu3 %v3123_v28 }
 0x1f6   :  { %424 = vmatpush.msrb.mxu1 %v3129_v31  ;;  %628 = vmatpush.msra.mxu3 %v3124_v30 }
 0x1f8   :  { %v151_v32 = vpop.f32.mrf.mxu2 }
 0x1f9   :  { %638 = vperm.xlu2 %3130, %v151_v32   ;;  %945 = vperm.xlu0 %3131, %v151_v32  }
 0x1fa   :  { %741 = vperm.xlu1 %3132, %v151_v32  }
 0x200   :  { %v154_v33 = vpop.f32.mrf.mxu2 }
 0x201   :  { %3135 = vset.pattern.permute.xlu0 %v3507_v24  ;;  %643 = vperm.xlu2 %3130, %v154_v33  }
 0x202   :  { %3133 = vset.pattern.permute.xlu1 %v3509_v34  ;;  %745 = vperm.xlu0 %3135, %v154_v33  }
 0x203   :  { %843 = vperm.xlu1 %3133, %v151_v32  }
 0x207   :  { %v3644_v35 = vpop.f32.mrf.mxu3 }
 0x208   :  { %v646_v44 = vperm.slane %v3644_v35, 4  ;;  %v952_v60 = vperm.slane %v3644_v35, 7  ;;  %v748_v62 = vperm.slane %v3644_v35, 5  ;;  %v3679_v5 = vadd.f32 %v225_v63, %v3644_v35 }
 0x209   :  { %3134 = vset.pattern.permute.xlu2 %v3506_v23  ;;  %v850_v15 = vperm.slane %v3644_v35, 6 }
 0x20a   :  { %949 = vperm.xlu2 %3134, %v154_v33   ;;  %3139 = vset.pattern.permute.xlu0 %v3510_v36  ;;  %v338_v13 = vperm.slane %v3679_v5, 1 }
 0x20b   :  { %847 = vperm.xlu1 %3133, %v154_v33  }
 0x20f   :  { %v202_v37 = vpop.f32.mrf.mxu3 }
 0x210   :  { %v228_v38 = vadd.f32 %v202_v37, %v151_v32 }
 0x212   :  { %433 = vperm.xlu0 %3139, %v228_v38   ;;  %3138 = vset.pattern.permute.xlu2 %v3511_v39 }
 0x213   :  { %3136 = vset.pattern.permute.xlu1 %v3512_v40  ;;  %331 = vperm.xlu2 %3138, %v228_v38  }
 0x214   :  { %233 = vperm.xlu1 %3136, %v228_v38  }
 0x217   :  { %v205_v41 = vpop.f32.mrf.mxu3 }
 0x218   :  { %v229_v42 = vadd.f32 %v205_v41, %v154_v33 }
 0x21b   :  { %3140 = vset.pattern.permute.xlu2 %v3512_v40 }
 0x21c   :  { %3137 = vset.pattern.permute.xlu1 %v3513_v43  ;;  %238 = vperm.xlu2 %3140, %v229_v42  }
 0x21d   :  { %535 = vperm.xlu1 %3137, %v228_v38  }
 0x224   :  { %3141 = vset.pattern.permute.xlu2 %v3511_v39 }
 0x225   :  { %539 = vperm.xlu1 %3137, %v229_v42   ;;  %335 = vperm.xlu2 %3141, %v229_v42  }
 0x22d   :  { %3142 = vset.pattern.permute.xlu1 %v3510_v36 }
 0x22e   :  { %437 = vperm.xlu1 %3142, %v229_v42  }
 0x236   :  { %3184 = vset.pattern.permute.xlu1 %v3509_v34 }
 0x253   :  { %v639_v45 = vpop.permute.xlu2 %638 }
 0x254   :  { %v647_v46 = vadd.f32 %v646_v44, %v639_v45 }
 0x256   :  { %v651_v47 = vmul.f32 0.2, %v647_v46  ;;  %vm649_vm5 = vcmp.gt.f32.partialorder %v647_v46, 0.0 }
 0x258   :  { %v653_v49 = vsel %vm649_vm5, %v647_v46, %v651_v47 }
 0x259   :  { %v3662_v50 = vadd.f32 %v653_v49, %v3659_v48 }
 0x25b   :  { %v644_v51 = vpop.permute.xlu2 %643  ;;  %v657_v52 = vsel %vm252_vm6, %v3662_v50, -inf }
 0x25c   :  { %v648_v53 = vadd.f32 %v646_v44, %v644_v51  ;;  %658 = vmax.xlane.f32.xlu1 %v657_v52 }
 0x25e   :  { %vm650_vm7 = vcmp.gt.f32.partialorder %v648_v53, 0.0  ;;  %v652_v54 = vmul.f32 0.2, %v648_v53 }
 0x260   :  { %v654_v56 = vsel %vm650_vm7, %v648_v53, %v652_v54  ;;  %v241_v54 = vperm.slane %v3679_v5, 0 }
 0x261   :  { %v3672_v57 = vadd.f32 %v654_v56, %v3669_v55  ;;  %v440_v56 = vperm.slane %v3679_v5, 2 }
 0x263   :  { %v660_v58 = vsel %vm252_vm6, %v3672_v57, -inf }
 0x264   :  { %661 = vmax.xlane.f32.xlu1 %v660_v58  ;;  %v950_v59 = vpop.permute.xlu2 %949 }
 0x265   :  { %v954_v2 = vadd.f32 %v952_v60, %v950_v59 }
 0x267   :  { %v958_v8 = vmul.f32 0.2, %v954_v2  ;;  %vm956_vm10 = vcmp.gt.f32.partialorder %v954_v2, 0.0 }
 0x269   :  { %v960_v22 = vsel %vm956_vm10, %v954_v2, %v958_v8 }
 0x26a   :  { %v3696_v29 = vadd.f32 %v960_v22, %v3669_v55 }
 0x26b   :  { %v946_v61 = vpop.permute.xlu0 %945 }
 0x26c   :  { %v953_v0 = vadd.f32 %v952_v60, %v946_v61  ;;  %v742_v1 = vpop.permute.xlu1 %741  ;;  %v966_v37 = vsel %vm252_vm6, %v3696_v29, -inf }
 0x26d   :  { %v749_v3 = vadd.f32 %v748_v62, %v742_v1  ;;  %v332_v11 = vpop.permute.xlu2 %331 }
 0x26e   :  { %vm955_vm8 = vcmp.gt.f32.partialorder %v953_v0, 0.0  ;;  %v957_v4 = vmul.f32 0.2, %v953_v0  ;;  %v339_v18 = vadd.f32 %v338_v13, %v332_v11 }
 0x26f   :  { %v753_v6 = vmul.f32 0.2, %v749_v3  ;;  %vm751_vm9 = vcmp.gt.f32.partialorder %v749_v3, 0.0 }
 0x270   :  { %v959_v7 = vsel %vm955_vm8, %v953_v0, %v957_v4  ;;  %v343_v30 = vmul.f32 0.2, %v339_v18  ;;  %vm341_vm13 = vcmp.gt.f32.partialorder %v339_v18, 0.0 }
 0x271   :  { %v755_v9 = vsel %vm751_vm9, %v749_v3, %v753_v6  ;;  %v3682_v10 = vadd.f32 %v959_v7, %v3659_v48  ;;  %v542_v3 = vperm.slane %v3679_v5, 3 }
 0x272   :  { %v3685_v12 = vadd.f32 %v755_v9, %v3659_v48  ;;  %v345_v44 = vsel %vm341_vm13, %v339_v18, %v343_v30 }
 0x273   :  { %v963_v14 = vsel %vm252_vm6, %v3682_v10, -inf  ;;  %v3711_v47 = vadd.f32 %v345_v44, %v3659_v48 }
 0x274   :  { %v759_v16 = vsel %vm252_vm6, %v3685_v12, -inf  ;;  %v746_v17 = vpop.permute.xlu0 %745  ;;  %964 = vmax.xlane.f32.xlu2 %v963_v14 }
 0x275   :  { %v844_v19 = vpop.permute.xlu1 %843  ;;  %760 = vmax.xlane.f32.xlu0 %v759_v16  ;;  %v750_v20 = vadd.f32 %v748_v62, %v746_v17  ;;  %v349_v53 = vsel %vm252_vm6, %v3711_v47, -inf }
 0x276   :  { %v851_v26 = vadd.f32 %v850_v15, %v844_v19  ;;  %v239_v63 = vpop.permute.xlu2 %238 }
 0x277   :  { %vm752_vm11 = vcmp.gt.f32.partialorder %v750_v20, 0.0  ;;  %v754_v27 = vmul.f32 0.2, %v750_v20  ;;  %v243_v6 = vadd.f32 %v241_v54, %v239_v63 }
 0x278   :  { %v855_v28 = vmul.f32 0.2, %v851_v26  ;;  %vm853_vm12 = vcmp.gt.f32.partialorder %v851_v26, 0.0 }
 0x279   :  { %v756_v31 = vsel %vm752_vm11, %v750_v20, %v754_v27  ;;  %vm245_vm7 = vcmp.gt.f32.partialorder %v243_v6, 0.0 }
 0x27a   :  { %v3699_v32 = vadd.f32 %v756_v31, %v3669_v55  ;;  %v857_v33 = vsel %vm853_vm12, %v851_v26, %v855_v28 }
 0x27b   :  { %v3702_v35 = vadd.f32 %v857_v33, %v3659_v48 }
 0x27c   :  { %v762_v38 = vsel %vm252_vm6, %v3699_v32, -inf }
 0x27d   :  { %v848_v41 = vpop.permute.xlu1 %847  ;;  %967 = vmax.xlane.f32.xlu0 %v966_v37  ;;  %763 = vmax.xlane.f32.xlu1 %v762_v38  ;;  %v861_v42 = vsel %vm252_vm6, %v3702_v35, -inf }
 0x27e   :  { %v852_v45 = vadd.f32 %v850_v15, %v848_v41  ;;  %862 = vmax.xlane.f32.xlu2 %v861_v42  ;;  %v247_v15 = vmul.f32 0.2, %v243_v6 }
 0x27f   :  { %v336_v16 = vpop.permute.xlu2 %335 }
 0x280   :  { %v856_v46 = vmul.f32 0.2, %v852_v45  ;;  %vm854_vm14 = vcmp.gt.f32.partialorder %v852_v45, 0.0  ;;  %v340_v20 = vadd.f32 %v338_v13, %v336_v16  ;;  %v249_v27 = vsel %vm245_vm7, %v243_v6, %v247_v15 }
 0x281   :  { %v3741_v31 = vadd.f32 %v249_v27, %v3669_v55 }
 0x282   :  { %v858_v49 = vsel %vm854_vm14, %v852_v45, %v856_v46  ;;  %vm342_vm9 = vcmp.gt.f32.partialorder %v340_v20, 0.0 }
 0x283   :  { %v3714_v51 = vadd.f32 %v858_v49, %v3669_v55  ;;  %v256_v5 = vsel %vm252_vm6, %v3741_v31, -inf }
 0x284   :  { %v434_v52 = vpop.permute.xlu0 %433 }
 0x285   :  { %350 = vmax.xlane.f32.xlu0 %v349_v53  ;;  %v864_v58 = vsel %vm252_vm6, %v3714_v51, -inf  ;;  %v441_v60 = vadd.f32 %v440_v56, %v434_v52 }
 0x286   :  { %v234_v59 = vpop.permute.xlu1 %233  ;;  %865 = vmax.xlane.f32.xlu2 %v864_v58 }
 0x287   :  { %v242_v61 = vadd.f32 %v241_v54, %v234_v59  ;;  %v445_v0 = vmul.f32 0.2, %v441_v60  ;;  %vm443_vm0 = vcmp.gt.f32.partialorder %v441_v60, 0.0 }
 0x289   :  { %v246_v62 = vmul.f32 0.2, %v242_v61  ;;  %vm244_vm15 = vcmp.gt.f32.partialorder %v242_v61, 0.0  ;;  %v447_v8 = vsel %vm443_vm0, %v441_v60, %v445_v0 }
 0x28a   :  { %v3729_v14 = vadd.f32 %v447_v8, %v3659_v48 }
 0x28b   :  { %v248_v1 = vsel %vm244_vm15, %v242_v61, %v246_v62 }
 0x28c   :  { %v3723_v2 = vadd.f32 %v248_v1, %v3659_v48  ;;  %v451_v19 = vsel %vm252_vm6, %v3729_v14, -inf }
 0x28e   :  { %v253_v4 = vsel %vm252_vm6, %v3723_v2, -inf }
 0x28f   :  { %v536_v7 = vpop.permute.xlu1 %535  ;;  %254 = vmax.xlane.f32.xlu2 %v253_v4 }
 0x290   :  { %v543_v9 = vadd.f32 %v542_v3, %v536_v7 }
 0x292   :  { %v547_v11 = vmul.f32 0.2, %v543_v9  ;;  %vm545_vm5 = vcmp.gt.f32.partialorder %v543_v9, 0.0 }
 0x294   :  { %v549_v17 = vsel %vm545_vm5, %v543_v9, %v547_v11 }
 0x295   :  { %v3732_v18 = vadd.f32 %v549_v17, %v3659_v48  ;;  %v344_v48 = vmul.f32 0.2, %v340_v20 }
 0x297   :  { %v540_v22 = vpop.permute.xlu1 %539  ;;  %452 = vmax.xlane.f32.xlu2 %v451_v19  ;;  %v553_v26 = vsel %vm252_vm6, %v3732_v18, -inf  ;;  %v346_v38 = vsel %vm342_vm9, %v340_v20, %v344_v48 }
 0x298   :  { %v544_v28 = vadd.f32 %v542_v3, %v540_v22  ;;  %554 = vmax.xlane.f32.xlu1 %v553_v26  ;;  %v3751_v44 = vadd.f32 %v346_v38, %v3669_v55 }
 0x29a   :  { %v548_v30 = vmul.f32 0.2, %v544_v28  ;;  %vm546_vm8 = vcmp.gt.f32.partialorder %v544_v28, 0.0  ;;  %v352_v49 = vsel %vm252_vm6, %v3751_v44, -inf }
 0x29c   :  { %v550_v33 = vsel %vm546_vm8, %v544_v28, %v548_v30 }
 0x29d   :  { %v3744_v37 = vadd.f32 %v550_v33, %v3669_v55 }
 0x29f   :  { %257 = vmax.xlane.f32.xlu2 %v256_v5  ;;  %v556_v13 = vsel %vm252_vm6, %v3744_v37, -inf }
 0x2a0   :  { %557 = vmax.xlane.f32.xlu1 %v556_v13  ;;  %v438_v41 = vpop.permute.xlu1 %437 }
 0x2a1   :  { %v442_v42 = vadd.f32 %v440_v56, %v438_v41 }
 0x2a3   :  { %v446_v45 = vmul.f32 0.2, %v442_v42  ;;  %vm444_vm10 = vcmp.gt.f32.partialorder %v442_v42, 0.0 }
 0x2a5   :  { %v448_v46 = vsel %vm444_vm10, %v442_v42, %v446_v45 }
 0x2a6   :  { %v3756_v52 = vadd.f32 %v448_v46, %v3669_v55 }
 0x2a7   :  { %353 = vmax.xlane.f32.xlu2 %v352_v49 }
 0x2a8   :  { %v454_v53 = vsel %vm252_vm6, %v3756_v52, -inf }
 0x2a9   :  { %455 = vmax.xlane.f32.xlu0 %v454_v53 }
 0x2cf   :  { %v659_v54 = vpop.xlane.xlu1 %658 }
 0x2d0   :  { %v663_v56 = vsub.f32 %v3662_v50, %v659_v54 }
 0x2d2   :  { %v665_v58 = vmul.f32 1.442695, %v663_v56 }
 0x2d4   :  { %3229 = vpow2.f32 %v665_v58 }
 0x2d7   :  { %v662_v6 = vpop.xlane.xlu1 %661 }
 0x2d8   :  { %v664_v11 = vsub.f32 %v3672_v57, %v662_v6 }
 0x2da   :  { %v3761_v59 = vpop.eup %3229  ;;  %v667_v15 = vmul.f32 1.442695, %v664_v11 }
 0x2db   :  { %v669_v60 = vsel %vm252_vm6, %v3761_v59, 0.0 }
 0x2dc   :  { %670 = vadd.xlane.f32.xlu2 %v669_v60 }
 0x2e7   :  { %v965_v61 = vpop.xlane.xlu2 %964 }
 0x2e8   :  { %v761_v62 = vpop.xlane.xlu0 %760  ;;  %v969_v55 = vsub.f32 %v3682_v10, %v965_v61 }
 0x2e9   :  { %v765_v63 = vsub.f32 %v3685_v12, %v761_v62 }
 0x2ea   :  { %v971_v0 = vmul.f32 1.442695, %v969_v55 }
 0x2eb   :  { %v767_v1 = vmul.f32 1.442695, %v765_v63 }
 0x2ec   :  { %3231 = vpow2.f32 %v971_v0 }
 0x2ed   :  { %3233 = vpow2.f32 %v767_v1 }
 0x2f0   :  { %v3767_v3 = vpop.xlane.xlu0 %967  ;;  %v764_v57 = vpop.xlane.xlu1 %763 }
 0x2f1   :  { %v863_v50 = vpop.xlane.xlu2 %862 }
 0x2f2   :  { %v3769_v4 = vpop.eup %3231  ;;  %v867_v7 = vsub.f32 %v3702_v35, %v863_v50 }
 0x2f3   :  { %v3772_v8 = vpop.eup %3233  ;;  %v975_v9 = vsel %vm252_vm6, %v3769_v4, 0.0 }
 0x2f4   :  { %v869_v10 = vmul.f32 1.442695, %v867_v7  ;;  %v771_v12 = vsel %vm252_vm6, %v3772_v8, 0.0  ;;  %976 = vadd.xlane.f32.xlu0 %v975_v9 }
 0x2f5   :  { %772 = vadd.xlane.f32.xlu2 %v771_v12 }
 0x2f6   :  { %3235 = vpow2.f32 %v869_v10 }
 0x2f7   :  { %3237 = vpow2.f32 %v667_v15 }
 0x2f8   :  { %v351_v17 = vpop.xlane.xlu0 %350 }
 0x2f9   :  { %v3779_v16 = vpop.xlane.xlu2 %865  ;;  %v355_v35 = vsub.f32 %v3711_v47, %v351_v17 }
 0x2fb   :  { %v357_v22 = vmul.f32 1.442695, %v355_v35 }
 0x2fc   :  { %v3781_v19 = vpop.eup %3235 }
 0x2fd   :  { %v873_v20 = vsel %vm252_vm6, %v3781_v19, 0.0  ;;  %v3786_v27 = vpop.eup %3237  ;;  %3239 = vpow2.f32 %v357_v22  ;;  %v868_v22 = vsub.f32 %v3714_v51, %v3779_v16 }
 0x2fe   :  { %874 = vadd.xlane.f32.xlu2 %v873_v20  ;;  %v672_v48 = vsel %vm252_vm6, %v3786_v27, 0.0 }
 0x302   :  { %v255_v26 = vpop.xlane.xlu2 %254 }
 0x303   :  { %v259_v28 = vsub.f32 %v3723_v2, %v255_v26  ;;  %v3791_v47 = vpop.eup %3239  ;;  %v871_v26 = vmul.f32 1.442695, %v868_v22 }
 0x304   :  { %v361_v2 = vsel %vm252_vm6, %v3791_v47, 0.0 }
 0x305   :  { %v261_v30 = vmul.f32 1.442695, %v259_v28 }
 0x306   :  { %673 = vadd.xlane.f32.xlu2 %v672_v48 }
 0x307   :  { %3241 = vpow2.f32 %v261_v30 }
 0x30a   :  { %v453_v33 = vpop.xlane.xlu2 %452 }
 0x30b   :  { %v555_v5 = vpop.xlane.xlu1 %554  ;;  %v457_v41 = vsub.f32 %v3729_v14, %v453_v33  ;;  %v766_v14 = vsub.f32 %v3699_v32, %v764_v57  ;;  %v970_v32 = vsub.f32 %v3696_v29, %v3767_v3 }
 0x30c   :  { %v559_v13 = vsub.f32 %v3732_v18, %v555_v5 }
 0x30d   :  { %v3794_v38 = vpop.eup %3241  ;;  %v459_v46 = vmul.f32 1.442695, %v457_v41  ;;  %v769_v62 = vmul.f32 1.442695, %v766_v14  ;;  %v973_v29 = vmul.f32 1.442695, %v970_v32 }
 0x30e   :  { %v561_v42 = vmul.f32 1.442695, %v559_v13  ;;  %v265_v45 = vsel %vm252_vm6, %v3794_v38, 0.0  ;;  %362 = vadd.xlane.f32.xlu2 %v361_v2 }
 0x30f   :  { %266 = vadd.xlane.f32.xlu0 %v265_v45 }
 0x310   :  { %3243 = vpow2.f32 %v561_v42 }
 0x311   :  { %3245 = vpow2.f32 %v459_v46 }
 0x312   :  { %v258_v49 = vpop.xlane.xlu2 %257 }
 0x313   :  { %v260_v53 = vsub.f32 %v3741_v31, %v258_v49  ;;  %v558_v54 = vpop.xlane.xlu1 %557 }
 0x314   :  { %v560_v18 = vsub.f32 %v3744_v37, %v558_v54 }
 0x315   :  { %v263_v56 = vmul.f32 1.442695, %v260_v53 }
 0x316   :  { %v3803_v58 = vpop.eup %3243  ;;  %v563_v60 = vmul.f32 1.442695, %v560_v18 }
 0x317   :  { %3247 = vpow2.f32 %v263_v56  ;;  %v565_v61 = vsel %vm252_vm6, %v3803_v58, 0.0  ;;  %v3809_v63 = vpop.eup %3245 }
 0x318   :  { %3249 = vpow2.f32 %v563_v60  ;;  %566 = vadd.xlane.f32.xlu1 %v565_v61  ;;  %v463_v10 = vsel %vm252_vm6, %v3809_v63, 0.0 }
 0x319   :  { %3251 = vpow2.f32 %v769_v62 }
 0x31a   :  { %v354_v55 = vpop.xlane.xlu2 %353 }
 0x31b   :  { %v356_v31 = vsub.f32 %v3751_v44, %v354_v55 }
 0x31c   :  { %v456_v37 = vpop.xlane.xlu0 %455 }
 0x31d   :  { %v3811_v0 = vpop.eup %3247  ;;  %v359_v1 = vmul.f32 1.442695, %v356_v31  ;;  %v458_v50 = vsub.f32 %v3756_v52, %v456_v37 }
 0x31e   :  { %v3816_v6 = vpop.eup %3249  ;;  %v268_v7 = vsel %vm252_vm6, %v3811_v0, 0.0 }
 0x31f   :  { %3253 = vpow2.f32 %v359_v1  ;;  %v461_v9 = vmul.f32 1.442695, %v458_v50  ;;  %269 = vadd.xlane.f32.xlu0 %v268_v7  ;;  %v568_v44 = vsel %vm252_vm6, %v3816_v6, 0.0  ;;  %v3824_v52 = vpop.eup %3251 }
 0x320   :  { %569 = vadd.xlane.f32.xlu2 %v568_v44  ;;  %464 = vadd.xlane.f32.xlu1 %v463_v10  ;;  %v774_v15 = vsel %vm252_vm6, %v3824_v52, 0.0 }
 0x321   :  { %3255 = vpow2.f32 %v461_v9 }
 0x322   :  { %3257 = vpow2.f32 %v973_v29 }
 0x323   :  { %3259 = vpow2.f32 %v871_v26 }
 0x325   :  { %v3826_v3 = vpop.eup %3253 }
 0x326   :  { %v364_v12 = vsel %vm252_vm6, %v3826_v3, 0.0 }
 0x327   :  { %v3830_v11 = vpop.eup %3255  ;;  %365 = vadd.xlane.f32.xlu0 %v364_v12 }
 0x328   :  { %775 = vadd.xlane.f32.xlu2 %v774_v15  ;;  %v466_v17 = vsel %vm252_vm6, %v3830_v11, 0.0  ;;  %v3836_v35 = vpop.eup %3257 }
 0x329   :  { %467 = vadd.xlane.f32.xlu1 %v466_v17  ;;  %v978_v20 = vsel %vm252_vm6, %v3836_v35, 0.0  ;;  %v3852_v28 = vpop.eup %3259 }
 0x32a   :  { %v876_v48 = vsel %vm252_vm6, %v3852_v28, 0.0 }
 0x32f   :  { %979 = vadd.xlane.f32.xlu0 %v978_v20 }
 0x340   :  { %3149 = vrot.lane.b32.xlu2 %v3625_v21, %s3514_s13 }
 0x342   :  { %3144 = vrot.lane.b32.xlu1 %v3625_v21, %s3515_s14 }
 0x343   :  { %3159 = vrot.lane.b32.xlu0 %v3625_v21, %s3516_s15 }
 0x348   :  { %3154 = vrot.lane.b32.xlu2 %v3625_v21, %s3517_s16 }
 0x34f   :  { %v671_v57 = vpop.xlane.xlu2 %670 }
 0x350   :  { %3164 = vrot.lane.b32.xlu2 %v3625_v21, %s3518_s18  ;;  %3261 = vrcp.f32 %v671_v57  ;;  %v686_v49 = vand.u32 2147483648, %v671_v57  ;;  %vm680_vm12 = vweird.f32 %v671_v57  ;;  %v684_v54 = vand.u32 2147483647, %v671_v57 }
 0x352   :  { %v687_v62 = vor.u32 1.1754944e-38, %v686_v49  ;;  %vm685_vm14 = vcmp.eq.f32.partialorder %v684_v54, 8.507059e+37 }
 0x356   :  { %v3262_v5 = vpop.eup %3261 }
 0x357   :  { %v676_v51 = vmul.f32 %v3262_v5, %v671_v57  ;;  %vm681_vm11 = vweird.f32 %v3262_v5 }
 0x358   :  { %vm682_vm13 = vmor %vm680_vm12, %vm681_vm11 }
 0x359   :  { %v677_v16 = vsub.f32 1.0, %v676_v51 }
 0x35b   :  { %v678_v2 = vmul.f32 %v3262_v5, %v677_v16 }
 0x35d   :  { %v679_v45 = vadd.f32 %v3262_v5, %v678_v2 }
 0x35f   :  { %v683_v14 = vsel %vm682_vm13, %v3262_v5, %v679_v45 }
 0x360   :  { %v688_v32 = vsel %vm685_vm14, %v687_v62, %v683_v14 }
 0x361   :  { %v3874_v12 = vmul.f32 %v3761_v59, %v688_v32 }
 0x367   :  { %v3860_v13 = vpop.xlane.xlu0 %976 }
 0x368   :  { %v3854_v30 = vpop.xlane.xlu2 %772  ;;  %3263 = vrcp.f32 %v3860_v13  ;;  %v990_v17 = vand.u32 2147483647, %v3860_v13  ;;  %v992_v20 = vand.u32 2147483648, %v3860_v13  ;;  %vm986_vm8 = vweird.f32 %v3860_v13 }
 0x36c   :  { %877 = vadd.xlane.f32.xlu1 %v876_v48 }
 0x36e   :  { %v3865_v46 = vpop.eup %3263 }
 0x36f   :  { %v982_v55 = vmul.f32 %v3865_v46, %v3860_v13  ;;  %vm987_vm14 = vweird.f32 %v3865_v46 }
 0x371   :  { %v3858_v33 = vpop.xlane.xlu2 %874  ;;  %v983_v7 = vsub.f32 1.0, %v982_v55 }
 0x379   :  { %v3862_v21 = vpop.xlane.xlu2 %673 }
 0x381   :  { %v363_v41 = vpop.xlane.xlu2 %362 }
 0x382   :  { %v267_v42 = vpop.xlane.xlu0 %266  ;;  %3265 = vrcp.f32 %v363_v41  ;;  %v378_v44 = vand.u32 2147483648, %v363_v41  ;;  %vm372_vm0 = vweird.f32 %v363_v41  ;;  %v376_v10 = vand.u32 2147483647, %v363_v41 }
 0x383   :  { %3267 = vrcp.f32 %v267_v42  ;;  %v280_v29 = vand.u32 2147483647, %v267_v42  ;;  %v282_v26 = vand.u32 2147483648, %v267_v42  ;;  %vm276_vm9 = vweird.f32 %v267_v42 }
 0x384   :  { %v379_v2 = vor.u32 1.1754944e-38, %v378_v44  ;;  %vm377_vm10 = vcmp.eq.f32.partialorder %v376_v10, 8.507059e+37 }
 0x385   :  { %vm281_vm11 = vcmp.eq.f32.partialorder %v280_v29, 8.507059e+37  ;;  %v283_v54 = vor.u32 1.1754944e-38, %v282_v26  ;;  %v993_v29 = vor.u32 1.1754944e-38, %v992_v20 }
 0x388   :  { %v3266_v53 = vpop.eup %3265 }
 0x389   :  { %v3268_v18 = vpop.eup %3267  ;;  %v368_v56 = vmul.f32 %v3266_v53, %v363_v41  ;;  %vm373_vm15 = vweird.f32 %v3266_v53  ;;  %v984_v41 = vmul.f32 %v3865_v46, %v983_v7  ;;  %v786_v7 = vand.u32 2147483647, %v3854_v30 }
 0x38a   :  { %v272_v60 = vmul.f32 %v3268_v18, %v267_v42  ;;  %vm3880_vm5 = vmor %vm372_vm0, %vm373_vm15  ;;  %vm277_vm7 = vweird.f32 %v3268_v18  ;;  %vm3920_vm0 = vcmp.eq.f32.partialorder %v990_v17, 8.507059e+37 }
 0x38b   :  { %v3867_v61 = vpop.xlane.xlu1 %566  ;;  %v369_v31 = vsub.f32 1.0, %v368_v56  ;;  %vm278_vm12 = vmor %vm276_vm9, %vm277_vm7  ;;  %v985_v32 = vadd.f32 %v3865_v46, %v984_v41 }
 0x38c   :  { %3269 = vrcp.f32 %v3867_v61  ;;  %v273_v37 = vsub.f32 1.0, %v272_v60  ;;  %v582_v56 = vand.u32 2147483648, %v3867_v61  ;;  %v580_v55 = vand.u32 2147483647, %v3867_v61  ;;  %vm3951_vm7 = vmor %vm986_vm8, %vm987_vm14 }
 0x38d   :  { %v370_v1 = vmul.f32 %v3266_v53, %v369_v31  ;;  %3271 = vrcp.f32 %v3854_v30  ;;  %vm576_vm15 = vweird.f32 %v3867_v61  ;;  %v989_v41 = vsel %vm3951_vm7, %v3865_v46, %v985_v32 }
 0x38e   :  { %v274_v50 = vmul.f32 %v3268_v18, %v273_v37  ;;  %v583_v22 = vor.u32 1.1754944e-38, %v582_v56  ;;  %vm581_vm9 = vcmp.eq.f32.partialorder %v580_v55, 8.507059e+37  ;;  %vm782_vm7 = vweird.f32 %v3854_v30 }
 0x38f   :  { %v371_v9 = vadd.f32 %v3266_v53, %v370_v1 }
 0x390   :  { %v275_v48 = vadd.f32 %v3268_v18, %v274_v50 }
 0x391   :  { %v375_v16 = vsel %vm3880_vm5, %v3266_v53, %v371_v9  ;;  %v788_v9 = vand.u32 2147483648, %v3854_v30 }
 0x392   :  { %v3876_v15 = vpop.eup %3269  ;;  %v3884_v57 = vpop.xlane.xlu0 %269  ;;  %v380_v53 = vsel %vm377_vm10, %v379_v2, %v375_v16  ;;  %v279_v60 = vsel %vm278_vm12, %v3268_v18, %v275_v48 }
 0x393   :  { %v572_v59 = vmul.f32 %v3876_v15, %v3867_v61  ;;  %3273 = vrcp.f32 %v3884_v57  ;;  %v3890_v5 = vpop.xlane.xlu1 %464  ;;  %v3892_v51 = vpop.xlane.xlu2 %569  ;;  %vm577_vm13 = vweird.f32 %v3876_v15  ;;  %v395_v42 = vmul.f32 %v3791_v47, %v380_v53 }
 0x394   :  { %3275 = vrcp.f32 %v3862_v21  ;;  %v3898_v45 = vpop.eup %3271  ;;  %v284_v31 = vsel %vm281_vm11, %v283_v54, %v279_v60  ;;  %vm3928_vm5 = vmor %vm576_vm15, %vm577_vm13  ;;  %vm290_vm10 = vweird.f32 %v3884_v57  ;;  %v296_v54 = vand.u32 2147483648, %v3884_v57 }
 0x395   :  { %v573_v49 = vsub.f32 1.0, %v572_v59  ;;  %3277 = vrcp.f32 %v3892_v51  ;;  %v778_v62 = vmul.f32 %v3898_v45, %v3854_v30  ;;  %3016 = vmatmul.msk.f32.vlgmr.msrb.gmra.mxu1 %vm252_vm6, %v395_v42  ;;  %v299_v47 = vmul.f32 %v3794_v38, %v284_v31 }
 0x396   :  { %3279 = vrcp.f32 %v3890_v5  ;;  %v596_v46 = vand.u32 2147483648, %v3892_v51  ;;  %v294_v42 = vand.u32 2147483647, %v3884_v57  ;;  %v594_v60 = vand.u32 2147483647, %v3892_v51 }
 0x397   :  { %v574_v14 = vmul.f32 %v3876_v15, %v573_v49  ;;  %3014 = vmatmul.msk.f32.vlgmr.msrb.gmra.mxu2 %vm252_vm6, %v299_v47  ;;  %v779_v20 = vsub.f32 1.0, %v778_v62  ;;  %vm590_vm13 = vweird.f32 %v3892_v51  ;;  %vm783_vm14 = vweird.f32 %v3898_v45 }
 0x398   :  { %vm295_vm15 = vcmp.eq.f32.partialorder %v294_v42, 8.507059e+37 }
 0x399   :  { %v3911_v37 = vpop.eup %3273  ;;  %v575_v1 = vadd.f32 %v3876_v15, %v574_v14  ;;  %v780_v47 = vmul.f32 %v3898_v45, %v779_v20 }
 0x39a   :  { %v3918_v18 = vpop.eup %3275  ;;  %v286_v61 = vmul.f32 %v3911_v37, %v3884_v57  ;;  %v3934_v38 = vpop.xlane.xlu0 %365  ;;  %vm291_vm8 = vweird.f32 %v3911_v37  ;;  %v597_v57 = vor.u32 1.1754944e-38, %v596_v46 }
 0x39b   :  { %v3936_v10 = vpop.eup %3277  ;;  %v579_v17 = vsel %vm3928_vm5, %v3876_v15, %v575_v1  ;;  %3281 = vrcp.f32 %v3934_v38  ;;  %v3943_v26 = vpop.xlane.xlu2 %775  ;;  %v690_v2 = vmul.f32 %v3918_v18, %v3862_v21  ;;  %v994_v1 = vsel %vm3920_vm0, %v993_v29, %v989_v41  ;;  %vm3983_vm11 = vmor %vm290_vm10, %vm291_vm8 }
 0x39c   :  { %v3945_v48 = vpop.eup %3279  ;;  %v287_v15 = vsub.f32 1.0, %v286_v61  ;;  %v586_v16 = vmul.f32 %v3936_v10, %v3892_v51  ;;  %v584_v49 = vsel %vm581_vm9, %v583_v22, %v579_v17  ;;  %v3965_v53 = vpop.xlane.xlu1 %467  ;;  %3283 = vrcp.f32 %v3943_v26 }
 0x39d   :  { %v470_v14 = vmul.f32 %v3945_v48, %v3890_v5  ;;  %v599_v55 = vmul.f32 %v3803_v58, %v584_v49  ;;  %v691_v44 = vsub.f32 1.0, %v690_v2  ;;  %3285 = vrcp.f32 %v3965_v53 }
 0x39e   :  { %v288_v13 = vmul.f32 %v3911_v37, %v287_v15  ;;  %v587_v56 = vsub.f32 1.0, %v586_v16  ;;  %vm591_vm12 = vweird.f32 %v3936_v10  ;;  %v297_v22 = vor.u32 1.1754944e-38, %v296_v54 }
 0x39f   :  { %3020 = vmatmul.msk.f32.vlgmr.msra.gmra.mxu3 %vm252_vm6, %v599_v55  ;;  %v471_v20 = vsub.f32 1.0, %v470_v14  ;;  %vm3999_vm0 = vcmp.eq.f32.partialorder %v594_v60, 8.507059e+37  ;;  %vm592_vm5 = vmor %vm590_vm13, %vm591_vm12  ;;  %v390_v51 = vand.u32 2147483647, %v3934_v38  ;;  %v692_v46 = vmul.f32 %v3918_v18, %v691_v44 }
 0x3a0   :  { %v588_v62 = vmul.f32 %v3936_v10, %v587_v56  ;;  %v289_v31 = vadd.f32 %v3911_v37, %v288_v13  ;;  %vm386_vm10 = vweird.f32 %v3934_v38  ;;  %vm694_vm8 = vweird.f32 %v3862_v21 }
 0x3a1   :  { %v3282_v32 = vpop.eup %3281  ;;  %vm391_vm12 = vcmp.eq.f32.partialorder %v390_v51, 8.507059e+37  ;;  %vm695_vm13 = vweird.f32 %v3918_v18  ;;  %v698_v16 = vand.u32 2147483647, %v3862_v21  ;;  %v494_v30 = vand.u32 2147483648, %v3965_v53 }
 0x3a2   :  { %v382_v17 = vmul.f32 %v3282_v32, %v3934_v38  ;;  %v3989_v58 = vpop.xlane.xlu0 %979  ;;  %v293_v50 = vsel %vm3983_vm11, %v3911_v37, %v289_v31  ;;  %v589_v29 = vadd.f32 %v3936_v10, %v588_v62  ;;  %v392_v37 = vand.u32 2147483648, %v3934_v38  ;;  %v4005_v49 = vpop.eup %3283 }
 0x3a3   :  { %3287 = vrcp.f32 %v3989_v58  ;;  %v3150_v59 = vpop.permute.xlu2 %3149  ;;  %v298_v2 = vsel %vm295_vm15, %v297_v22, %v293_v50  ;;  %vm387_vm9 = vweird.f32 %v3282_v32  ;;  %v4010_v14 = vpop.eup %3285  ;;  %v4017_v62 = vadd.f32 %v3898_v45, %v780_v47 }
 0x3a4   :  { %v383_v15 = vsub.f32 1.0, %v382_v17  ;;  %v3151_v41 = vunpack.i.l.bf16 %v3150_v59  ;;  %v300_v54 = vmul.f32 %v3811_v0, %v298_v2  ;;  %v593_v56 = vsel %vm592_vm5, %v3936_v10, %v589_v29  ;;  %vm388_vm11 = vmor %vm386_vm10, %vm387_vm9 }
 0x3a5   :  { %3289 = vrcp.f32 %v3858_v33  ;;  %v3152_v42 = vunpack.i.h.bf16 %v3150_v59  ;;  %v598_v60 = vsel %vm3999_vm0, %v597_v57, %v593_v56  ;;  %v472_v31 = vmul.f32 %v3945_v48, %v471_v20  ;;  %vm4051_vm0 = vmor %vm694_vm8, %vm695_vm13 }
 0x3a6   :  { %v384_v13 = vmul.f32 %v3282_v32, %v383_v15  ;;  %731 = vmatpush.msra.mxu2 %v3151_v41  ;;  %v600_v0 = vmul.f32 %v3816_v6, %v598_v60  ;;  %v393_v44 = vor.u32 1.1754944e-38, %v392_v37  ;;  %v1009_v47 = vmul.f32 %v3769_v4, %v994_v1  ;;  %vm4060_vm9 = vmor %vm782_vm7, %vm783_vm14 }
 0x3a7   :  { %3015 = vmatmul.msk.f32.gmra.mxu2 %vm252_vm6, %v300_v54  ;;  %v484_v38 = vmul.f32 %v4010_v14, %v3965_v53  ;;  %v700_v17 = vand.u32 2147483648, %v3862_v21  ;;  %v693_v22 = vadd.f32 %v3918_v18, %v692_v46  ;;  %v792_v4 = vmul.f32 %v4005_v49, %v3943_v26 }
 0x3a8   :  { %v385_v10 = vadd.f32 %v3282_v32, %v384_v13  ;;  %732 = vmatpush.msra.mxu2 %v3152_v42  ;;  %3021 = vmatmul.msk.f32.gmra.mxu3 %vm252_vm6, %v600_v0  ;;  %vm475_vm15 = vweird.f32 %v3945_v48  ;;  %v480_v15 = vand.u32 2147483648, %v3890_v5  ;;  %vm474_vm10 = vweird.f32 %v3890_v5 }
 0x3a9   :  { %v4022_v55 = vpop.eup %3287  ;;  %v485_v37 = vsub.f32 1.0, %v484_v38  ;;  %v478_v13 = vand.u32 2147483647, %v3890_v5  ;;  %v1006_v21 = vand.u32 2147483648, %v3989_v58  ;;  %v697_v54 = vsel %vm4051_vm0, %v3918_v18, %v693_v22  ;;  %vm4072_vm8 = vmor %vm474_vm10, %vm475_vm15 }
 0x3aa   :  { %v996_v61 = vmul.f32 %v4022_v55, %v3989_v58  ;;  %v389_v6 = vsel %vm388_vm11, %v3282_v32, %v385_v10  ;;  %v473_v32 = vadd.f32 %v3945_v48, %v472_v31  ;;  %vm1001_vm5 = vweird.f32 %v4022_v55 }
 0x3ab   :  { %v3155_v50 = vpop.permute.xlu2 %3154  ;;  %v394_v29 = vsel %vm391_vm12, %v393_v44, %v389_v6  ;;  %v4039_v20 = vpop.eup %3289  ;;  %v793_v46 = vsub.f32 1.0, %v792_v4  ;;  %vm1000_vm14 = vweird.f32 %v3989_v58  ;;  %v1004_v42 = vand.u32 2147483647, %v3989_v58 }
 0x3ac   :  { %v997_v1 = vsub.f32 1.0, %v996_v61  ;;  %v3156_v57 = vunpack.i.l.bf16 %v3155_v50  ;;  %v396_v59 = vmul.f32 %v3826_v3, %v394_v29  ;;  %v3157_v2 = vunpack.i.h.bf16 %v3155_v50  ;;  %vm4092_vm7 = vmor %vm1000_vm14, %vm1001_vm5 }
 0x3ad   :  { %v785_v18 = vsel %vm4060_vm9, %v3898_v45, %v4017_v62  ;;  %v880_v60 = vmul.f32 %v4039_v20, %v3858_v33  ;;  %v701_v0 = vor.u32 1.1754944e-38, %v700_v17  ;;  %v477_v10 = vsel %vm4072_vm8, %v3945_v48, %v473_v32 }
 0x3ae   :  { %v998_v41 = vmul.f32 %v4022_v55, %v997_v1  ;;  %3017 = vmatmul.msk.f32.gmra.mxu1 %vm252_vm6, %v396_v59  ;;  %1037 = vmatpush.msrb.mxu3 %v3156_v57  ;;  %v481_v58 = vor.u32 1.1754944e-38, %v480_v15  ;;  %v486_v31 = vmul.f32 %v4010_v14, %v485_v37  ;;  %vm699_vm11 = vcmp.eq.f32.partialorder %v698_v16, 8.507059e+37 }
 0x3af   :  { %3022 = vmatmul.msk.f32.vlgmr.msra.gmra.mxu2 %vm252_vm6, %v3874_v12  ;;  %v789_v62 = vor.u32 1.1754944e-38, %v788_v9  ;;  %vm479_vm12 = vcmp.eq.f32.partialorder %v478_v13, 8.507059e+37  ;;  %v1007_v48 = vor.u32 1.1754944e-38, %v1006_v21  ;;  %v702_v44 = vsel %vm699_vm11, %v701_v0, %v697_v54 }
 0x3b0   :  { %1038 = vmatpush.msrb.mxu3 %v3157_v2  ;;  %v999_v5 = vadd.f32 %v4022_v55, %v998_v41  ;;  %vm787_vm13 = vcmp.eq.f32.partialorder %v786_v7, 8.507059e+37  ;;  %v482_v38 = vsel %vm479_vm12, %v481_v58, %v477_v10  ;;  %v794_v61 = vmul.f32 %v4005_v49, %v793_v46 }
 0x3b1   :  { %3028 = vmatmul.msk.f32.vlgmr.msrb.gmra.mxu3 %vm252_vm6, %v1009_v47  ;;  %vm1005_vm15 = vcmp.eq.f32.partialorder %v1004_v42, 8.507059e+37  ;;  %v790_v47 = vsel %vm787_vm13, %v789_v62, %v785_v18  ;;  %v881_v17 = vsub.f32 1.0, %v880_v60  ;;  %v704_v9 = vmul.f32 %v3786_v27, %v702_v44 }
 0x3b2   :  { %v1003_v45 = vsel %vm4092_vm7, %v4022_v55, %v999_v5  ;;  %v487_v1 = vadd.f32 %v4010_v14, %v486_v31  ;;  %vm489_vm0 = vweird.f32 %v4010_v14  ;;  %vm488_vm5 = vweird.f32 %v3965_v53 }
 0x3b3   :  { %v1008_v22 = vsel %vm1005_vm15, %v1007_v48, %v1003_v45  ;;  %v3165_v55 = vpop.permute.xlu2 %3164  ;;  %v497_v57 = vmul.f32 %v3809_v63, %v482_v38  ;;  %v492_v32 = vand.u32 2147483647, %v3965_v53  ;;  %v795_v27 = vadd.f32 %v4005_v49, %v794_v61  ;;  %vm4123_vm10 = vmor %vm488_vm5, %vm489_vm0 }
 0x3b4   :  { %v3145_v6 = vpop.permute.xlu1 %3144  ;;  %v1010_v59 = vmul.f32 %v3836_v35, %v1008_v22  ;;  %vm797_vm9 = vweird.f32 %v4005_v49  ;;  %v802_v15 = vand.u32 2147483648, %v3943_v26  ;;  %v3166_v16 = vunpack.i.l.bf16 %v3165_v55 }
 0x3b5   :  { %v3146_v50 = vunpack.i.l.bf16 %v3145_v6  ;;  %v3160_v29 = vpop.permute.xlu0 %3159  ;;  %v3147_v7 = vunpack.i.h.bf16 %v3145_v6  ;;  %v805_v41 = vmul.f32 %v3772_v8, %v790_v47  ;;  %v882_v35 = vmul.f32 %v4039_v20, %v881_v17 }
 0x3b6   :  { %v3161_v4 = vunpack.i.l.bf16 %v3160_v29  ;;  %v3162_v37 = vunpack.i.h.bf16 %v3160_v29  ;;  %vm796_vm8 = vweird.f32 %v3943_v26  ;;  %v491_v8 = vsel %vm4123_vm10, %v4010_v14, %v487_v1 }
 0x3b7   :  { %525 = vmatpush.msra.mxu0 %v3146_v50  ;;  %3023 = vmatmul.msk.f32.gmra.mxu2 %vm252_vm6, %v704_v9  ;;  %v800_v2 = vand.u32 2147483647, %v3943_v26  ;;  %v495_v3 = vor.u32 1.1754944e-38, %v494_v30  ;;  %v3167_v53 = vunpack.i.h.bf16 %v3165_v55  ;;  %vm798_vm14 = vmor %vm796_vm8, %vm797_vm9  ;;  %vm493_vm7 = vcmp.eq.f32.partialorder %v492_v32, 8.507059e+37  ;;  %v1124_v32 = vld [vmem:[%s4981_s4 + $0x88] sm:$0xff] }
 0x3b8   :  { %833 = vmatpush.msra.mxu1 %v3161_v4  ;;  %v799_v51 = vsel %vm798_vm14, %v4005_v49, %v795_v27  ;;  %v803_v13 = vor.u32 1.1754944e-38, %v802_v15  ;;  %v883_v54 = vadd.f32 %v4039_v20, %v882_v35  ;;  %vm885_vm11 = vweird.f32 %v4039_v20  ;;  %v1123_v27 = vld [vmem:[%s4981_s4 + $0x80] sm:$0xff]  ;;  %v1122_v15 = vld [vmem:[%s4981_s4 + $0x78] sm:$0xff] }
 0x3b9   :  { %526 = vmatpush.msra.mxu0 %v3147_v7  ;;  %3029 = vmatmul.msk.f32.gmra.mxu3 %vm252_vm6, %v1010_v59  ;;  %v496_v21 = vsel %vm493_vm7, %v495_v3, %v491_v8  ;;  %vm801_vm12 = vcmp.eq.f32.partialorder %v800_v2, 8.507059e+37  ;;  %v890_v26 = vand.u32 2147483648, %v3858_v33  ;;  %vm884_vm13 = vweird.f32 %v3858_v33  ;;  %v1127_v7 = vld [vmem:[%s4981_s4 + $0xa0] sm:$0xff]  ;;  %v1125_v59 = vld [vmem:[%s4981_s4 + $0x90] sm:$0xff] }
 0x3ba   :  { %3018 = vmatmul.msk.f32.vlgmr.msra.gmra.mxu0 %vm252_vm6, %v497_v57  ;;  %834 = vmatpush.msra.mxu1 %v3162_v37  ;;  %v804_v14 = vsel %vm801_vm12, %v803_v13, %v799_v51  ;;  %v888_v56 = vand.u32 2147483647, %v3858_v33  ;;  %v498_v46 = vmul.f32 %v3830_v11, %v496_v21  ;;  %vm886_vm15 = vmor %vm884_vm13, %vm885_vm11  ;;  %v1126_v57 = vld [vmem:[%s4981_s4 + $0x98] sm:$0xff]  ;;  %vm1108_vm14 = vcmask 261120  }
 0x3bb   :  { %935 = vmatpush.msrb.mxu0 %v3166_v16  ;;  %3024 = vmatmul.msk.f32.vlgmr.msra.gmra.mxu1 %vm252_vm6, %v805_v41  ;;  %v887_v49 = vsel %vm886_vm15, %v4039_v20, %v883_v54  ;;  %v806_v5 = vmul.f32 %v3824_v52, %v804_v14  ;;  %v891_v42 = vor.u32 1.1754944e-38, %v890_v26  ;;  %v1121_v16 = vld [vmem:[%s4981_s4 + $0x70] sm:$0xff]  ;;  %v1120_v41 = vld [vmem:[%s4981_s4 + $0x68] sm:$0xff]  ;;  %vm1111_vm7 = vcmask 326656  }
 0x3bc   :  { %vm889_vm0 = vcmp.eq.f32.partialorder %v888_v56, 8.507059e+37  ;;  %1144 = vmatpush.msrb.mxu2 %v1127_v7  ;;  %vm1114_vm11 = vcmask 392192   ;;  %vm1117_vm12 = vcmask 457728  }
 0x3bd   :  { %936 = vmatpush.msrb.mxu0 %v3167_v53  ;;  %v892_v18 = vsel %vm889_vm0, %v891_v42, %v887_v49 }
 0x3be   :  { %v907_v60 = vmul.f32 %v3781_v19, %v892_v18  ;;  %1145 = vmatpush.msrb.mxu2 %v1126_v57 }
 0x3c0   :  { %1146 = vmatpush.msrb.mxu2 %v1125_v59 }
 0x3c2   :  { %3019 = vmatmul.msk.f32.gmra.mxu0 %vm252_vm6, %v498_v46  ;;  %1147 = vmatpush.msrb.mxu2 %v1124_v32 }
 0x3c3   :  { %3025 = vmatmul.msk.f32.gmra.mxu1 %vm252_vm6, %v806_v5 }
 0x3c4   :  { %1148 = vmatpush.msrb.mxu2 %v1123_v27 }
 0x3c6   :  { %1149 = vmatpush.msrb.mxu2 %v1122_v15 }
 0x3c8   :  { %1150 = vmatpush.msrb.mxu2 %v1121_v16 }
 0x3ca   :  { %3026 = vmatmul.msk.f32.vlgmr.msrb.gmra.mxu0 %vm252_vm6, %v907_v60  ;;  %1151 = vmatpush.msrb.mxu2 %v1120_v41 }
 0x3df   :  { %v878_v0 = vpop.xlane.xlu1 %877 }
 0x3e0   :  { %3291 = vrcp.f32 %v878_v0  ;;  %v904_v12 = vand.u32 2147483648, %v878_v0  ;;  %v902_v58 = vand.u32 2147483647, %v878_v0  ;;  %vm898_vm9 = vweird.f32 %v878_v0 }
 0x3e2   :  { %v905_v31 = vor.u32 1.1754944e-38, %v904_v12  ;;  %vm903_vm8 = vcmp.eq.f32.partialorder %v902_v58, 8.507059e+37 }
 0x3e6   :  { %v3292_v33 = vpop.eup %3291 }
 0x3e7   :  { %v894_v11 = vmul.f32 %v3292_v33, %v878_v0  ;;  %vm899_vm5 = vweird.f32 %v3292_v33 }
 0x3e8   :  { %vm900_vm10 = vmor %vm898_vm9, %vm899_vm5 }
 0x3e9   :  { %v895_v10 = vsub.f32 1.0, %v894_v11 }
 0x3eb   :  { %v896_v20 = vmul.f32 %v3292_v33, %v895_v10 }
 0x3ed   :  { %v897_v52 = vadd.f32 %v3292_v33, %v896_v20 }
 0x3ef   :  { %v901_v45 = vsel %vm900_vm10, %v3292_v33, %v897_v52 }
 0x3f0   :  { %v906_v62 = vsel %vm903_vm8, %v905_v31, %v901_v45 }
 0x3f1   :  { %v908_v19 = vmul.f32 %v3852_v28, %v906_v62  ;;  %v3525_v62 = vmov 16.0  }
 0x3f2   :  { %3293 = vrcp.f32 %v3525_v62 }
 0x3f3   :  { %3027 = vmatmul.msk.f32.gmra.mxu0 %vm252_vm6, %v908_v19 }
 0x412   :  { %v426_v48 = vpop.f32.mrf.mxu1 }
 0x413   :  { %1048 = vrot.lane.b32.xlu1 %v426_v48, %s3503_s17  ;;  %v3221_v48 = vld [vmem:[%s4981_s4 + $0xa8] ss:$0 sm:$0xff] }
 0x41a   :  { %v324_v61 = vpop.f32.mrf.mxu2 }
 0x422   :  { %v630_v44 = vpop.f32.mrf.mxu3 }
 0x42a   :  { %v4155_v47 = vpop.f32.mrf.mxu2 }
 0x42b   :  { %v633_v38 = vpop.f32.mrf.mxu3  ;;  %v429_v6 = vpop.f32.mrf.mxu1 }
 0x42c   :  { %1066 = vrot.lane.b32.xlu0 %v633_v38, %s3519_s19 }
 0x432   :  { %v734_v29 = vpop.f32.mrf.mxu2 }
 0x434   :  { %v1040_v22 = vpop.f32.mrf.mxu3 }
 0x437   :  { %v528_v17 = vpop.f32.mrf.mxu0 }
 0x438   :  { %1056 = vrot.lane.b32.xlu2 %v528_v17, %s3520_s20  ;;  %v836_v50 = vpop.f32.mrf.mxu1 }
 0x439   :  { %1080 = vrot.lane.b32.xlu0 %v836_v50, %s3521_s21 }
 0x43a   :  { %v737_v9 = vpop.f32.mrf.mxu2 }
 0x43c   :  { %v1043_v1 = vpop.f32.mrf.mxu3 }
 0x43f   :  { %v531_v28 = vpop.f32.mrf.mxu0 }
 0x440   :  { %1064 = vrot.lane.b32.xlu2 %v630_v44, %s3519_s19  ;;  %1058 = vrot.lane.b32.xlu1 %v531_v28, %s3520_s20  ;;  %v839_v55 = vpop.f32.mrf.mxu1  ;;  %v3294_v44 = vpop.eup %3293 }
 0x441   :  { %1072 = vrot.lane.b32.xlu0 %v734_v29, %s3522_s22  ;;  %vm1445_vm13 = vweird.f32 %v3294_v44 }
 0x447   :  { %v938_v4 = vpop.f32.mrf.mxu0 }
 0x448   :  { %1050 = vrot.lane.b32.xlu2 %v429_v6, %s3503_s17  ;;  %1096 = vrot.lane.b32.xlu1 %v1040_v22, %s4986_s23 }
 0x449   :  { %1082 = vrot.lane.b32.xlu0 %v839_v55, %s3521_s21 }
 0x450   :  { %1088 = vrot.lane.b32.xlu2 %v938_v4, %s3524_s24 }
 0x458   :  { %1074 = vrot.lane.b32.xlu2 %v737_v9, %s3522_s22 }
 0x460   :  { %1098 = vrot.lane.b32.xlu2 %v1043_v1, %s4986_s23 }
 0x470   :  { %v941_v30 = vpop.f32.mrf.mxu0 }
 0x471   :  { %1090 = vrot.lane.b32.xlu1 %v941_v30, %s3524_s24 }
 0x485   :  { %v1049_v8 = vpop.permute.xlu1 %1048 }
 0x486   :  { %v1102_v53 = vsel %vm87_vm3, %v324_v61, %v1049_v8  ;;  %v1441_v61 = vmul.f32 16.0, %v3294_v44 }
 0x488   :  { %v1442_v28 = vsub.f32 1.0, %v1441_v61 }
 0x48a   :  { %v1443_v55 = vmul.f32 %v3294_v44, %v1442_v28 }
 0x48c   :  { %v1444_v1 = vadd.f32 %v3294_v44, %v1443_v55 }
 0x48e   :  { %v4217_v57 = vsel %vm1445_vm13, %v3294_v44, %v1444_v1 }
 0x492   :  { %v1057_v37 = vpop.permute.xlu2 %1056 }
 0x493   :  { %v1104_v13 = vsel %vm252_vm6, %v1102_v53, %v1057_v37  ;;  %v1496_v53 = vld [vmem:[%s4981_s4 + $0xd8] sm:$0xff] }
 0x494   :  { %1515 = vmatpush.msra.mxu2 %v1496_v53 }
 0x49a   :  { %v1065_v35 = vpop.permute.xlu2 %1064 }
 0x49b   :  { %v1106_v21 = vsel %vm93_vm4, %v1104_v13, %v1065_v35 }
 0x49e   :  { %v1067_v63 = vpop.permute.xlu0 %1066 }
 0x4a2   :  { %v1051_v3 = vpop.permute.xlu2 %1050 }
 0x4a3   :  { %v1103_v18 = vsel %vm87_vm3, %v4155_v47, %v1051_v3 }
 0x4aa   :  { %v1089_v56 = vpop.permute.xlu2 %1088 }
 0x4ab   :  { %v1081_v2 = vpop.permute.xlu0 %1080 }
 0x4b2   :  { %v1059_v51 = vpop.permute.xlu1 %1058  ;;  %v1075_v42 = vpop.permute.xlu2 %1074 }
 0x4b3   :  { %v1073_v54 = vpop.permute.xlu0 %1072  ;;  %v1105_v60 = vsel %vm252_vm6, %v1103_v18, %v1059_v51  ;;  %v1495_v51 = vld [vmem:[%s4981_s4 + $0xd0] sm:$0xff] }
 0x4b4   :  { %v1109_v26 = vsel %vm1108_vm14, %v1106_v21, %v1073_v54  ;;  %v1107_v0 = vsel %vm93_vm4, %v1105_v60, %v1067_v63  ;;  %v1494_v21 = vld [vmem:[%s4981_s4 + $0xc8] sm:$0xff]  ;;  %1516 = vmatpush.msra.mxu2 %v1495_v51 }
 0x4b5   :  { %v1112_v14 = vsel %vm1111_vm7, %v1109_v26, %v1081_v2  ;;  %v1110_v11 = vsel %vm1108_vm14, %v1107_v0, %v1075_v42  ;;  %v1493_v26 = vld [vmem:[%s4981_s4 + $0xc0] sm:$0xff] }
 0x4b6   :  { %v1115_v49 = vsel %vm1114_vm11, %v1112_v14, %v1089_v56  ;;  %1517 = vmatpush.msra.mxu2 %v1494_v21  ;;  %v3389_v21 = vld [vmem:[%s4979_s2] sm:$0xff] }
 0x4b8   :  { %1518 = vmatpush.msra.mxu2 %v1493_v26 }
 0x4ba   :  { %v1097_v46 = vpop.permute.xlu1 %1096  ;;  %v1099_v20 = vpop.permute.xlu2 %1098 }
 0x4bb   :  { %v1118_v5 = vsel %vm1117_vm12, %v1115_v49, %v1097_v46  ;;  %v1083_v33 = vpop.permute.xlu0 %1082 }
 0x4bc   :  { %1159 = vrot.lane.b32.xlu0 %v1118_v5, %s3514_s13  ;;  %3030 = vmatmul.msk.f32.vlgmr.msrb.gmra.mxu2 %vm4988_vm2, %v1118_v5  ;;  %v1113_v10 = vsel %vm1111_vm7, %v1110_v11, %v1083_v33  ;;  %v75_v5 = vld [vmem:[%s4981_s4 + $0x1a0] sm:$0xff]  ;;  %v76_v33 = vld [vmem:[%s4981_s4 + $0x1a8] sm:$0xff]  ;;  %v78_v11 = vld [vmem:[%s4981_s4 + $0x1b8] sm:$0xff] }
 0x4bd   :  { %1266 = vmatpush.msra.mxu0 %v78_v11 }
 0x4de   :  { %1283 = vxpose.xlu0.b32.start [1/4] (short) (narrow) %v75_v5, 8 }
 0x4e3   :  { %v1091_v12 = vpop.permute.xlu1 %1090 }
 0x4e4   :  { %v1116_v58 = vsel %vm1114_vm11, %v1113_v10, %v1091_v12  ;;  %v3222_v12 = vld [vmem:[%s4981_s4 + $0xb0] ss:$0 sm:$0xff] }
 0x4e5   :  { %v1119_v52 = vsel %vm1117_vm12, %v1116_v58, %v1099_v20  ;;  %v77_v20 = vld [vmem:[%s4981_s4 + $0x1b0] sm:$0xff] }
 0x4e6   :  { %1161 = vrot.lane.b32.xlu1 %v1119_v52, %s3514_s13  ;;  %3031 = vmatmul.msk.f32.gmra.mxu2 %vm4988_vm2, %v1119_v52 }
 0x4e7   :  { %1284 = vxpose.xlu0.b32.cont [2/4] (short) (narrow) %v76_v33, 8  ;;  %1267 = vmatpush.msra.mxu0 %v77_v20 }
 0x4e9   :  { %1268 = vmatpush.msra.mxu0 %v76_v33  ;;  %v1559_v33 = vld [vmem:[%s4981_s4 + $0xe8] sm:$0xff] }
 0x4eb   :  { %1269 = vmatpush.msra.mxu0 %v75_v5 }
 0x4ef   :  { %1285 = vxpose.xlu0.b32.cont [3/4] (short) (narrow) %v77_v20, 8 }
 0x4f7   :  { %1286 = vxpose.xlu0.b32.end [4/4] (short) (narrow) %v78_v11, 8 }
 0x52e   :  { %v1160_v31 = vpop.permute.xlu0 %1159 }
 0x52f   :  { %1165 = vxpose.xlu2.b32.start [1/2] (short) (narrow) %v1160_v31, 32 }
 0x53f   :  { %v1153_v19 = vpop.f32.mrf.mxu2 }
 0x540   :  { %v1154_v38 = vadd.f32 %v3221_v48, %v1153_v19 }
 0x542   :  { %v1431_v17 = vsel %vm1108_vm14, %v1154_v38, 0.0 }
 0x558   :  { %v1162_v45 = vpop.permute.xlu1 %1161 }
 0x559   :  { %1223 = vmatpush.msrb.mxu1 %v1162_v45  ;;  %1166 = vxpose.xlu2.b32.end [2/2] (short) (narrow) %v1162_v45, 32  ;;  %v3223_v45 = vld [vmem:[%s4981_s4 + $0xb8] ss:$0 sm:$0xff] }
 0x55b   :  { %1224 = vmatpush.msrb.mxu1 %v1160_v31 }
 0x55e   :  { %3183 = vset.pattern.permute.xlu0 %v3507_v24 }
 0x569   :  { %v1156_v6 = vpop.f32.mrf.mxu2 }
 0x56a   :  { %v1157_v47 = vadd.f32 %v3221_v48, %v1156_v6 }
 0x56c   :  { %v1432_v50 = vsel %vm1108_vm14, %v1157_v47, 0.0 }
 0x56d   :  { %v1433_v29 = vadd.f32 %v1432_v50, %v1431_v17 }
 0x56f   :  { %v1434_v22 = vrot.slane %v1433_v29, 4 }
 0x571   :  { %v1435_v4 = vadd.f32 %v1434_v22, %v1433_v29 }
 0x573   :  { %v1436_v9 = vrot.slane %v1435_v4, 2 }
 0x575   :  { %v1437_v30 = vadd.f32 %v1436_v9, %v1435_v4 }
 0x577   :  { %v1438_v7 = vrot.slane %v1437_v30, 1 }
 0x579   :  { %v1439_v59 = vadd.f32 %v1438_v7, %v1437_v30 }
 0x57b   :  { %v1447_v32 = vmul.f32 %v4217_v57, %v1439_v59 }
 0x57d   :  { %v1448_v27 = vsub.f32 %v1154_v38, %v1447_v32  ;;  %v1449_v15 = vsub.f32 %v1157_v47, %v1447_v32 }
 0x57f   :  { %v1450_v16 = vmul.f32 %v1448_v27, %v1448_v27  ;;  %v1451_v37 = vmul.f32 %v1449_v15, %v1449_v15 }
 0x581   :  { %v1452_v41 = vsel %vm1108_vm14, %v1450_v16, 0.0  ;;  %v1453_v63 = vsel %vm1108_vm14, %v1451_v37, 0.0  ;;  %v72_v37 = vld [vmem:[%s4981_s4 + $0x188] sm:$0xff] }
 0x582   :  { %v1454_v35 = vadd.f32 %v1453_v63, %v1452_v41 }
 0x584   :  { %v1455_v8 = vrot.slane %v1454_v35, 4 }
 0x586   :  { %v1456_v2 = vadd.f32 %v1455_v8, %v1454_v35  ;;  %v73_v35 = vld [vmem:[%s4981_s4 + $0x190] sm:$0xff] }
 0x588   :  { %v1457_v3 = vrot.slane %v1456_v2, 2 }
 0x58a   :  { %v1458_v13 = vadd.f32 %v1457_v3, %v1456_v2  ;;  %v74_v3 = vld [vmem:[%s4981_s4 + $0x198] sm:$0xff] }
 0x58c   :  { %v1459_v54 = vrot.slane %v1458_v13, 1 }
 0x58e   :  { %v1460_v14 = vadd.f32 %v1459_v54, %v1458_v13  ;;  %v1583_v13 = vld [vmem:[%s4981_s4 + $0xf0] sm:$0xf] }
 0x58f   :  { %3051 = vmatpush.xpose.msk.msra.mxu1 %vm36_vm1, %v1583_v13 }
 0x590   :  { %v1461_v56 = vmul.f32 %v1460_v14, %v4217_v57 }
 0x592   :  { %v1462_v46 = vadd.f32 1e-05, %v1461_v56  ;;  %v3390_v56 = vld [vmem:[%s4979_s2 + $0x8] sm:$0xff]  ;;  %s2947_s2 = sshll.u32 %s3526_s25, 4  ;;  %s2948_s2 = int_to_ptr.vmem [resolvable:$true] %s2947_s2 }
 0x594   :  { %3295 = vrsqrt.f32 %v1462_v46  ;;  %vm1469_vm0 = vweird.f32 %v1462_v46 }
 0x59a   :  { %v3296_v49 = vpop.eup %3295 }
 0x59b   :  { %v1464_v42 = vmul.f32 %v3296_v49, %v1462_v46  ;;  %vm1470_vm15 = vweird.f32 %v3296_v49  ;;  %v4310_v46 = vpop.trf.xlu0 }
 0x59c   :  { %vm1471_vm5 = vmor %vm1469_vm0, %vm1470_vm15 }
 0x59d   :  { %v1465_v18 = vmul.f32 %v3296_v49, %v1464_v42 }
 0x59f   :  { %v1466_v60 = vmul.f32 0.5, %v1465_v18 }
 0x5a1   :  { %v1467_v0 = vsub.f32 1.5, %v1466_v60 }
 0x5a3   :  { %v1468_v10 = vmul.f32 %v3296_v49, %v1467_v0 }
 0x5a5   :  { %v1472_v58 = vsel %vm1471_vm5, %v3296_v49, %v1468_v10  ;;  %v1526_v10 = vld [vmem:[%s4981_s4 + $0xe0] sm:$0xff] }
 0x5a6   :  { %v1473_v52 = vmul.f32 %v1472_v58, %v1448_v27  ;;  %v1474_v31 = vmul.f32 %v1472_v58, %v1449_v15  ;;  %v71_v27 = vld [vmem:[%s4981_s4 + $0x180] sm:$0xff] }
 0x5a8   :  { %v1476_v62 = vmul.f32 %v3222_v12, %v1473_v52  ;;  %v1477_v19 = vmul.f32 %v3222_v12, %v1474_v31 }
 0x5aa   :  { %v1479_v48 = vadd.f32 %v3223_v45, %v1476_v62  ;;  %v1480_v44 = vadd.f32 %v3223_v45, %v1477_v19 }
 0x5ac   :  { %v1483_v38 = vmin.f32 %v1479_v48, 0.0  ;;  %v1484_v61 = vmin.f32 %v1480_v44, 0.0  ;;  %vm1481_vm9 = vcmp.gt.f32.partialorder %v1479_v48, 0.0  ;;  %vm1482_vm10 = vcmp.gt.f32.partialorder %v1480_v44, 0.0 }
 0x5ae   :  { %v1485_v6 = vmul.f32 1.442695, %v1483_v38  ;;  %v1487_v47 = vmul.f32 1.442695, %v1484_v61 }
 0x5b0   :  { %3297 = vpow2.f32 %v1485_v6 }
 0x5b1   :  { %3299 = vpow2.f32 %v1487_v47 }
 0x5b6   :  { %v3298_v17 = vpop.eup %3297 }
 0x5b7   :  { %v3041_v50 = vadd.f32 -1.0, %v3298_v17  ;;  %v3300_v29 = vpop.eup %3299 }
 0x5b8   :  { %v3042_v22 = vadd.f32 -1.0, %v3300_v29 }
 0x5b9   :  { %v4253_v28 = vsel %vm1481_vm9, %v1479_v48, %v3041_v50 }
 0x5ba   :  { %3043 = vmatmul.msk.f32.vlgmr.msra.gmra.mxu2 %vm1108_vm14, %v4253_v28  ;;  %v4258_v55 = vsel %vm1482_vm10, %v1480_v44, %v3042_v22 }
 0x5bb   :  { %3197 = vset.pattern.permute.xlu2 %v3512_v40 }
 0x5c2   :  { %3044 = vmatmul.msk.f32.gmra.mxu2 %vm1108_vm14, %v4258_v55 }
 0x5ea   :  { %v1181_v4 = vpop.trf.xlu2 }
 0x5eb   :  { %3032 = vmatmul.msk.f32.vlgmr.msrb.gmra.mxu1 %vm252_vm6, %v1181_v4 }
 0x5f2   :  { %v1182_v9 = vpop.trf.xlu2 }
 0x5f3   :  { %3033 = vmatmul.msk.f32.gmra.mxu1 %vm252_vm6, %v1182_v9 }
 0x5fa   :  { %v1183_v1 = vpop.trf.xlu2 }
 0x5fb   :  { %3034 = vmatmul.msk.f32.gmra.mxu1 %vm252_vm6, %v1183_v1 }
 0x602   :  { %v1184_v30 = vpop.trf.xlu2 }
 0x603   :  { %3035 = vmatmul.msk.f32.gmra.mxu1 %vm252_vm6, %v1184_v30 }
 0x60b   :  { %3052 = vmatmul.msk.f32.vlgmr.msra.gmra.mxu1 %vm36_vm1, %v3389_v21 }
 0x613   :  { %3053 = vmatmul.msk.f32.gmra.mxu1 %vm36_vm1, %v3390_v56 }
 0x63d   :  { %v1520_v7 = vpop.f32.mrf.mxu2 }
 0x645   :  { %v4267_v59 = vpop.f32.mrf.mxu2 }
 0x646   :  { %3048 = vmatpush.xpose.msk.msrb.mxu2 %vm4988_vm2, %v4267_v59  ;;  %1722 = vmatpush.msrb.mxu0 %v4267_v59  ;;  %v4273_v32 = vpack.i.bf16 %v1520_v7, %v4267_v59 }
 0x648   :  { %3179 = vrot.lane.b32.xlu0 %v4273_v32, %s3505_s28  ;;  %3174 = vrot.lane.b32.xlu1 %v4273_v32, %s3515_s14 }
 0x649   :  { %3169 = vrot.lane.b32.xlu2 %v4273_v32, %s3504_s0  ;;  %1723 = vmatpush.msrb.mxu0 %v1520_v7  ;;  %s2961_s0 = sshll.u32 %s3528_s26, 4  ;;  %s2962_s0 = int_to_ptr.vmem [resolvable:$true] %s2961_s0 }
 0x64a   :  { %3049 = vmatpush.xpose.msk.msrb.mxu2 %vm4988_vm2, %v1520_v7 }
 0x64d   :  { %3050 = vmatmul.msk.f32.vlgmr.msrb.gmra.mxu2 %vm4988_vm2, %v1559_v33 }
 0x668   :  { %v1226_v15 = vpop.f32.mrf.mxu1 }
 0x669   :  { %v1238_v16 = vmul.f32 %v1226_v15, %v71_v27 }
 0x66b   :  { %3036 = vmatmul.msk.f32.vlgmr.msra.gmra.mxu0 %vm1108_vm14, %v1238_v16 }
 0x670   :  { %v1229_v41 = vpop.f32.mrf.mxu1 }
 0x671   :  { %v1239_v63 = vmul.f32 %v1229_v41, %v72_v37 }
 0x673   :  { %3037 = vmatmul.msk.f32.gmra.mxu0 %vm1108_vm14, %v1239_v63 }
 0x678   :  { %v1232_v8 = vpop.f32.mrf.mxu1 }
 0x679   :  { %v1240_v2 = vmul.f32 %v1232_v8, %v73_v35 }
 0x67b   :  { %3038 = vmatmul.msk.f32.gmra.mxu0 %vm1108_vm14, %v1240_v2 }
 0x680   :  { %v1235_v53 = vpop.f32.mrf.mxu1 }
 0x681   :  { %v1241_v51 = vmul.f32 %v1235_v53, %v74_v3 }
 0x683   :  { %3039 = vmatmul.msk.f32.gmra.mxu0 %vm1108_vm14, %v1241_v51 }
 0x688   :  { %v1604_v31 = vpop.f32.mrf.mxu1 }
 0x690   :  { %v1607_v62 = vpop.f32.mrf.mxu1 }
 0x6a3   :  { %v3170_v54 = vpop.permute.xlu2 %3169 }
 0x6a4   :  { %v3171_v26 = vunpack.i.l.bf16 %v3170_v54  ;;  %v3172_v14 = vunpack.i.h.bf16 %v3170_v54 }
 0x6a6   :  { %1824 = vmatpush.msra.mxu2 %v3171_v26 }
 0x6a8   :  { %1825 = vmatpush.msra.mxu2 %v3172_v14 }
 0x6ba   :  { %v3180_v49 = vpop.permute.xlu0 %3179  ;;  %v3175_v12 = vpop.permute.xlu1 %3174 }
 0x6bb   :  { %v3181_v5 = vunpack.i.l.bf16 %v3180_v49  ;;  %v3182_v42 = vunpack.i.h.bf16 %v3180_v49  ;;  %v3176_v20 = vunpack.i.l.bf16 %v3175_v12  ;;  %v3177_v58 = vunpack.i.h.bf16 %v3175_v12 }
 0x6bd   :  { %2028 = vmatpush.msrb.mxu1 %v3181_v5 }
 0x6bf   :  { %2029 = vmatpush.msrb.mxu1 %v3182_v42 }
 0x6e8   :  { %v1271_v18 = vpop.f32.mrf.mxu0 }
 0x6f0   :  { %v1274_v60 = vpop.f32.mrf.mxu0 }
 0x6f8   :  { %v1277_v0 = vpop.f32.mrf.mxu0 }
 0x700   :  { %v1280_v11 = vpop.f32.mrf.mxu0 }
 0x701   :  { %1330 = vmatpush.msra.mxu3 %v1280_v11 }
 0x703   :  { %1331 = vmatpush.msra.mxu3 %v1277_v0 }
 0x705   :  { %1332 = vmatpush.msra.mxu3 %v1274_v60 }
 0x707   :  { %1333 = vmatpush.msra.mxu3 %v1271_v18 }
 0x708   :  { %3040 = vmatmul.msk.f32.vlgmr.msra.gmra.mxu3 %vm1108_vm14, %v4310_v46 }
 0x709   :  { %3045 = vmatpush.xpose.msk.msrb.mxu3 %vm4988_vm2, %v1526_v10 }
 0x70d   :  { %3054 = vmatpush.xpose.msk.msra.mxu3 %vm36_vm1, %v3390_v56 }
 0x710   :  { %3046 = vmatmul.msk.f32.vlgmr.msrb.gmra.mxu3 %vm4988_vm2, %v1520_v7 }
 0x711   :  { %3055 = vmatpush.xpose.msk.msra.mxu3 %vm36_vm1, %v3389_v21 }
 0x715   :  { %1926 = vmatpush.msrb.mxu3 %v3176_v20 }
 0x717   :  { %1927 = vmatpush.msrb.mxu3 %v3177_v58 }
 0x718   :  { %3047 = vmatmul.msk.f32.gmra.mxu3 %vm4988_vm2, %v4267_v59 }
 0x720   :  { %3056 = vmatmul.msk.f32.vlgmr.msra.gmra.mxu3 %vm36_vm1, %v1583_v13 }
 0x78b   :  { %v4328_v52 = vpop.f32.mrf.mxu3 }
 0x793   :  { %v1553_v45 = vpop.f32.mrf.mxu3 }
 0x794   :  { %2142 = vperm.xlu0 %3183, %v1553_v45   ;;  %2244 = vperm.xlu1 %3184, %v1553_v45   ;;  %v1630_v44 = vadd.f32 %v1604_v31, %v1553_v45 }
 0x79b   :  { %v1556_v19 = vpop.f32.mrf.mxu3 }
 0x79c   :  { %v1631_v48 = vadd.f32 %v1607_v62, %v1556_v19  ;;  %3185 = vset.pattern.permute.xlu1 %v3508_v25  ;;  %3219 = vset.pattern.permute.xlu0 %v3506_v23 }
 0x79d   :  { %2039 = vperm.xlu1 %3185, %v1553_v45  }
 0x79e   :  { %1640 = vperm.xlu2 %3197, %v1631_v48  }
 0x7a3   :  { %v1627_v15 = vpop.f32.mrf.mxu3 }
 0x7a5   :  { %3186 = vset.pattern.permute.xlu1 %v3506_v23 }
 0x7a6   :  { %2346 = vperm.xlu1 %3186, %v1553_v45  }
 0x7ae   :  { %3187 = vset.pattern.permute.xlu1 %v3511_v39 }
 0x7af   :  { %1732 = vperm.xlu1 %3187, %v1630_v44  }
 0x7b7   :  { %3188 = vset.pattern.permute.xlu1 %v3510_v36 }
 0x7b8   :  { %1834 = vperm.xlu1 %3188, %v1630_v44  }
 0x7c0   :  { %3189 = vset.pattern.permute.xlu1 %v3512_v40 }
 0x7c1   :  { %1635 = vperm.xlu1 %3189, %v1630_v44  }
 0x7c9   :  { %3190 = vset.pattern.permute.xlu1 %v3513_v43 }
 0x7ca   :  { %1936 = vperm.xlu1 %3190, %v1630_v44   ;;  %v4405_v44 = vld [vmem:[%s4978_s1 + $0x8] sm:$0xff] }
 0x7d2   :  { %3191 = vset.pattern.permute.xlu1 %v3507_v24  ;;  %v4344_v24 = vpop.f32.mrf.mxu2 }
 0x7d3   :  { %2146 = vperm.xlu1 %3191, %v1556_v19   ;;  %v2149_v47 = vperm.slane %v4344_v24, 5  ;;  %v2251_v4 = vperm.slane %v4344_v24, 6  ;;  %v2353_v27 = vperm.slane %v4344_v24, 7  ;;  %v4370_v35 = vadd.f32 %v1627_v15, %v4344_v24 }
 0x7d5   :  { %v1739_v3 = vperm.slane %v4370_v35, 1  ;;  %v1943_v53 = vperm.slane %v4370_v35, 3  ;;  %v1841_v49 = vperm.slane %v4370_v35, 2  ;;  %v1643_v45 = vperm.slane %v4370_v35, 0 }
 0x7db   :  { %3192 = vset.pattern.permute.xlu1 %v3509_v34  ;;  %v2047_v34 = vperm.slane %v4344_v24, 4 }
 0x7dc   :  { %2248 = vperm.xlu1 %3192, %v1556_v19  }
 0x7e4   :  { %3193 = vset.pattern.permute.xlu1 %v3508_v25 }
 0x7e5   :  { %2044 = vperm.xlu1 %3193, %v1556_v19  }
 0x7ed   :  { %3194 = vset.pattern.permute.xlu1 %v3506_v23 }
 0x7ee   :  { %2350 = vperm.xlu1 %3194, %v1556_v19  }
 0x7f6   :  { %3195 = vset.pattern.permute.xlu1 %v3511_v39 }
 0x7f7   :  { %1736 = vperm.xlu1 %3195, %v1631_v48  }
 0x7ff   :  { %3196 = vset.pattern.permute.xlu1 %v3510_v36  ;;  %v4352_v36 = vld [vmem:[%s4978_s1] sm:$0xff] }
 0x800   :  { %1838 = vperm.xlu1 %3196, %v1631_v48  }
 0x806   :  { %v2245_v40 = vpop.permute.xlu1 %2244  ;;  %v2143_v17 = vpop.permute.xlu0 %2142 }
 0x807   :  { %v2150_v29 = vadd.f32 %v2149_v47, %v2143_v17  ;;  %v2252_v1 = vadd.f32 %v2251_v4, %v2245_v40 }
 0x808   :  { %3198 = vset.pattern.permute.xlu1 %v3513_v43 }
 0x809   :  { %1940 = vperm.xlu1 %3198, %v1631_v48   ;;  %v2154_v22 = vmul.f32 0.2, %v2150_v29  ;;  %vm2152_vm8 = vcmp.gt.f32.partialorder %v2150_v29, 0.0  ;;  %v2256_v59 = vmul.f32 0.2, %v2252_v1  ;;  %vm2254_vm13 = vcmp.gt.f32.partialorder %v2252_v1, 0.0 }
 0x80b   :  { %v2156_v30 = vsel %vm2152_vm8, %v2150_v29, %v2154_v22  ;;  %v2258_v63 = vsel %vm2254_vm13, %v2252_v1, %v2256_v59 }
 0x80c   :  { %v4362_v7 = vadd.f32 %v4352_v36, %v2156_v30  ;;  %v4373_v8 = vadd.f32 %v4352_v36, %v2258_v63 }
 0x80e   :  { %v2160_v16 = vsel %vm252_vm6, %v4362_v7, -inf  ;;  %v2262_v51 = vsel %vm252_vm6, %v4373_v8, -inf }
 0x80f   :  { %v2040_v38 = vpop.permute.xlu1 %2039 }
 0x810   :  { %v2048_v25 = vadd.f32 %v2047_v34, %v2040_v38 }
 0x812   :  { %vm2050_vm1 = vcmp.gt.f32.partialorder %v2048_v25, 0.0  ;;  %v2052_v23 = vmul.f32 0.2, %v2048_v25 }
 0x814   :  { %v2054_v61 = vsel %vm2050_vm1, %v2048_v25, %v2052_v23 }
 0x815   :  { %v4355_v39 = vadd.f32 %v4352_v36, %v2054_v61 }
 0x817   :  { %v2058_v43 = vsel %vm252_vm6, %v4355_v39, -inf }
 0x818   :  { %v2347_v6 = vpop.permute.xlu1 %2346  ;;  %2059 = vmax.xlane.f32.xlu2 %v2058_v43 }
 0x819   :  { %v2354_v37 = vadd.f32 %v2353_v27, %v2347_v6 }
 0x81b   :  { %v2358_v2 = vmul.f32 0.2, %v2354_v37  ;;  %vm2356_vm15 = vcmp.gt.f32.partialorder %v2354_v37, 0.0 }
 0x81d   :  { %v2360_v21 = vsel %vm2356_vm15, %v2354_v37, %v2358_v2 }
 0x81e   :  { %v4384_v14 = vadd.f32 %v4352_v36, %v2360_v21 }
 0x820   :  { %v2364_v18 = vsel %vm252_vm6, %v4384_v14, -inf }
 0x821   :  { %v1733_v50 = vpop.permute.xlu1 %1732 }
 0x822   :  { %v1740_v13 = vadd.f32 %v1739_v3, %v1733_v50 }
 0x824   :  { %v1744_v56 = vmul.f32 0.2, %v1740_v13  ;;  %vm1742_vm5 = vcmp.gt.f32.partialorder %v1740_v13, 0.0 }
 0x826   :  { %v1746_v33 = vsel %vm1742_vm5, %v1740_v13, %v1744_v56 }
 0x827   :  { %v4397_v20 = vadd.f32 %v4352_v36, %v1746_v33 }
 0x829   :  { %v1750_v62 = vsel %vm252_vm6, %v4397_v20, -inf }
 0x82a   :  { %v1835_v9 = vpop.permute.xlu1 %1834 }
 0x82b   :  { %v1842_v0 = vadd.f32 %v1841_v49, %v1835_v9 }
 0x82d   :  { %v1846_v58 = vmul.f32 0.2, %v1842_v0  ;;  %vm1844_vm9 = vcmp.gt.f32.partialorder %v1842_v0, 0.0 }
 0x82f   :  { %v1848_v38 = vsel %vm1844_vm9, %v1842_v0, %v1846_v58 }
 0x830   :  { %v4413_v61 = vadd.f32 %v4352_v36, %v1848_v38 }
 0x832   :  { %v1852_v17 = vsel %vm252_vm6, %v4413_v61, -inf }
 0x833   :  { %v1636_v41 = vpop.permute.xlu1 %1635  ;;  %2161 = vmax.xlane.f32.xlu1 %v2160_v16 }
 0x834   :  { %v1644_v48 = vadd.f32 %v1643_v45, %v1636_v41 }
 0x836   :  { %v1648_v43 = vmul.f32 0.2, %v1644_v48  ;;  %vm1646_vm1 = vcmp.gt.f32.partialorder %v1644_v48, 0.0 }
 0x838   :  { %v1650_v29 = vsel %vm1646_vm1, %v1644_v48, %v1648_v43 }
 0x839   :  { %v4423_v1 = vadd.f32 %v4352_v36, %v1650_v29 }
 0x83b   :  { %2263 = vmax.xlane.f32.xlu1 %v2262_v51  ;;  %v1654_v15 = vsel %vm252_vm6, %v4423_v1, -inf }
 0x83c   :  { %v1937_v54 = vpop.permute.xlu1 %1936 }
 0x83d   :  { %v1944_v26 = vadd.f32 %v1943_v53, %v1937_v54 }
 0x83f   :  { %vm1946_vm0 = vcmp.gt.f32.partialorder %v1944_v26, 0.0  ;;  %v1948_v5 = vmul.f32 0.2, %v1944_v26 }
 0x841   :  { %v1950_v42 = vsel %vm1946_vm0, %v1944_v26, %v1948_v5 }
 0x842   :  { %v4390_v60 = vadd.f32 %v4352_v36, %v1950_v42 }
 0x843   :  { %2365 = vmax.xlane.f32.xlu1 %v2364_v18 }
 0x844   :  { %v1954_v11 = vsel %vm252_vm6, %v4390_v60, -inf }
 0x845   :  { %v2147_v10 = vpop.permute.xlu1 %2146  ;;  %1955 = vmax.xlane.f32.xlu0 %v1954_v11 }
 0x846   :  { %v2151_v12 = vadd.f32 %v2149_v47, %v2147_v10 }
 0x848   :  { %vm2153_vm10 = vcmp.gt.f32.partialorder %v2151_v12, 0.0  ;;  %v2155_v31 = vmul.f32 0.2, %v2151_v12 }
 0x84a   :  { %v2157_v19 = vsel %vm2153_vm10, %v2151_v12, %v2155_v31 }
 0x84b   :  { %1751 = vmax.xlane.f32.xlu1 %v1750_v62  ;;  %v4408_v40 = vadd.f32 %v4405_v44, %v2157_v19 }
 0x84d   :  { %v2163_v25 = vsel %vm252_vm6, %v4408_v40, -inf }
 0x84e   :  { %v2249_v23 = vpop.permute.xlu1 %2248  ;;  %2164 = vmax.xlane.f32.xlu0 %v2163_v25 }
 0x84f   :  { %v2253_v6 = vadd.f32 %v2251_v4, %v2249_v23 }
 0x851   :  { %vm2255_vm8 = vcmp.gt.f32.partialorder %v2253_v6, 0.0  ;;  %v2257_v47 = vmul.f32 0.2, %v2253_v6 }
 0x853   :  { %1853 = vmax.xlane.f32.xlu1 %v1852_v17  ;;  %v2259_v50 = vsel %vm2255_vm8, %v2253_v6, %v2257_v47 }
 0x854   :  { %v4418_v22 = vadd.f32 %v4405_v44, %v2259_v50 }
 0x856   :  { %v2265_v9 = vsel %vm252_vm6, %v4418_v22, -inf }
 0x857   :  { %v2045_v30 = vpop.permute.xlu1 %2044  ;;  %2266 = vmax.xlane.f32.xlu2 %v2265_v9 }
 0x858   :  { %v2049_v4 = vadd.f32 %v2047_v34, %v2045_v30 }
 0x85a   :  { %vm2051_vm13 = vcmp.gt.f32.partialorder %v2049_v4, 0.0  ;;  %v2053_v59 = vmul.f32 0.2, %v2049_v4 }
 0x85b   :  { %1655 = vmax.xlane.f32.xlu1 %v1654_v15 }
 0x85c   :  { %v2055_v16 = vsel %vm2051_vm13, %v2049_v4, %v2053_v59 }
 0x85d   :  { %v4430_v37 = vadd.f32 %v4405_v44, %v2055_v16 }
 0x85f   :  { %v2061_v41 = vsel %vm252_vm6, %v4430_v37, -inf }
 0x860   :  { %v2351_v36 = vpop.permute.xlu1 %2350  ;;  %2062 = vmax.xlane.f32.xlu0 %v2061_v41 }
 0x861   :  { %v2355_v63 = vadd.f32 %v2353_v27, %v2351_v36  ;;  %v1641_v27 = vpop.permute.xlu2 %1640 }
 0x862   :  { %v1645_v18 = vadd.f32 %v1643_v45, %v1641_v27 }
 0x863   :  { %vm2357_vm15 = vcmp.gt.f32.partialorder %v2355_v63, 0.0  ;;  %v2359_v34 = vmul.f32 0.2, %v2355_v63 }
 0x864   :  { %v1649_v11 = vmul.f32 0.2, %v1645_v18  ;;  %vm1647_vm9 = vcmp.gt.f32.partialorder %v1645_v18, 0.0 }
 0x865   :  { %v2361_v2 = vsel %vm2357_vm15, %v2355_v63, %v2359_v34 }
 0x866   :  { %v4437_v51 = vadd.f32 %v4405_v44, %v2361_v2  ;;  %v1651_v31 = vsel %vm1647_vm9, %v1645_v18, %v1649_v11 }
 0x867   :  { %v4458_v62 = vadd.f32 %v4405_v44, %v1651_v31 }
 0x868   :  { %v2367_v13 = vsel %vm252_vm6, %v4437_v51, -inf }
 0x869   :  { %v1737_v21 = vpop.permute.xlu1 %1736  ;;  %2368 = vmax.xlane.f32.xlu1 %v2367_v13  ;;  %v1657_v19 = vsel %vm252_vm6, %v4458_v62, -inf }
 0x86a   :  { %v1741_v54 = vadd.f32 %v1739_v3, %v1737_v21 }
 0x86c   :  { %vm1743_vm0 = vcmp.gt.f32.partialorder %v1741_v54, 0.0  ;;  %v1745_v26 = vmul.f32 0.2, %v1741_v54 }
 0x86e   :  { %v1747_v56 = vsel %vm1743_vm0, %v1741_v54, %v1745_v26 }
 0x86f   :  { %v4444_v24 = vadd.f32 %v4405_v44, %v1747_v56 }
 0x871   :  { %v1753_v5 = vsel %vm252_vm6, %v4444_v24, -inf }
 0x872   :  { %v1839_v42 = vpop.permute.xlu1 %1838  ;;  %1754 = vmax.xlane.f32.xlu2 %v1753_v5 }
 0x873   :  { %v1843_v0 = vadd.f32 %v1841_v49, %v1839_v42 }
 0x875   :  { %vm1845_vm5 = vcmp.gt.f32.partialorder %v1843_v0, 0.0  ;;  %v1847_v33 = vmul.f32 0.2, %v1843_v0 }
 0x877   :  { %v1849_v3 = vsel %vm1845_vm5, %v1843_v0, %v1847_v33 }
 0x878   :  { %v4451_v10 = vadd.f32 %v4405_v44, %v1849_v3 }
 0x87a   :  { %v1855_v12 = vsel %vm252_vm6, %v4451_v10, -inf }
 0x87b   :  { %v1941_v58 = vpop.permute.xlu1 %1940  ;;  %1856 = vmax.xlane.f32.xlu1 %v1855_v12 }
 0x87c   :  { %v1945_v45 = vadd.f32 %v1943_v53, %v1941_v58 }
 0x87e   :  { %v1949_v49 = vmul.f32 0.2, %v1945_v45  ;;  %vm1947_vm10 = vcmp.gt.f32.partialorder %v1945_v45, 0.0 }
 0x880   :  { %v1951_v48 = vsel %vm1947_vm10, %v1945_v45, %v1949_v49 }
 0x881   :  { %v4463_v38 = vadd.f32 %v4405_v44, %v1951_v48 }
 0x883   :  { %1658 = vmax.xlane.f32.xlu1 %v1657_v19  ;;  %v1957_v35 = vsel %vm252_vm6, %v4463_v38, -inf }
 0x88a   :  { %3200 = vrot.lane.b32.xlu2 %v4273_v32, %s3516_s15  ;;  %s3529_s15 = smov [#allocation2]  }
 0x88b   :  { %1958 = vmax.xlane.f32.xlu1 %v1957_v35  ;;  %v2060_v43 = vpop.xlane.xlu2 %2059 }
 0x88c   :  { %v2064_v44 = vsub.f32 %v4355_v39, %v2060_v43 }
 0x88e   :  { %v2066_v9 = vmul.f32 1.442695, %v2064_v44 }
 0x8a6   :  { %v2162_v53 = vpop.xlane.xlu1 %2161 }
 0x8a7   :  { %v2166_v25 = vsub.f32 %v4362_v7, %v2162_v53 }
 0x8a9   :  { %v2168_v23 = vmul.f32 1.442695, %v2166_v25 }
 0x8ab   :  { %3301 = vpow2.f32 %v2168_v23 }
 0x8ae   :  { %v2264_v6 = vpop.xlane.xlu1 %2263 }
 0x8af   :  { %v2268_v47 = vsub.f32 %v4373_v8, %v2264_v6 }
 0x8b1   :  { %v4471_v17 = vpop.eup %3301  ;;  %v2270_v50 = vmul.f32 1.442695, %v2268_v47 }
 0x8b2   :  { %v2172_v29 = vsel %vm252_vm6, %v4471_v17, 0.0 }
 0x8b3   :  { %3303 = vpow2.f32 %v2270_v50  ;;  %2173 = vadd.xlane.f32.xlu1 %v2172_v29 }
 0x8b4   :  { %3305 = vpow2.f32 %v2066_v9 }
 0x8b6   :  { %v2366_v30 = vpop.xlane.xlu1 %2365 }
 0x8b7   :  { %v2370_v7 = vsub.f32 %v4384_v14, %v2366_v30 }
 0x8b8   :  { %v1956_v34 = vpop.xlane.xlu0 %1955 }
 0x8b9   :  { %v4477_v4 = vpop.eup %3303  ;;  %v2372_v59 = vmul.f32 1.442695, %v2370_v7 }
 0x8ba   :  { %v2274_v8 = vsel %vm252_vm6, %v4477_v4, 0.0  ;;  %v4481_v15 = vpop.eup %3305 }
 0x8bb   :  { %3307 = vpow2.f32 %v2372_v59  ;;  %2275 = vadd.xlane.f32.xlu0 %v2274_v8  ;;  %v2070_v14 = vsel %vm252_vm6, %v4481_v15, 0.0 }
 0x8be   :  { %v1752_v39 = vpop.xlane.xlu1 %1751 }
 0x8bf   :  { %v1756_v16 = vsub.f32 %v4397_v20, %v1752_v39  ;;  %v1960_v20 = vsub.f32 %v4390_v60, %v1956_v34 }
 0x8c1   :  { %v4484_v41 = vpop.eup %3307  ;;  %v1758_v36 = vmul.f32 1.442695, %v1756_v16  ;;  %v1962_v56 = vmul.f32 1.442695, %v1960_v20  ;;  %v2165_v27 = vpop.xlane.xlu0 %2164 }
 0x8c2   :  { %v2376_v63 = vsel %vm252_vm6, %v4484_v41, 0.0  ;;  %v2167_v0 = vsub.f32 %v4408_v40, %v2165_v27 }
 0x8c3   :  { %3309 = vpow2.f32 %v1758_v36  ;;  %2071 = vadd.xlane.f32.xlu0 %v2070_v14  ;;  %2377 = vadd.xlane.f32.xlu2 %v2376_v63 }
 0x8c4   :  { %v2170_v3 = vmul.f32 1.442695, %v2167_v0 }
 0x8c6   :  { %v1854_v2 = vpop.xlane.xlu1 %1853 }
 0x8c7   :  { %v1858_v13 = vsub.f32 %v4413_v61, %v1854_v2 }
 0x8c9   :  { %v4491_v21 = vpop.eup %3309  ;;  %v1860_v54 = vmul.f32 1.442695, %v1858_v13 }
 0x8ca   :  { %v1762_v26 = vsel %vm252_vm6, %v4491_v21, 0.0  ;;  %v2267_v5 = vpop.xlane.xlu2 %2266 }
 0x8cb   :  { %3311 = vpow2.f32 %v1860_v54  ;;  %1763 = vadd.xlane.f32.xlu2 %v1762_v26  ;;  %v2269_v61 = vsub.f32 %v4418_v22, %v2267_v5 }
 0x8cc   :  { %3313 = vpow2.f32 %v1962_v56 }
 0x8cd   :  { %v2272_v12 = vmul.f32 1.442695, %v2269_v61 }
 0x8ce   :  { %v1656_v42 = vpop.xlane.xlu1 %1655 }
 0x8cf   :  { %v1660_v18 = vsub.f32 %v4423_v1, %v1656_v42 }
 0x8d1   :  { %v4498_v33 = vpop.eup %3311  ;;  %v1662_v60 = vmul.f32 1.442695, %v1660_v18 }
 0x8d2   :  { %v1864_v11 = vsel %vm252_vm6, %v4498_v33, 0.0  ;;  %v4503_v31 = vpop.eup %3313 }
 0x8d3   :  { %3315 = vpow2.f32 %v1662_v60  ;;  %1865 = vadd.xlane.f32.xlu0 %v1864_v11  ;;  %v2063_v58 = vpop.xlane.xlu0 %2062  ;;  %v1966_v22 = vsel %vm252_vm6, %v4503_v31, 0.0 }
 0x8d4   :  { %3317 = vpow2.f32 %v2170_v3  ;;  %v2065_v1 = vsub.f32 %v4430_v37, %v2063_v58 }
 0x8d5   :  { %3319 = vpow2.f32 %v2272_v12 }
 0x8d6   :  { %v2068_v49 = vmul.f32 1.442695, %v2065_v1 }
 0x8d8   :  { %3321 = vpow2.f32 %v2068_v49 }
 0x8d9   :  { %v4506_v40 = vpop.eup %3315 }
 0x8da   :  { %v1666_v45 = vsel %vm252_vm6, %v4506_v40, 0.0  ;;  %v4513_v35 = vpop.eup %3317 }
 0x8db   :  { %1967 = vadd.xlane.f32.xlu0 %v1966_v22  ;;  %1667 = vadd.xlane.f32.xlu1 %v1666_v45  ;;  %v4515_v53 = vpop.eup %3319  ;;  %v2175_v25 = vsel %vm252_vm6, %v4513_v35, 0.0 }
 0x8dc   :  { %v2369_v19 = vpop.xlane.xlu1 %2368  ;;  %v2277_v23 = vsel %vm252_vm6, %v4515_v53, 0.0 }
 0x8dd   :  { %v2371_v48 = vsub.f32 %v4437_v51, %v2369_v19 }
 0x8de   :  { %v4521_v6 = vpop.eup %3321 }
 0x8df   :  { %v2374_v37 = vmul.f32 1.442695, %v2371_v48  ;;  %v2073_v29 = vsel %vm252_vm6, %v4521_v6, 0.0 }
 0x8e1   :  { %3323 = vpow2.f32 %v2374_v37 }
 0x8e3   :  { %2176 = vadd.xlane.f32.xlu0 %v2175_v25  ;;  %2278 = vadd.xlane.f32.xlu1 %v2277_v23 }
 0x8e5   :  { %v1755_v43 = vpop.xlane.xlu2 %1754 }
 0x8e6   :  { %v1757_v51 = vsub.f32 %v4444_v24, %v1755_v43 }
 0x8e7   :  { %v4524_v47 = vpop.eup %3323 }
 0x8e8   :  { %v1760_v44 = vmul.f32 1.442695, %v1757_v51  ;;  %v2379_v50 = vsel %vm252_vm6, %v4524_v47, 0.0 }
 0x8e9   :  { %2380 = vadd.xlane.f32.xlu2 %v2379_v50 }
 0x8ea   :  { %3325 = vpow2.f32 %v1760_v44 }
 0x8eb   :  { %2074 = vadd.xlane.f32.xlu0 %v2073_v29 }
 0x8ed   :  { %v3201_v9 = vpop.permute.xlu2 %3200 }
 0x8ee   :  { %v3202_v30 = vunpack.i.l.bf16 %v3201_v9  ;;  %v1857_v7 = vpop.xlane.xlu1 %1856  ;;  %v3203_v24 = vunpack.i.h.bf16 %v3201_v9 }
 0x8ef   :  { %v1859_v59 = vsub.f32 %v4451_v10, %v1857_v7 }
 0x8f0   :  { %v4531_v8 = vpop.eup %3325  ;;  %2234 = vmatpush.msrb.mxu2 %v3202_v30 }
 0x8f1   :  { %v1862_v39 = vmul.f32 1.442695, %v1859_v59  ;;  %v1765_v16 = vsel %vm252_vm6, %v4531_v8, 0.0 }
 0x8f2   :  { %2235 = vmatpush.msrb.mxu2 %v3203_v24  ;;  %1766 = vadd.xlane.f32.xlu2 %v1765_v16 }
 0x8f3   :  { %3327 = vpow2.f32 %v1862_v39 }
 0x8f6   :  { %v1659_v36 = vpop.xlane.xlu1 %1658 }
 0x8f7   :  { %v1661_v14 = vsub.f32 %v4458_v62, %v1659_v36 }
 0x8f9   :  { %v4536_v63 = vpop.eup %3327  ;;  %v1664_v34 = vmul.f32 1.442695, %v1661_v14 }
 0x8fa   :  { %v1867_v10 = vsel %vm252_vm6, %v4536_v63, 0.0 }
 0x8fb   :  { %3329 = vpow2.f32 %v1664_v34  ;;  %1868 = vadd.xlane.f32.xlu1 %v1867_v10 }
 0x8fe   :  { %v1959_v2 = vpop.xlane.xlu1 %1958 }
 0x8ff   :  { %v1961_v13 = vsub.f32 %v4463_v38, %v1959_v2 }
 0x901   :  { %v4541_v20 = vpop.eup %3329  ;;  %v1964_v54 = vmul.f32 1.442695, %v1961_v13 }
 0x902   :  { %v1669_v26 = vsel %vm252_vm6, %v4541_v20, 0.0 }
 0x903   :  { %3331 = vpow2.f32 %v1964_v54  ;;  %1670 = vadd.xlane.f32.xlu2 %v1669_v26 }
 0x909   :  { %v4545_v62 = vpop.eup %3331 }
 0x90a   :  { %v1969_v56 = vsel %vm252_vm6, %v4545_v62, 0.0 }
 0x90b   :  { %1970 = vadd.xlane.f32.xlu0 %v1969_v56 }
 0x914   :  { %3205 = vrot.lane.b32.xlu1 %v4273_v32, %s3518_s18 }
 0x91b   :  { %3215 = vrot.lane.b32.xlu2 %v4273_v32, %s3517_s16  ;;  %s2937_s16 = sshll.u32 %s3529_s15, 4  ;;  %s2938_s16 = int_to_ptr.vmem [resolvable:$true] %s2937_s16 }
 0x91f   :  { %3210 = vrot.lane.b32.xlu0 %v4273_v32, %s3514_s13 }
 0x926   :  { %v4561_v0 = vpop.xlane.xlu1 %2173 }
 0x92e   :  { %v4555_v38 = vpop.xlane.xlu0 %2275 }
 0x936   :  { %v4557_v27 = vpop.xlane.xlu2 %2377  ;;  %v4559_v5 = vpop.xlane.xlu0 %2071 }
 0x93e   :  { %v1764_v42 = vpop.xlane.xlu2 %1763 }
 0x93f   :  { %3333 = vrcp.f32 %v1764_v42  ;;  %v1779_v3 = vand.u32 2147483648, %v1764_v42  ;;  %v1777_v58 = vand.u32 2147483647, %v1764_v42  ;;  %vm1773_vm8 = vweird.f32 %v1764_v42 }
 0x941   :  { %v1780_v22 = vor.u32 1.1754944e-38, %v1779_v3  ;;  %vm1778_vm15 = vcmp.eq.f32.partialorder %v1777_v58, 8.507059e+37 }
 0x945   :  { %v3334_v18 = vpop.eup %3333 }
 0x946   :  { %v1769_v61 = vmul.f32 %v3334_v18, %v1764_v42  ;;  %v1866_v60 = vpop.xlane.xlu0 %1865  ;;  %vm1774_vm1 = vweird.f32 %v3334_v18 }
 0x947   :  { %3335 = vrcp.f32 %v1866_v60  ;;  %vm1775_vm13 = vmor %vm1773_vm8, %vm1774_vm1  ;;  %v1881_v23 = vand.u32 2147483648, %v1866_v60  ;;  %v1879_v44 = vand.u32 2147483647, %v1866_v60  ;;  %vm1875_vm5 = vweird.f32 %v1866_v60 }
 0x948   :  { %v1770_v11 = vsub.f32 1.0, %v1769_v61 }
 0x949   :  { %v1882_v9 = vor.u32 1.1754944e-38, %v1881_v23  ;;  %vm1880_vm10 = vcmp.eq.f32.partialorder %v1879_v44, 8.507059e+37 }
 0x94a   :  { %v1771_v12 = vmul.f32 %v3334_v18, %v1770_v11 }
 0x94c   :  { %v1772_v32 = vadd.f32 %v3334_v18, %v1771_v12 }
 0x94d   :  { %v3336_v1 = vpop.eup %3335 }
 0x94e   :  { %v1776_v45 = vsel %vm1775_vm13, %v3334_v18, %v1772_v32  ;;  %v1871_v49 = vmul.f32 %v3336_v1, %v1866_v60  ;;  %v1968_v19 = vpop.xlane.xlu0 %1967  ;;  %v1668_v48 = vpop.xlane.xlu1 %1667  ;;  %vm1876_vm0 = vweird.f32 %v3336_v1 }
 0x94f   :  { %v1781_v37 = vsel %vm1778_vm15, %v1780_v22, %v1776_v45  ;;  %3337 = vrcp.f32 %v1968_v19  ;;  %vm1877_vm9 = vmor %vm1875_vm5, %vm1876_vm0  ;;  %v1983_v36 = vand.u32 2147483648, %v1968_v19  ;;  %v1981_v10 = vand.u32 2147483647, %v1968_v19 }
 0x950   :  { %v1872_v25 = vsub.f32 1.0, %v1871_v49  ;;  %3339 = vrcp.f32 %v1668_v48  ;;  %v1796_v43 = vmul.f32 %v4491_v21, %v1781_v37  ;;  %v1683_v2 = vand.u32 2147483648, %v1668_v48 }
 0x951   :  { %3341 = vrcp.f32 %v4561_v0  ;;  %v1681_v54 = vand.u32 2147483647, %v1668_v48  ;;  %vm1977_vm13 = vweird.f32 %v1968_v19  ;;  %v1984_v42 = vor.u32 1.1754944e-38, %v1983_v36 }
 0x952   :  { %v1873_v51 = vmul.f32 %v3336_v1, %v1872_v25  ;;  %3059 = vmatmul.msk.f32.vlgmr.msra.gmra.mxu2 %vm252_vm6, %v1796_v43  ;;  %vm1677_vm0 = vweird.f32 %v1668_v48  ;;  %vm1982_vm5 = vcmp.eq.f32.partialorder %v1981_v10, 8.507059e+37  ;;  %v1684_v61 = vor.u32 1.1754944e-38, %v1683_v2 }
 0x953   :  { %3343 = vrcp.f32 %v4555_v38 }
 0x954   :  { %v1874_v50 = vadd.f32 %v3336_v1, %v1873_v51  ;;  %v2189_v51 = vand.u32 2147483648, %v4561_v0 }
 0x955   :  { %v3338_v29 = vpop.eup %3337 }
 0x956   :  { %v3340_v30 = vpop.eup %3339  ;;  %v1878_v7 = vsel %vm1877_vm9, %v3336_v1, %v1874_v50  ;;  %v1973_v59 = vmul.f32 %v3338_v29, %v1968_v19  ;;  %vm1978_vm1 = vweird.f32 %v3338_v29  ;;  %v4581_v45 = vpop.xlane.xlu0 %2176  ;;  %v2190_v36 = vor.u32 1.1754944e-38, %v2189_v51 }
 0x957   :  { %v1883_v24 = vsel %vm1880_vm10, %v1882_v9, %v1878_v7  ;;  %v1673_v39 = vmul.f32 %v3340_v30, %v1668_v48  ;;  %vm1678_vm8 = vweird.f32 %v3340_v30  ;;  %vm1979_vm15 = vmor %vm1977_vm13, %vm1978_vm1  ;;  %vm1682_vm10 = vcmp.eq.f32.partialorder %v1681_v54, 8.507059e+37  ;;  %v4571_v12 = vpop.eup %3341  ;;  %v4583_v19 = vpop.xlane.xlu1 %2278 }
 0x958   :  { %v1974_v16 = vsub.f32 1.0, %v1973_v59  ;;  %v1898_v21 = vmul.f32 %v4498_v33, %v1883_v24  ;;  %vm1679_vm9 = vmor %vm1677_vm0, %vm1678_vm8  ;;  %v2179_v1 = vmul.f32 %v4571_v12, %v4561_v0  ;;  %vm2184_vm1 = vweird.f32 %v4571_v12 }
 0x959   :  { %v1674_v14 = vsub.f32 1.0, %v1673_v39  ;;  %v4579_v22 = vpop.eup %3343  ;;  %vm2183_vm13 = vweird.f32 %v4561_v0 }
 0x95a   :  { %v1975_v34 = vmul.f32 %v3338_v29, %v1974_v16  ;;  %3061 = vmatmul.msk.f32.vlgmr.msrb.gmra.mxu3 %vm252_vm6, %v1898_v21  ;;  %v2180_v48 = vsub.f32 1.0, %v2179_v1  ;;  %v2187_v16 = vand.u32 2147483647, %v4561_v0  ;;  %v2291_v21 = vand.u32 2147483648, %v4555_v38 }
 0x95b   :  { %v1675_v13 = vmul.f32 %v3340_v30, %v1674_v14 }
 0x95c   :  { %v1976_v26 = vadd.f32 %v3338_v29, %v1975_v34  ;;  %v4568_v56 = vpop.xlane.xlu2 %2380  ;;  %v2181_v37 = vmul.f32 %v4571_v12, %v2180_v48 }
 0x95d   :  { %v1676_v18 = vadd.f32 %v3340_v30, %v1675_v13 }
 0x95e   :  { %v1980_v33 = vsel %vm1979_vm15, %v3338_v29, %v1976_v26  ;;  %v2182_v29 = vadd.f32 %v4571_v12, %v2181_v37  ;;  %vm4606_vm15 = vmor %vm2183_vm13, %vm2184_vm1  ;;  %vm2285_vm1 = vweird.f32 %v4555_v38 }
 0x95f   :  { %v1985_v60 = vsel %vm1982_vm5, %v1984_v42, %v1980_v33  ;;  %v1680_v11 = vsel %vm1679_vm9, %v3340_v30, %v1676_v18  ;;  %vm2286_vm5 = vweird.f32 %v4579_v22  ;;  %v2289_v33 = vand.u32 2147483647, %v4555_v38 }
 0x960   :  { %v1685_v3 = vsel %vm1682_vm10, %v1684_v61, %v1680_v11  ;;  %v2000_v32 = vmul.f32 %v4503_v31, %v1985_v60  ;;  %v2186_v26 = vsel %vm4606_vm15, %v4571_v12, %v2182_v29  ;;  %v4624_v61 = vpop.xlane.xlu0 %2074  ;;  %vm4631_vm13 = vmor %vm2285_vm1, %vm2286_vm5 }
 0x961   :  { %v1700_v58 = vmul.f32 %v4506_v40, %v1685_v3  ;;  %v2281_v40 = vmul.f32 %v4579_v22, %v4555_v38  ;;  %vm2290_vm15 = vcmp.eq.f32.partialorder %v2289_v33, 8.507059e+37 }
 0x962   :  { %3063 = vmatmul.msk.f32.vlgmr.msrb.gmra.mxu1 %vm252_vm6, %v2000_v32 }
 0x963   :  { %3057 = vmatmul.msk.f32.vlgmr.msrb.gmra.mxu0 %vm252_vm6, %v1700_v58  ;;  %v2282_v25 = vsub.f32 1.0, %v2281_v40 }
 0x965   :  { %v1767_v49 = vpop.xlane.xlu2 %1766  ;;  %v2283_v9 = vmul.f32 %v4579_v22, %v2282_v25 }
 0x966   :  { %3345 = vrcp.f32 %v1767_v49  ;;  %v1793_v30 = vand.u32 2147483648, %v1767_v49  ;;  %v1791_v39 = vand.u32 2147483647, %v1767_v49  ;;  %vm1787_vm0 = vweird.f32 %v1767_v49 }
 0x967   :  { %3347 = vrcp.f32 %v4581_v45  ;;  %v2284_v2 = vadd.f32 %v4579_v22, %v2283_v9 }
 0x968   :  { %3349 = vrcp.f32 %v4559_v5  ;;  %v1794_v13 = vor.u32 1.1754944e-38, %v1793_v30  ;;  %vm1792_vm10 = vcmp.eq.f32.partialorder %v1791_v39, 8.507059e+37  ;;  %v2303_v39 = vand.u32 2147483647, %v4583_v19 }
 0x969   :  { %3351 = vrcp.f32 %v4557_v27  ;;  %v2288_v1 = vsel %vm4631_vm13, %v4579_v22, %v2284_v2  ;;  %v2201_v2 = vand.u32 2147483647, %v4581_v45 }
 0x96c   :  { %v3346_v31 = vpop.eup %3345 }
 0x96d   :  { %v1783_v23 = vmul.f32 %v3346_v31, %v1767_v49  ;;  %v4590_v43 = vpop.eup %3347  ;;  %vm1788_vm8 = vweird.f32 %v3346_v31 }
 0x96e   :  { %v4594_v44 = vpop.xlane.xlu1 %1868  ;;  %v4600_v7 = vpop.eup %3349  ;;  %v2193_v59 = vmul.f32 %v4590_v43, %v4581_v45  ;;  %vm1789_vm9 = vmor %vm1787_vm0, %vm1788_vm8  ;;  %vm2188_vm8 = vcmp.eq.f32.partialorder %v2187_v16, 8.507059e+37  ;;  %vm2198_vm1 = vweird.f32 %v4590_v43 }
 0x96f   :  { %v1784_v50 = vsub.f32 1.0, %v1783_v23  ;;  %3353 = vrcp.f32 %v4594_v44  ;;  %v4612_v10 = vpop.eup %3351  ;;  %v2077_v0 = vmul.f32 %v4600_v7, %v4559_v5  ;;  %v2191_v32 = vsel %vm2188_vm8, %v2190_v36, %v2186_v26 }
 0x970   :  { %3355 = vrcp.f32 %v4583_v19  ;;  %v2194_v42 = vsub.f32 1.0, %v2193_v59  ;;  %v4637_v12 = vmul.f32 %v4612_v10, %v4557_v27  ;;  %v1895_v23 = vand.u32 2147483648, %v4594_v44 }
 0x971   :  { %v1785_v24 = vmul.f32 %v3346_v31, %v1784_v50  ;;  %v2078_v49 = vsub.f32 1.0, %v2077_v0  ;;  %v2206_v50 = vmul.f32 %v4471_v17, %v2191_v32  ;;  %v1893_v22 = vand.u32 2147483647, %v4594_v44 }
 0x972   :  { %v2195_v37 = vmul.f32 %v4590_v43, %v2194_v42  ;;  %v2384_v51 = vsub.f32 1.0, %v4637_v12  ;;  %vm1889_vm5 = vweird.f32 %v4594_v44  ;;  %v1896_v16 = vor.u32 1.1754944e-38, %v1895_v23 }
 0x973   :  { %v1786_v34 = vadd.f32 %v3346_v31, %v1785_v24  ;;  %v2079_v29 = vmul.f32 %v4600_v7, %v2078_v49  ;;  %v2203_v24 = vand.u32 2147483648, %v4581_v45  ;;  %vm1894_vm8 = vcmp.eq.f32.partialorder %v1893_v22, 8.507059e+37 }
 0x974   :  { %v2196_v17 = vadd.f32 %v4590_v43, %v2195_v37  ;;  %v2385_v49 = vmul.f32 %v4612_v10, %v2384_v51 }
 0x975   :  { %v3354_v54 = vpop.eup %3353  ;;  %v1790_v18 = vsel %vm1789_vm9, %v3346_v31, %v1786_v34  ;;  %v2292_v31 = vor.u32 1.1754944e-38, %v2291_v21  ;;  %vm2197_vm9 = vweird.f32 %v4581_v45 }
 0x976   :  { %v1885_v60 = vmul.f32 %v3354_v54, %v4594_v44  ;;  %v4627_v11 = vpop.xlane.xlu2 %1670  ;;  %v1795_v3 = vsel %vm1792_vm10, %v1794_v13, %v1790_v18  ;;  %v4644_v40 = vpop.eup %3355  ;;  %vm1890_vm0 = vweird.f32 %v3354_v54  ;;  %vm4677_vm13 = vmor %vm2197_vm9, %vm2198_vm1  ;;  %vm2202_vm9 = vcmp.eq.f32.partialorder %v2201_v2, 8.507059e+37 }
 0x977   :  { %3357 = vrcp.f32 %v4627_v11  ;;  %v1797_v38 = vmul.f32 %v4531_v8, %v1795_v3  ;;  %v2293_v8 = vsel %vm2290_vm15, %v2292_v31, %v2288_v1  ;;  %v2295_v9 = vmul.f32 %v4644_v40, %v4583_v19  ;;  %vm4658_vm10 = vmor %vm1889_vm5, %vm1890_vm0 }
 0x978   :  { %v1886_v48 = vsub.f32 1.0, %v1885_v60  ;;  %3359 = vrcp.f32 %v4624_v61  ;;  %v2200_v60 = vsel %vm4677_vm13, %v4590_v43, %v2196_v17  ;;  %v2204_v3 = vor.u32 1.1754944e-38, %v2203_v24 }
 0x979   :  { %3060 = vmatmul.msk.f32.gmra.mxu2 %vm252_vm6, %v1797_v38  ;;  %v2296_v0 = vsub.f32 1.0, %v2295_v9  ;;  %v1695_v45 = vand.u32 2147483647, %v4627_v11  ;;  %vm2081_vm0 = vweird.f32 %v4559_v5  ;;  %vm2082_vm5 = vweird.f32 %v4600_v7 }
 0x97a   :  { %v1887_v25 = vmul.f32 %v3354_v54, %v1886_v48  ;;  %v2205_v43 = vsel %vm2202_vm9, %v2204_v3, %v2200_v60  ;;  %v4696_v1 = vadd.f32 %v4600_v7, %v2079_v29  ;;  %v2308_v31 = vmul.f32 %v4477_v4, %v2293_v8  ;;  %v3394_v3 = vld [vmem:[%s4981_s4 + $0x1b0] sm:$0xff] }
 0x97b   :  { %vm1696_vm13 = vcmp.eq.f32.partialorder %v1695_v45, 8.507059e+37  ;;  %v2207_v51 = vmul.f32 %v4513_v35, %v2205_v43  ;;  %v2305_v8 = vand.u32 2147483648, %v4583_v19  ;;  %v2785_v43 = vld [vmem:[%s4981_s4 + $0x168] sm:$0xff] }
 0x97c   :  { %v1888_v30 = vadd.f32 %v3354_v54, %v1887_v25 }
 0x97d   :  { %v3358_v59 = vpop.eup %3357 }
 0x97e   :  { %v1687_v36 = vmul.f32 %v3358_v59, %v4627_v11  ;;  %v3216_v44 = vpop.permute.xlu2 %3215  ;;  %v4666_v14 = vpop.xlane.xlu0 %1970  ;;  %v1892_v21 = vsel %vm4658_vm10, %v3354_v54, %v1888_v30  ;;  %v1697_v54 = vand.u32 2147483648, %v4627_v11  ;;  %vm1692_vm15 = vweird.f32 %v3358_v59 }
 0x97f   :  { %v3217_v34 = vunpack.i.l.bf16 %v3216_v44  ;;  %3361 = vrcp.f32 %v4666_v14  ;;  %v1897_v26 = vsel %vm1894_vm8, %v1896_v16, %v1892_v21  ;;  %v3218_v18 = vunpack.i.h.bf16 %v3216_v44  ;;  %v4691_v12 = vpop.eup %3359 }
 0x980   :  { %3363 = vrcp.f32 %v4568_v56  ;;  %v1688_v13 = vsub.f32 1.0, %v1687_v36  ;;  %v1899_v33 = vmul.f32 %v4536_v63, %v1897_v26  ;;  %v2297_v63 = vmul.f32 %v4644_v40, %v2296_v0 }
 0x981   :  { %3067 = vmatmul.msk.f32.vlgmr.msrb.gmra.mxu2 %vm252_vm6, %v2206_v50  ;;  %2438 = vmatpush.msra.mxu1 %v3217_v34  ;;  %vm1691_vm10 = vweird.f32 %v4627_v11  ;;  %v1698_v48 = vor.u32 1.1754944e-38, %v1697_v54  ;;  %vm2299_vm8 = vweird.f32 %v4583_v19  ;;  %v2091_v50 = vmul.f32 %v4691_v12, %v4624_v61 }
 0x982   :  { %v1689_v58 = vmul.f32 %v3358_v59, %v1688_v13  ;;  %3062 = vmatmul.msk.f32.gmra.mxu3 %vm252_vm6, %v1899_v33  ;;  %vm1693_vm1 = vmor %vm1691_vm10, %vm1692_vm15  ;;  %v2298_v4 = vadd.f32 %v4644_v40, %v2297_v63  ;;  %vm2300_vm15 = vweird.f32 %v4644_v40  ;;  %v1997_v24 = vand.u32 2147483648, %v4666_v14 }
 0x983   :  { %2439 = vmatpush.msra.mxu1 %v3218_v18  ;;  %v2085_v16 = vand.u32 2147483647, %v4559_v5  ;;  %v2087_v36 = vand.u32 2147483648, %v4559_v5  ;;  %v2393_v44 = vand.u32 2147483648, %v4557_v27  ;;  %v2092_v21 = vsub.f32 1.0, %v2091_v50  ;;  %vm4726_vm10 = vmor %vm2299_vm8, %vm2300_vm15 }
 0x984   :  { %v1690_v38 = vadd.f32 %v3358_v59, %v1689_v58  ;;  %vm1991_vm2 = vweird.f32 %v4666_v14  ;;  %v2302_v19 = vsel %vm4726_vm10, %v4644_v40, %v2298_v4  ;;  %v2386_v13 = vadd.f32 %v4612_v10, %v2385_v49 }
 0x985   :  { %v3362_v32 = vpop.eup %3361  ;;  %v2306_v26 = vor.u32 1.1754944e-38, %v2305_v8  ;;  %v1998_v42 = vor.u32 1.1754944e-38, %v1997_v24  ;;  %vm2304_vm8 = vcmp.eq.f32.partialorder %v2303_v39, 8.507059e+37  ;;  %v2088_v40 = vor.u32 1.1754944e-38, %v2087_v36 }
 0x986   :  { %v4701_v37 = vpop.eup %3363  ;;  %v1987_v25 = vmul.f32 %v3362_v32, %v4666_v14  ;;  %v3206_v11 = vpop.permute.xlu1 %3205  ;;  %v1694_v23 = vsel %vm1693_vm1, %v3358_v59, %v1690_v38  ;;  %vm1992_vm9 = vweird.f32 %v3362_v32  ;;  %vm4734_vm1 = vmor %vm2081_vm0, %vm2082_vm5  ;;  %v2093_v33 = vmul.f32 %v4691_v12, %v2092_v21 }
 0x987   :  { %v3207_v22 = vunpack.i.l.bf16 %v3206_v11  ;;  %v1699_v29 = vsel %vm1696_vm13, %v1698_v48, %v1694_v23  ;;  %v3208_v59 = vunpack.i.h.bf16 %v3206_v11  ;;  %v2397_v35 = vmul.f32 %v4701_v37, %v4568_v56  ;;  %vm1993_vm0 = vmor %vm1991_vm2, %vm1992_vm9 }
 0x988   :  { %v1988_v9 = vsub.f32 1.0, %v1987_v25  ;;  %v1701_v30 = vmul.f32 %v4541_v20, %v1699_v29  ;;  %v1995_v20 = vand.u32 2147483647, %v4666_v14  ;;  %vm2388_vm13 = vweird.f32 %v4612_v10  ;;  %v3393_v14 = vld [vmem:[%s4981_s4 + $0x1b8] sm:$0xff]  ;;  %v3396_v25 = vld [vmem:[%s4981_s4 + $0x1a0] sm:$0xff] }
 0x989   :  { %3068 = vmatmul.msk.f32.gmra.mxu2 %vm252_vm6, %v2207_v51  ;;  %2336 = vmatpush.msra.mxu3 %v3207_v22  ;;  %v2084_v5 = vsel %vm4734_vm1, %v4600_v7, %v4696_v1  ;;  %v2398_v54 = vsub.f32 1.0, %v2397_v35  ;;  %v2307_v7 = vsel %vm2304_vm8, %v2306_v26, %v2302_v19  ;;  %vm2086_vm2 = vcmp.eq.f32.partialorder %v2085_v16, 8.507059e+37  ;;  %v2524_v19 = vld [vmem:[%s4981_s4 + $0x130] sm:$0xff]  ;;  %v2521_v26 = vld [vmem:[%s4981_s4 + $0x118] sm:$0xff] }
 0x98a   :  { %v1989_v17 = vmul.f32 %v3362_v32, %v1988_v9  ;;  %3058 = vmatmul.msk.f32.gmra.mxu0 %vm252_vm6, %v1701_v30  ;;  %vm1996_vm5 = vcmp.eq.f32.partialorder %v1995_v20, 8.507059e+37  ;;  %vm2387_vm15 = vweird.f32 %v4557_v27  ;;  %v2391_v58 = vand.u32 2147483647, %v4557_v27 }
 0x98b   :  { %2337 = vmatpush.msra.mxu3 %v3208_v59  ;;  %v2089_v63 = vsel %vm2086_vm2, %v2088_v40, %v2084_v5  ;;  %vm4762_vm9 = vmor %vm2387_vm15, %vm2388_vm13  ;;  %v2399_v27 = vmul.f32 %v4701_v37, %v2398_v54  ;;  %v2309_v49 = vmul.f32 %v4515_v53, %v2307_v7  ;;  %v2394_v48 = vor.u32 1.1754944e-38, %v2393_v44  ;;  %v2523_v5 = vld [vmem:[%s4981_s4 + $0x128] sm:$0xff]  ;;  %v2518_v54 = vld [vmem:[%s4981_s4 + $0x100] sm:$0xff] }
 0x98c   :  { %3069 = vmatmul.msk.f32.vlgmr.msra.gmra.mxu3 %vm252_vm6, %v2308_v31  ;;  %v1990_v0 = vadd.f32 %v3362_v32, %v1989_v17  ;;  %v2390_v1 = vsel %vm4762_vm9, %v4612_v10, %v2386_v13  ;;  %v2094_v31 = vadd.f32 %v4691_v12, %v2093_v33  ;;  %vm2096_vm10 = vweird.f32 %v4691_v12  ;;  %v2522_v13 = vld [vmem:[%s4981_s4 + $0x120] sm:$0xff] }
 0x98d   :  { %2663 = vmatpush.msrb.mxu3 %v3393_v14  ;;  %vm2392_vm1 = vcmp.eq.f32.partialorder %v2391_v58, 8.507059e+37  ;;  %v2101_v10 = vand.u32 2147483648, %v4624_v61  ;;  %vm2095_vm13 = vweird.f32 %v4624_v61  ;;  %v2104_v53 = vmul.f32 %v4481_v15, %v2089_v63  ;;  %v2519_v14 = vld [vmem:[%s4981_s4 + $0x108] sm:$0xff] }
 0x98e   :  { %v1994_v18 = vsel %vm1993_vm0, %v3362_v32, %v1990_v0  ;;  %v3395_v32 = vld [vmem:[%s4981_s4 + $0x1a8] sm:$0xff]  ;;  %v2395_v23 = vsel %vm2392_vm1, %v2394_v48, %v2390_v1  ;;  %v2099_v50 = vand.u32 2147483647, %v4624_v61  ;;  %vm2097_vm0 = vmor %vm2095_vm13, %vm2096_vm10  ;;  %v2400_v22 = vadd.f32 %v4701_v37, %v2399_v27  ;;  %v2782_v27 = vld [vmem:[%s4981_s4 + $0x150] sm:$0xff] }
 0x98f   :  { %v1999_v60 = vsel %vm1996_vm5, %v1998_v42, %v1994_v18  ;;  %2664 = vmatpush.msrb.mxu3 %v3394_v3  ;;  %vm2402_vm5 = vweird.f32 %v4701_v37  ;;  %v2407_v51 = vand.u32 2147483648, %v4568_v56  ;;  %v2098_v29 = vsel %vm2097_vm0, %v4691_v12, %v2094_v31  ;;  %v2520_v42 = vld [vmem:[%s4981_s4 + $0x110] sm:$0xff]  ;;  %v2517_v18 = vld [vmem:[%s4981_s4 + $0xf8] sm:$0xff] }
 0x990   :  { %v2001_v45 = vmul.f32 %v4545_v62, %v1999_v60  ;;  %vm2401_vm8 = vweird.f32 %v4568_v56  ;;  %v2102_v9 = vor.u32 1.1754944e-38, %v2101_v10  ;;  %v2410_v30 = vmul.f32 %v4484_v41, %v2395_v23 }
 0x991   :  { %v3211_v38 = vpop.permute.xlu0 %3210  ;;  %2665 = vmatpush.msrb.mxu3 %v3395_v32  ;;  %v2405_v15 = vand.u32 2147483647, %v4568_v56  ;;  %vm2100_vm2 = vcmp.eq.f32.partialorder %v2099_v50, 8.507059e+37  ;;  %vm2403_vm15 = vmor %vm2401_vm8, %vm2402_vm5  ;;  %v2408_v8 = vor.u32 1.1754944e-38, %v2407_v51  ;;  %v2783_v32 = vld [vmem:[%s4981_s4 + $0x158] sm:$0xff]  ;;  %vm5026_vm10 = vcmask 523264  }
 0x992   :  { %v3212_v62 = vunpack.i.l.bf16 %v3211_v38  ;;  %3064 = vmatmul.msk.f32.gmra.mxu1 %vm252_vm6, %v2001_v45  ;;  %v3213_v11 = vunpack.i.h.bf16 %v3211_v38  ;;  %v2103_v61 = vsel %vm2100_vm2, %v2102_v9, %v2098_v29  ;;  %v2404_v4 = vsel %vm2403_vm15, %v4701_v37, %v2400_v22  ;;  %v2784_v38 = vld [vmem:[%s4981_s4 + $0x160] sm:$0xff]  ;;  %vm5027_vm1 = vmmov %vm5026_vm10 }
 0x993   :  { %2666 = vmatpush.msrb.mxu3 %v3396_v25  ;;  %vm2406_vm9 = vcmp.eq.f32.partialorder %v2405_v15, 8.507059e+37  ;;  %v2105_v24 = vmul.f32 %v4521_v6, %v2103_v61 }
 0x994   :  { %2132 = vmatpush.msra.mxu0 %v3212_v62  ;;  %3070 = vmatmul.msk.f32.gmra.mxu3 %vm252_vm6, %v2309_v49  ;;  %v2409_v59 = vsel %vm2406_vm9, %v2408_v8, %v2404_v4 }
 0x995   :  { %v2411_v12 = vmul.f32 %v4524_v47, %v2409_v59 }
 0x996   :  { %2133 = vmatpush.msra.mxu0 %v3213_v11 }
 0x997   :  { %3065 = vmatmul.msk.f32.vlgmr.msra.gmra.mxu0 %vm252_vm6, %v2104_v53 }
 0x998   :  { %2541 = vmatpush.msrb.mxu0 %v2524_v19 }
 0x99a   :  { %3071 = vmatmul.msk.f32.vlgmr.msra.gmra.mxu1 %vm252_vm6, %v2410_v30  ;;  %2542 = vmatpush.msrb.mxu0 %v2523_v5 }
 0x99c   :  { %2543 = vmatpush.msrb.mxu0 %v2522_v13 }
 0x99e   :  { %2544 = vmatpush.msrb.mxu0 %v2521_v26 }
 0x99f   :  { %3066 = vmatmul.msk.f32.gmra.mxu0 %vm252_vm6, %v2105_v24  ;;  %v4872_v24 = vld [vmem:[%s4981_s4 + $0x178] sm:$0xf] }
 0x9a0   :  { %2545 = vmatpush.msrb.mxu0 %v2520_v42  ;;  %v1338_v59 = vmul.f32 %v4328_v52, %v4872_v24 }
 0x9a2   :  { %3072 = vmatmul.msk.f32.gmra.mxu1 %vm252_vm6, %v2411_v12  ;;  %2546 = vmatpush.msrb.mxu0 %v2519_v14 }
 0x9a4   :  { %2547 = vmatpush.msrb.mxu0 %v2518_v54 }
 0x9a6   :  { %2548 = vmatpush.msrb.mxu0 %v2517_v18 }
 0x9a8   :  { %2800 = vmatpush.msra.mxu0 %v2785_v43 }
 0x9aa   :  { %2801 = vmatpush.msra.mxu0 %v2784_v38 }
 0x9ac   :  { %2802 = vmatpush.msra.mxu0 %v2783_v32 }
 0x9ae   :  { %2803 = vmatpush.msra.mxu0 %v2782_v27 }
 0x9d5   :  { %v1827_v39 = vpop.f32.mrf.mxu2 }
 0x9dd   :  { %v1929_v41 = vpop.f32.mrf.mxu3 }
 0x9de   :  { %2457 = vrot.lane.b32.xlu2 %v1929_v41, %s3520_s20 }
 0x9df   :  { %v2031_v56 = vpop.f32.mrf.mxu1 }
 0x9e0   :  { %2465 = vrot.lane.b32.xlu1 %v2031_v56, %s3519_s19  ;;  %v1725_v6 = vpop.f32.mrf.mxu0 }
 0x9e8   :  { %2449 = vrot.lane.b32.xlu1 %v1827_v39, %s3503_s17 }
 0x9fc   :  { %v1830_v37 = vpop.f32.mrf.mxu2 }
 0x9fd   :  { %2451 = vrot.lane.b32.xlu0 %v1830_v37, %s3503_s17 }
 0xa04   :  { %v2237_v35 = vpop.f32.mrf.mxu2 }
 0xa05   :  { %2481 = vrot.lane.b32.xlu0 %v2237_v35, %s3521_s21  ;;  %v1932_v17 = vpop.f32.mrf.mxu3 }
 0xa06   :  { %2459 = vrot.lane.b32.xlu1 %v1932_v17, %s3520_s20 }
 0xa07   :  { %v1728_v47 = vpop.f32.mrf.mxu0 }
 0xa0c   :  { %v2240_v44 = vpop.f32.mrf.mxu2 }
 0xa0f   :  { %v2034_v20 = vpop.f32.mrf.mxu1  ;;  %v2339_v16 = vpop.f32.mrf.mxu3 }
 0xa10   :  { %2467 = vrot.lane.b32.xlu2 %v2034_v20, %s3519_s19  ;;  %2489 = vrot.lane.b32.xlu1 %v2339_v16, %s3524_s24 }
 0xa14   :  { %v2135_v36 = vpop.f32.mrf.mxu0 }
 0xa17   :  { %v2441_v34 = vpop.f32.mrf.mxu1  ;;  %v2342_v2 = vpop.f32.mrf.mxu3 }
 0xa18   :  { %2473 = vrot.lane.b32.xlu2 %v2135_v36, %s3522_s22  ;;  %2483 = vrot.lane.b32.xlu1 %v2240_v44, %s3521_s21 }
 0xa1c   :  { %v2138_v21 = vpop.f32.mrf.mxu0 }
 0xa1d   :  { %2475 = vrot.lane.b32.xlu0 %v2138_v21, %s3522_s22  ;;  %s2949_s22 = sshll.u32 %s4983_s6, 4  ;;  %s2950_s22 = int_to_ptr.hbm [resolvable:$true] %s2949_s22 }
 0xa1f   :  { %v2444_v0 = vpop.f32.mrf.mxu1 }
 0xa20   :  { %2497 = vrot.lane.b32.xlu2 %v2441_v34, %s5025_s10 }
 0xa25   :  { %2491 = vrot.lane.b32.xlu0 %v2342_v2, %s3524_s24  ;;  %s3527_s24 = smov 128  }
 0xa28   :  { %2499 = vrot.lane.b32.xlu2 %v2444_v0, %s5025_s10 }
 0xa38   :  { %v2458_v40 = vpop.permute.xlu2 %2457 }
 0xa52   :  { %v2466_v33 = vpop.permute.xlu1 %2465 }
 0xa5a   :  { %v2450_v7 = vpop.permute.xlu1 %2449 }
 0xa5b   :  { %v2503_v45 = vsel %vm87_vm3, %v1725_v6, %v2450_v7 }
 0xa5c   :  { %v2505_v1 = vsel %vm252_vm6, %v2503_v45, %v2458_v40 }
 0xa5d   :  { %v2507_v49 = vsel %vm93_vm4, %v2505_v1, %v2466_v33 }
 0xa6a   :  { %v2468_v60 = vpop.permute.xlu2 %2467 }
 0xa6f   :  { %v2452_v3 = vpop.permute.xlu0 %2451 }
 0xa70   :  { %v2504_v53 = vsel %vm87_vm3, %v1728_v47, %v2452_v3  ;;  %vm1339_vm3 = vcmask 27648  }
 0xa71   :  { %v1340_v12 = vsel %vm1339_vm3, %v1338_v59, 0.0 }
 0xa72   :  { %v2474_v58 = vpop.permute.xlu2 %2473  ;;  %v1343_v41 = vrot.slane %v1340_v12, 4 }
 0xa73   :  { %v2509_v48 = vsel %vm1108_vm14, %v2507_v49, %v2474_v58 }
 0xa74   :  { %v1344_v56 = vadd.f32 %v1343_v41, %v1340_v12 }
 0xa76   :  { %v1345_v39 = vrot.slane %v1344_v56, 2 }
 0xa77   :  { %v2482_v62 = vpop.permute.xlu0 %2481 }
 0xa78   :  { %v2460_v63 = vpop.permute.xlu1 %2459  ;;  %v2511_v31 = vsel %vm1111_vm7, %v2509_v48, %v2482_v62 }
 0xa79   :  { %v2506_v22 = vsel %vm252_vm6, %v2504_v53, %v2460_v63 }
 0xa7a   :  { %v2498_v10 = vpop.permute.xlu2 %2497  ;;  %v2508_v51 = vsel %vm93_vm4, %v2506_v22, %v2468_v60 }
 0xa82   :  { %v2490_v25 = vpop.permute.xlu1 %2489  ;;  %v2500_v61 = vpop.permute.xlu2 %2499 }
 0xa83   :  { %v2513_v11 = vsel %vm1114_vm11, %v2511_v31, %v2490_v25 }
 0xa84   :  { %v2515_v23 = vsel %vm1117_vm12, %v2513_v11, %v2498_v10 }
 0xa85   :  { %2556 = vrot.lane.b32.xlu1 %v2515_v23, %s3514_s13  ;;  %3073 = vmatmul.msk.f32.vlgmr.msrb.gmra.mxu0 %vm5026_vm10, %v2515_v23 }
 0xa8a   :  { %v2484_v9 = vpop.permute.xlu1 %2483 }
 0xa8f   :  { %v2476_v50 = vpop.permute.xlu0 %2475 }
 0xa90   :  { %v2510_v29 = vsel %vm1108_vm14, %v2508_v51, %v2476_v50 }
 0xa91   :  { %v2512_v30 = vsel %vm1111_vm7, %v2510_v29, %v2484_v9 }
 0xa97   :  { %v2492_v15 = vpop.permute.xlu0 %2491 }
 0xa98   :  { %v2514_v4 = vsel %vm1114_vm11, %v2512_v30, %v2492_v15 }
 0xa99   :  { %v2516_v8 = vsel %vm1117_vm12, %v2514_v4, %v2500_v61 }
 0xa9a   :  { %2558 = vrot.lane.b32.xlu0 %v2516_v8, %s3514_s13  ;;  %3074 = vmatmul.msk.f32.gmra.mxu0 %vm5027_vm1, %v2516_v8 }
 0xaa2   :  { %3084 = vmatmul.msk.f32.vlgmr.msra.gmra.mxu0 %vm1108_vm14, %v4253_v28  ;;  %v1346_v28 = vadd.f32 %v1345_v39, %v1344_v56 }
 0xaa4   :  { %v1347_v6 = vrot.slane %v1346_v28, 1 }
 0xaa6   :  { %v1348_v35 = vadd.f32 %v1347_v6, %v1346_v28 }
 0xaa8   :  { %3365 = vrsqrt.f32 %v1348_v35  ;;  %vm1384_vm4 = vcmp.eq.f32.partialorder %v1348_v35, inf  ;;  %v1387_v58 = vand.u32 2147483648, %v1348_v35  ;;  %vm1386_vm7 = vcmp.eq.f32.partialorder %v1348_v35, 0.0 }
 0xaaa   :  { %3085 = vmatmul.msk.f32.gmra.mxu0 %vm1108_vm14, %v4258_v55  ;;  %v3224_v55 = vld [vmem:[%s4981_s4 + $0x138] ss:$0 sm:$0xff] }
 0xaae   :  { %v3366_v17 = vpop.eup %3365 }
 0xaaf   :  { %1341 = vadd.xlane.f32.xlu1 %v1340_v12  ;;  %v1378_v20 = vmul.f32 %v3366_v17, %v1348_v35 }
 0xab1   :  { %v1379_v36 = vmul.f32 %v3366_v17, %v1378_v20 }
 0xab3   :  { %v1380_v21 = vmul.f32 0.5, %v1379_v36 }
 0xab5   :  { %v1381_v5 = vsub.f32 1.5, %v1380_v21 }
 0xab7   :  { %v1382_v42 = vmul.f32 %v3366_v17, %v1381_v5 }
 0xab9   :  { %v1383_v40 = vmul.f32 %v1382_v42, %v1348_v35 }
 0xabb   :  { %v1385_v7 = vsel %vm1384_vm4, %v1348_v35, %v1383_v40 }
 0xabc   :  { %v1388_v43 = vsel %vm1386_vm7, %v1387_v58, %v1385_v7 }
 0xabd   :  { %v1389_v62 = vadd.f32 1e-08, %v1388_v43  ;;  %v3227_v43 = vld [vmem:[%s4981_s4 + $0x148] ss:$0 sm:$0xff] }
 0xabf   :  { %vm1395_vm5 = vweird.f32 %v1389_v62  ;;  %v1401_v36 = vand.u32 2147483648, %v1389_v62  ;;  %v1399_v21 = vand.u32 2147483647, %v1389_v62 }
 0xac1   :  { %vm1400_vm10 = vcmp.eq.f32.partialorder %v1399_v21, 8.507059e+37 }
 0xaf7   :  { %v2557_v37 = vpop.permute.xlu1 %2556 }
 0xaf8   :  { %2562 = vxpose.xlu2.b32.start [1/2] (short) (narrow) %v2557_v37, 32 }
 0xb02   :  { %v2550_v16 = vpop.f32.mrf.mxu0 }
 0xb03   :  { %v2551_v44 = vadd.f32 %v3224_v55, %v2550_v16 }
 0xb05   :  { %v2813_v0 = vsel %vm1108_vm14, %v2551_v44, 0.0 }
 0xb0c   :  { %v2559_v47 = vpop.permute.xlu0 %2558 }
 0xb0d   :  { %2620 = vmatpush.msra.mxu2 %v2559_v47  ;;  %2563 = vxpose.xlu2.b32.end [2/2] (short) (narrow) %v2559_v47, 32 }
 0xb0f   :  { %2621 = vmatpush.msra.mxu2 %v2557_v37 }
 0xb17   :  { %v2553_v34 = vpop.f32.mrf.mxu0 }
 0xb18   :  { %v2554_v2 = vadd.f32 %v3224_v55, %v2553_v34 }
 0xb1a   :  { %v2814_v19 = vsel %vm1108_vm14, %v2554_v2, 0.0 }
 0xb1b   :  { %v2815_v13 = vadd.f32 %v2814_v19, %v2813_v0 }
 0xb1d   :  { %v2816_v26 = vrot.slane %v2815_v13, 4 }
 0xb1f   :  { %v2817_v14 = vadd.f32 %v2816_v26, %v2815_v13  ;;  %v1402_v13 = vor.u32 1.1754944e-38, %v1401_v36 }
 0xb21   :  { %v2818_v54 = vrot.slane %v2817_v14, 2 }
 0xb22   :  { %v1342_v18 = vpop.xlane.xlu1 %1341 }
 0xb23   :  { %v2819_v33 = vadd.f32 %v2818_v54, %v2817_v14  ;;  %3367 = vrsqrt.f32 %v1342_v18  ;;  %vm1356_vm11 = vcmp.eq.f32.partialorder %v1342_v18, inf  ;;  %v1359_v29 = vand.u32 2147483648, %v1342_v18 }
 0xb24   :  { %3369 = vrcp.f32 %v1389_v62  ;;  %vm1358_vm12 = vcmp.eq.f32.partialorder %v1342_v18, 0.0 }
 0xb25   :  { %v2820_v60 = vrot.slane %v2819_v33, 1 }
 0xb27   :  { %v2821_v3 = vadd.f32 %v2820_v60, %v2819_v33 }
 0xb29   :  { %v3368_v45 = vpop.eup %3367  ;;  %v2822_v63 = vmul.f32 %v2821_v3, %v4217_v57  ;;  %v3225_v3 = vld [vmem:[%s4981_s4 + $0x140] ss:$0 sm:$0xff] }
 0xb2a   :  { %v1350_v38 = vmul.f32 %v3368_v45, %v1342_v18  ;;  %v3370_v9 = vpop.eup %3369 }
 0xb2b   :  { %v4885_v32 = vsub.f32 %v2551_v44, %v2822_v63  ;;  %v4887_v1 = vsub.f32 %v2554_v2, %v2822_v63  ;;  %v1391_v59 = vmul.f32 %v3370_v9, %v1389_v62  ;;  %vm1396_vm13 = vweird.f32 %v3370_v9 }
 0xb2c   :  { %v1351_v27 = vmul.f32 %v3368_v45, %v1350_v38  ;;  %vm1397_vm2 = vmor %vm1395_vm5, %vm1396_vm13 }
 0xb2d   :  { %v2825_v49 = vmul.f32 %v4885_v32, %v4885_v32  ;;  %v2826_v48 = vmul.f32 %v4887_v1, %v4887_v1  ;;  %v1392_v56 = vsub.f32 1.0, %v1391_v59 }
 0xb2e   :  { %v1352_v31 = vmul.f32 0.5, %v1351_v27 }
 0xb2f   :  { %v2827_v25 = vsel %vm1108_vm14, %v2825_v49, 0.0  ;;  %v2828_v10 = vsel %vm1108_vm14, %v2826_v48, 0.0  ;;  %v1393_v35 = vmul.f32 %v3370_v9, %v1392_v56  ;;  %v2805_v48 = vpop.f32.mrf.mxu0  ;;  %v3397_v56 = vld [vmem:[%s4981_s4 + $0x180] sm:$0xff] }
 0xb30   :  { %v2829_v11 = vadd.f32 %v2828_v10, %v2827_v25  ;;  %v1353_v23 = vsub.f32 1.5, %v1352_v31 }
 0xb31   :  { %v1394_v55 = vadd.f32 %v3370_v9, %v1393_v35 }
 0xb32   :  { %v2830_v53 = vrot.slane %v2829_v11, 4  ;;  %v1354_v50 = vmul.f32 %v3368_v45, %v1353_v23 }
 0xb33   :  { %v1398_v19 = vsel %vm1397_vm2, %v3370_v9, %v1394_v55 }
 0xb34   :  { %v2831_v22 = vadd.f32 %v2830_v53, %v2829_v11  ;;  %v1355_v51 = vmul.f32 %v1354_v50, %v1342_v18  ;;  %v1403_v14 = vsel %vm1400_vm10, %v1402_v13, %v1398_v19 }
 0xb36   :  { %v2832_v30 = vrot.slane %v2831_v22, 2  ;;  %v1357_v15 = vsel %vm1356_vm11, %v1342_v18, %v1355_v51 }
 0xb37   :  { %v1360_v61 = vsel %vm1358_vm12, %v1359_v29, %v1357_v15  ;;  %v2808_v23 = vpop.f32.mrf.mxu0 }
 0xb38   :  { %v2833_v4 = vadd.f32 %v2832_v30, %v2831_v22  ;;  %v1361_v8 = vadd.f32 1e-08, %v1360_v61 }
 0xb3a   :  { %v2834_v12 = vrot.slane %v2833_v4, 1  ;;  %3371 = vrcp.f32 %v1361_v8  ;;  %v1373_v47 = vand.u32 2147483648, %v1361_v8  ;;  %v1371_v16 = vand.u32 2147483647, %v1361_v8 }
 0xb3b   :  { %vm1367_vm8 = vweird.f32 %v1361_v8 }
 0xb3c   :  { %v2835_v41 = vadd.f32 %v2834_v12, %v2833_v4  ;;  %vm1372_vm9 = vcmp.eq.f32.partialorder %v1371_v16, 8.507059e+37  ;;  %v3400_v16 = vld [vmem:[%s4981_s4 + $0x198] sm:$0xff] }
 0xb3e   :  { %v2836_v39 = vmul.f32 %v2835_v41, %v4217_v57  ;;  %v1374_v57 = vor.u32 1.1754944e-38, %v1373_v47 }
 0xb40   :  { %v3372_v37 = vpop.eup %3371  ;;  %v2837_v28 = vadd.f32 1e-05, %v2836_v39 }
 0xb41   :  { %v1363_v6 = vmul.f32 %v3372_v37, %v1361_v8  ;;  %vm1368_vm0 = vweird.f32 %v3372_v37 }
 0xb42   :  { %3373 = vrsqrt.f32 %v2837_v28  ;;  %vm1369_vm15 = vmor %vm1367_vm8, %vm1368_vm0  ;;  %vm2844_vm4 = vweird.f32 %v2837_v28  ;;  %vm2896_vm0 = vcmask 254976  }
 0xb43   :  { %v1364_v17 = vsub.f32 1.0, %v1363_v6 }
 0xb45   :  { %v1365_v20 = vmul.f32 %v3372_v37, %v1364_v17  ;;  %v3399_v17 = vld [vmem:[%s4981_s4 + $0x190] sm:$0xff] }
 0xb47   :  { %v1366_v44 = vadd.f32 %v3372_v37, %v1365_v20 }
 0xb48   :  { %v3374_v34 = vpop.eup %3373 }
 0xb49   :  { %v2839_v2 = vmul.f32 %v3374_v34, %v2837_v28  ;;  %v1370_v0 = vsel %vm1369_vm15, %v3372_v37, %v1366_v44  ;;  %vm2845_vm1 = vweird.f32 %v3374_v34  ;;  %v3398_v28 = vld [vmem:[%s4981_s4 + $0x188] sm:$0xff] }
 0xb4a   :  { %v1375_v5 = vsel %vm1372_vm9, %v1374_v57, %v1370_v0  ;;  %vm2846_vm7 = vmor %vm2844_vm4, %vm2845_vm1  ;;  %v2870_v57 = vld [vmem:[%s4980_s3] sm:$0x3]  ;;  %s2974_s3 = sshll.u32 %s4985_s8, 4  ;;  %s2975_s3 = int_to_ptr.hbm [resolvable:$true] %s2974_s3 }
 0xb4b   :  { %v2840_v26 = vmul.f32 %v3374_v34, %v2839_v2  ;;  %v1405_v42 = vmul.f32 %v1375_v5, %v4328_v52 }
 0xb4d   :  { %v2841_v54 = vmul.f32 0.5, %v2840_v26  ;;  %v1406_v18 = vmul.f32 %v1405_v42, %v1403_v14 }
 0xb4f   :  { %v2842_v40 = vsub.f32 1.5, %v2841_v54  ;;  %v1407_v33 = vsub.f32 %v1406_v18, %v4872_v24 }
 0xb51   :  { %v2843_v60 = vmul.f32 %v3374_v34, %v2842_v40  ;;  %v1408_v7 = vmul.f32 %v1407_v33, %v1407_v33 }
 0xb53   :  { %v2847_v58 = vsel %vm2846_vm7, %v3374_v34, %v2843_v60  ;;  %v1409_v45 = vsel %vm1339_vm3, %v1408_v7, 0.0 }
 0xb54   :  { %v2848_v52 = vmul.f32 %v2847_v58, %v4885_v32  ;;  %v2849_v63 = vmul.f32 %v2847_v58, %v4887_v1  ;;  %1410 = vadd.xlane.f32.xlu1 %v1409_v45  ;;  %v3226_v32 = vld [vmem:[%s4981_s4 + $0x170] ss:$0 sm:$0xff] }
 0xb55   :  { %v2806_v22 = vadd.f32 %v3226_v32, %v2805_v48  ;;  %v2809_v9 = vadd.f32 %v3226_v32, %v2808_v23 }
 0xb56   :  { %v2851_v38 = vmul.f32 %v3225_v3, %v2848_v52  ;;  %v2852_v27 = vmul.f32 %v3225_v3, %v2849_v63 }
 0xb58   :  { %v2854_v62 = vadd.f32 %v3227_v43, %v2851_v38  ;;  %v2855_v49 = vadd.f32 %v3227_v43, %v2852_v27 }
 0xb5a   :  { %v2858_v31 = vmin.f32 %v2854_v62, 0.0  ;;  %v2859_v25 = vmin.f32 %v2855_v49, 0.0  ;;  %vm2856_vm11 = vcmp.gt.f32.partialorder %v2854_v62, 0.0  ;;  %vm2857_vm12 = vcmp.gt.f32.partialorder %v2855_v49, 0.0 }
 0xb5c   :  { %v2860_v10 = vmul.f32 1.442695, %v2858_v31  ;;  %v2862_v11 = vmul.f32 1.442695, %v2859_v25 }
 0xb5e   :  { %3375 = vpow2.f32 %v2860_v10  ;;  %v2901_v10 = vld [vmem:[%s4981_s4 + $0x28] sm:$0xff] }
 0xb5f   :  { %3377 = vpow2.f32 %v2862_v11  ;;  %v2900_v11 = vld [vmem:[%s4981_s4 + $0x20] sm:$0xff] }
 0xb64   :  { %v3376_v1 = vpop.eup %3375 }
 0xb65   :  { %v3378_v53 = vpop.eup %3377  ;;  %v3086_v50 = vadd.f32 -1.0, %v3376_v1 }
 0xb66   :  { %v3087_v51 = vadd.f32 -1.0, %v3378_v53 }
 0xb67   :  { %v2866_v29 = vsel %vm2856_vm11, %v2854_v62, %v3086_v50  ;;  %v2899_v50 = vld [vmem:[%s4981_s4 + $0x18] sm:$0xff]  ;;  %vm2927_vm11 = vcmask 17408  }
 0xb68   :  { %v2868_v30 = vadd.f32 %v2866_v29, %v2806_v22  ;;  %v2867_v15 = vsel %vm2857_vm12, %v2855_v49, %v3087_v51  ;;  %v2898_v29 = vld [vmem:[%s4981_s4 + $0x10] sm:$0xff] }
 0xb69   :  { %v2869_v61 = vadd.f32 %v2867_v15, %v2809_v9 }
 0xb6a   :  { %2894 = vst.msk [vmem:[#allocation4] sm:$0xff] %vm1108_vm14, %v2868_v30 }
 0xb6b   :  { %2895 = vst.msk [vmem:[#allocation4 + $0x8] sm:$0xff] %vm1108_vm14, %v2869_v61 }
 0xb6c   :  { %2955 = dma.vmem_to_hbm [thread:$0]  %s2948_s2, 256, %s2950_s22, [#allocation5], %s3527_s24, %s3527_s24, %s3503_s17  }
 0xb6d   :  { %s2939_s17 = sshll.u32 %s4982_s5, 4  ;;  %s2940_s17 = int_to_ptr.hbm [resolvable:$true] %s2939_s17 }
 0xb9e   :  { %v2578_v4 = vpop.trf.xlu2 }
 0xb9f   :  { %3075 = vmatmul.msk.f32.vlgmr.msra.gmra.mxu2 %vm252_vm6, %v2578_v4 }
 0xba6   :  { %v2579_v8 = vpop.trf.xlu2 }
 0xba7   :  { %3076 = vmatmul.msk.f32.gmra.mxu2 %vm252_vm6, %v2579_v8 }
 0xbae   :  { %v2580_v59 = vpop.trf.xlu2 }
 0xbaf   :  { %3077 = vmatmul.msk.f32.gmra.mxu2 %vm252_vm6, %v2580_v59 }
 0xbb6   :  { %v2581_v12 = vpop.trf.xlu2 }
 0xbb7   :  { %3078 = vmatmul.msk.f32.gmra.mxu2 %vm252_vm6, %v2581_v12 }
 0xc22   :  { %v2623_v41 = vpop.f32.mrf.mxu2 }
 0xc23   :  { %v2635_v39 = vmul.f32 %v3397_v56, %v2623_v41 }
 0xc25   :  { %3079 = vmatmul.msk.f32.vlgmr.msrb.gmra.mxu3 %vm1108_vm14, %v2635_v39 }
 0xc2a   :  { %v2626_v37 = vpop.f32.mrf.mxu2 }
 0xc2b   :  { %v2636_v6 = vmul.f32 %v3398_v28, %v2626_v37 }
 0xc2d   :  { %3080 = vmatmul.msk.f32.gmra.mxu3 %vm1108_vm14, %v2636_v6 }
 0xc32   :  { %v2629_v35 = vpop.f32.mrf.mxu2 }
 0xc33   :  { %v2637_v47 = vmul.f32 %v3399_v17, %v2629_v35 }
 0xc35   :  { %3081 = vmatmul.msk.f32.gmra.mxu3 %vm1108_vm14, %v2637_v47 }
 0xc3a   :  { %v2632_v20 = vpop.f32.mrf.mxu2 }
 0xc3b   :  { %v2638_v55 = vmul.f32 %v3400_v16, %v2632_v20 }
 0xc3d   :  { %3082 = vmatmul.msk.f32.gmra.mxu3 %vm1108_vm14, %v2638_v55 }
 0xca8   :  { %v2668_v36 = vpop.f32.mrf.mxu3 }
 0xcb0   :  { %v2671_v44 = vpop.f32.mrf.mxu3 }
 0xcb8   :  { %v2674_v21 = vpop.f32.mrf.mxu3 }
 0xcc0   :  { %v2677_v34 = vpop.f32.mrf.mxu3 }
 0xcc1   :  { %2692 = vmatpush.msrb.mxu1 %v2677_v34 }
 0xcc3   :  { %2693 = vmatpush.msrb.mxu1 %v2674_v21 }
 0xcc5   :  { %2694 = vmatpush.msrb.mxu1 %v2671_v44 }
 0xcc7   :  { %2695 = vmatpush.msrb.mxu1 %v2668_v36 }
 0xcc8   :  { %3083 = vmatmul.msk.f32.vlgmr.msrb.gmra.mxu1 %vm1108_vm14, %v4310_v46 }
 0xcc9   :  { %2888 = vmatpush.msra.mxu1 %v2869_v61 }
 0xccb   :  { %2889 = vmatpush.msra.mxu1 %v2868_v30 }
 0xccd   :  { %2919 = vmatpush.msrb.mxu1 %v2901_v10 }
 0xccf   :  { %2920 = vmatpush.msrb.mxu1 %v2900_v11 }
 0xcd0   :  { %3088 = vmatmul.msk.f32.vlgmr.msra.gmra.mxu1 %vm252_vm6, %v2870_v57  ;;  %v3228_v57 = vld [vmem:[%s4981_s4 + $0x30] ss:$0 sm:$0xff]  ;;  %s3531_s4 = smov [#allocation7]  }
 0xcd1   :  { %2921 = vmatpush.msrb.mxu1 %v2899_v50  ;;  %s2972_s5 = sshll.u32 %s3531_s4, 4  ;;  %s2973_s5 = int_to_ptr.vmem [resolvable:$true] %s2972_s5 }
 0xcd3   :  { %2922 = vmatpush.msrb.mxu1 %v2898_v29 }
 0xd45   :  { %v4938_v2 = vpop.f32.mrf.mxu1 }
 0xd46   :  { %v2700_v0 = vmul.f32 %v4938_v2, %v4872_v24 }
 0xd48   :  { %v2701_v19 = vsel %vm1339_vm3, %v2700_v0, 0.0 }
 0xd49   :  { %2702 = vadd.xlane.f32.xlu0 %v2701_v19  ;;  %v2704_v5 = vrot.slane %v2701_v19, 4 }
 0xd4b   :  { %v2705_v13 = vadd.f32 %v2704_v5, %v2701_v19 }
 0xd4d   :  { %v2706_v26 = vrot.slane %v2705_v13, 2  ;;  %v2891_v32 = vpop.f32.mrf.mxu1 }
 0xd4e   :  { %2897 = vst.msk [vmem:[#allocation6] sm:$0x3] %vm2896_vm0, %v2891_v32  ;;  %3089 = vmatmul.msk.f32.vlgmr.msrb.gmra.mxu1 %vm1108_vm14, %v2891_v32 }
 0xd4f   :  { %v2707_v46 = vadd.f32 %v2706_v26, %v2705_v13  ;;  %2966 = dma.vmem_to_hbm [thread:$0]  %s2962_s0, 32, %s2964_s27, [#allocation5]   ;;  %v3530_v13 = vmov 12.0  }
 0xd51   :  { %v2708_v42 = vrot.slane %v2707_v46, 1 }
 0xd53   :  { %v2709_v14 = vadd.f32 %v2708_v42, %v2707_v46 }
 0xd55   :  { %3379 = vrsqrt.f32 %v2709_v14  ;;  %vm2745_vm6 = vcmp.eq.f32.partialorder %v2709_v14, inf  ;;  %v2748_v52 = vand.u32 2147483648, %v2709_v14  ;;  %vm2747_vm13 = vcmp.eq.f32.partialorder %v2709_v14, 0.0 }
 0xd5b   :  { %v3380_v54 = vpop.eup %3379 }
 0xd5c   :  { %v2739_v18 = vmul.f32 %v3380_v54, %v2709_v14 }
 0xd5e   :  { %v2740_v40 = vmul.f32 %v3380_v54, %v2739_v18 }
 0xd60   :  { %v2741_v33 = vmul.f32 0.5, %v2740_v40 }
 0xd62   :  { %v2742_v60 = vsub.f32 1.5, %v2741_v33 }
 0xd64   :  { %v2743_v7 = vmul.f32 %v3380_v54, %v2742_v60 }
 0xd66   :  { %v2744_v58 = vmul.f32 %v2743_v7, %v2709_v14 }
 0xd68   :  { %v2746_v45 = vsel %vm2745_vm6, %v2709_v14, %v2744_v58  ;;  %vm2930_vm6 = vcmask 0  }
 0xd69   :  { %v2749_v43 = vsel %vm2747_vm13, %v2748_v52, %v2746_v45 }
 0xd6a   :  { %v2750_v62 = vadd.f32 1e-08, %v2749_v43 }
 0xd6c   :  { %vm2756_vm9 = vweird.f32 %v2750_v62  ;;  %v2762_v39 = vand.u32 2147483648, %v2750_v62  ;;  %v2760_v28 = vand.u32 2147483647, %v2750_v62 }
 0xd6e   :  { %v2763_v20 = vor.u32 1.1754944e-38, %v2762_v39  ;;  %vm2761_vm7 = vcmp.eq.f32.partialorder %v2760_v28, 8.507059e+37 }
 0xdbc   :  { %v2703_v3 = vpop.xlane.xlu0 %2702 }
 0xdbd   :  { %3381 = vrsqrt.f32 %v2703_v3  ;;  %vm2717_vm5 = vcmp.eq.f32.partialorder %v2703_v3, inf  ;;  %v2720_v1 = vand.u32 2147483648, %v2703_v3  ;;  %vm2719_vm8 = vcmp.eq.f32.partialorder %v2703_v3, 0.0 }
 0xdbe   :  { %3383 = vrcp.f32 %v2750_v62 }
 0xdc3   :  { %v3382_v63 = vpop.eup %3381 }
 0xdc4   :  { %v2711_v38 = vmul.f32 %v3382_v63, %v2703_v3  ;;  %v3384_v23 = vpop.eup %3383 }
 0xdc5   :  { %v2752_v9 = vmul.f32 %v3384_v23, %v2750_v62  ;;  %vm2757_vm2 = vweird.f32 %v3384_v23 }
 0xdc6   :  { %v2712_v27 = vmul.f32 %v3382_v63, %v2711_v38  ;;  %vm2758_vm1 = vmor %vm2756_vm9, %vm2757_vm2 }
 0xdc7   :  { %v2753_v30 = vsub.f32 1.0, %v2752_v9 }
 0xdc8   :  { %v2713_v49 = vmul.f32 0.5, %v2712_v27 }
 0xdc9   :  { %v2754_v4 = vmul.f32 %v3384_v23, %v2753_v30 }
 0xdca   :  { %v2714_v48 = vsub.f32 1.5, %v2713_v49 }
 0xdcb   :  { %v2755_v56 = vadd.f32 %v3384_v23, %v2754_v4  ;;  %v2924_v0 = vpop.f32.mrf.mxu1 }
 0xdcc   :  { %v2715_v31 = vmul.f32 %v3382_v63, %v2714_v48  ;;  %v2925_v19 = vadd.f32 %v3228_v57, %v2924_v0 }
 0xdcd   :  { %v2759_v17 = vsel %vm2758_vm1, %v3384_v23, %v2755_v56 }
 0xdce   :  { %v2716_v25 = vmul.f32 %v2715_v31, %v2703_v3  ;;  %v2764_v55 = vsel %vm2761_vm7, %v2763_v20, %v2759_v17  ;;  %2928 = vst.msk [vmem:[#allocation2] sm:$0x3] %vm2927_vm11, %v2925_v19 }
 0xdcf   :  { %2942 = dma.vmem_to_hbm [thread:$0]  %s2938_s16, 32, %s2940_s17, [#allocation3]  }
 0xdd0   :  { %v2718_v53 = vsel %vm2717_vm5, %v2703_v3, %v2716_v25 }
 0xdd1   :  { %v2721_v22 = vsel %vm2719_vm8, %v2720_v1, %v2718_v53 }
 0xdd2   :  { %v2722_v51 = vadd.f32 1e-08, %v2721_v22 }
 0xdd4   :  { %3385 = vrcp.f32 %v2722_v51  ;;  %v2734_v59 = vand.u32 2147483648, %v2722_v51  ;;  %v2732_v41 = vand.u32 2147483647, %v2722_v51  ;;  %vm2728_vm10 = vweird.f32 %v2722_v51 }
 0xdd5   :  { %3387 = vrcp.f32 %v3530_v13 }
 0xdd6   :  { %v2735_v6 = vor.u32 1.1754944e-38, %v2734_v59  ;;  %vm2733_vm14 = vcmp.eq.f32.partialorder %v2732_v41, 8.507059e+37 }
 0xdda   :  { %v3386_v15 = vpop.eup %3385 }
 0xddb   :  { %v2724_v61 = vmul.f32 %v3386_v15, %v2722_v51  ;;  %vm2729_vm15 = vweird.f32 %v3386_v15  ;;  %v3388_v46 = vpop.eup %3387 }
 0xddc   :  { %vm2730_vm4 = vmor %vm2728_vm10, %vm2729_vm15  ;;  %v1422_v14 = vmul.f32 12.0, %v3388_v46  ;;  %vm1426_vm12 = vweird.f32 %v3388_v46 }
 0xddd   :  { %v2725_v8 = vsub.f32 1.0, %v2724_v61 }
 0xdde   :  { %v1423_v33 = vsub.f32 1.0, %v1422_v14 }
 0xddf   :  { %v2726_v12 = vmul.f32 %v3386_v15, %v2725_v8 }
 0xde0   :  { %v1424_v58 = vmul.f32 %v3388_v46, %v1423_v33 }
 0xde1   :  { %v2727_v37 = vadd.f32 %v3386_v15, %v2726_v12 }
 0xde2   :  { %v1425_v43 = vadd.f32 %v3388_v46, %v1424_v58 }
 0xde3   :  { %v2731_v35 = vsel %vm2730_vm4, %v3386_v15, %v2727_v37 }
 0xde4   :  { %v2736_v47 = vsel %vm2733_vm14, %v2735_v6, %v2731_v35  ;;  %v1427_v49 = vsel %vm1426_vm12, %v3388_v46, %v1425_v43 }
 0xde5   :  { %v2766_v16 = vmul.f32 %v2736_v47, %v4938_v2 }
 0xde7   :  { %v2767_v36 = vmul.f32 %v2766_v16, %v2764_v55 }
 0xde9   :  { %v2768_v44 = vsub.f32 %v2767_v36, %v4872_v24  ;;  %v1411_v24 = vpop.xlane.xlu1 %1410 }
 0xdeb   :  { %v2769_v21 = vmul.f32 %v2768_v44, %v2768_v44 }
 0xded   :  { %v2770_v34 = vsel %vm1339_vm3, %v2769_v21, 0.0  ;;  %vm1412_vm3 = vcmask 1043456  }
 0xdee   :  { %2771 = vadd.xlane.f32.xlu2 %v2770_v34  ;;  %v1413_v2 = vsel %vm1412_vm3, %v1411_v24, 0.0 }
 0xdef   :  { %v1414_v5 = vrot.slane %v1413_v2, 4 }
 0xdf1   :  { %v1415_v26 = vadd.f32 %v1414_v5, %v1413_v2 }
 0xdf3   :  { %v1416_v42 = vrot.slane %v1415_v26, 2 }
 0xdf5   :  { %v1417_v54 = vadd.f32 %v1416_v42, %v1415_v26 }
 0xdf7   :  { %v1418_v7 = vrot.slane %v1417_v54, 1 }
 0xdf9   :  { %v1419_v52 = vadd.f32 %v1418_v7, %v1417_v54 }
 0xdfb   :  { %v1420_v27 = vmul.f32 0.1, %v1419_v52 }
 0xdfd   :  { %v1428_v31 = vmul.f32 %v1427_v49, %v1420_v27 }
 0xe61   :  { %v2772_v18 = vpop.xlane.xlu2 %2771 }
 0xe62   :  { %v2773_v40 = vsel %vm1412_vm3, %v2772_v18, 0.0 }
 0xe63   :  { %v2774_v60 = vrot.slane %v2773_v40, 4 }
 0xe65   :  { %v2775_v3 = vadd.f32 %v2774_v60, %v2773_v40 }
 0xe67   :  { %v2776_v45 = vrot.slane %v2775_v3, 2 }
 0xe69   :  { %v2777_v63 = vadd.f32 %v2776_v45, %v2775_v3 }
 0xe6b   :  { %v2778_v38 = vrot.slane %v2777_v63, 1 }
 0xe6d   :  { %v2779_v62 = vadd.f32 %v2778_v38, %v2777_v63 }
 0xe6f   :  { %v2780_v48 = vmul.f32 0.1, %v2779_v62 }
 0xe71   :  { %v2781_v25 = vmul.f32 %v2780_v48, %v1427_v49 }
 0xe73   :  { %v2929_v10 = vadd.f32 %v2781_v25, %v1428_v31 }
 0xe75   :  { %2931 = vst.msk [vmem:[#allocation7] sm:$0x1] %vm2930_vm6, %v2929_v10 }
 0xe76   :  { %2977 = dma.vmem_to_hbm [thread:$0]  %s2973_s5, 16, %s2975_s3, [#allocation8]  }
 0xe77   :  { %3497 = dma.done.wait [#allocation3], 32  }
 0xe78   :  { %3498 = vsyncadd [#allocation3], 4294967264 }
 0xe79   :  { %3499 = dma.done.wait [#allocation5], 288  }
 0xe7a   :  { %3500 = vsyncadd [#allocation5], 4294967008 }
 0xe7b   :  { %3501 = dma.done.wait [#allocation8], 16  }
 0xe7c   :  { %3502 = vsyncadd [#allocation8], 4294967280 }
 0xe7d   :  { %2994 = vsyncpa [#allocation3], 1 }
 0xe7e   :  { %2995 = vsyncpa [#allocation5], 1 }
 0xe7f   :  { %2996 = vsyncpa [#allocation8], 1 }

</bundles_post_ra>
